<compile_context>
chip_gen: v7x
topology: tpu7x:2x2x1
jax: 0.10.0
libtpu: 0.0.40
codegen_flags: <defaults>
</compile_context>

<pallas_src>
import functools

import jax
import jax.numpy as jnp
from jax.experimental import pallas as pl
from jax.experimental.pallas import tpu as pltpu


def _deconv_rowphase_kernel(w_ref, b_ref, x_ref, o_ref):
    """One (batch, row-tile) step of: nearest-2x upsample -> 3x3 SAME conv -> LeakyReLU.

    w_ref : SMEM (2*2*3*Cout*Cin,) f32  row-phase-folded weights, flat index
            (((p*2 + a)*3 + kx)*Cout + co)*Cin + ci
              p  : output-row parity (sub-pixel row phase)
              a  : which of the 2 effective original-resolution row taps
              kx : 3 column taps (columns were pre-duplicated in the wrapper)
    b_ref : SMEM (Cout,) f32
    x_ref : VMEM (Cin, H0+2, 2*W0+2)  zero-padded, column-duplicated image (one batch)
    o_ref : VMEM (Cout, TH, 2*W)      TH original rows; lanes hold [row 2i | row 2i+1]
    """
    Cin, Hp, Wcp = x_ref.shape
    Cout, TH, _ = o_ref.shape
    W = Wcp - 2                              # upsampled width (= 2*W0)

    r = pl.program_id(1)
    i0 = pl.multiple_of(r * TH, TH)          # first original row of this tile

    acc_parts = [[None, None] for _ in range(Cout)]
    for p in range(2):                       # output row parity
        # Load the 2*Cin row slabs needed by this phase once; pre-slice the 3 column
        # taps.  Reused across all Cout (no per-tap MXU push, no per-tap reshape).
        taps = {}
        for ci in range(Cin):
            for a in range(2):
                slab = x_ref[ci, pl.ds(i0 + p + a, TH), :]       # (TH, Wcp)
                for kx in range(3):
                    taps[(ci, a, kx)] = slab[:, kx:kx + W]       # (TH, W)
        for co in range(Cout):
            acc = jnp.zeros((TH, W), jnp.float32)
            # VPU broadcast-FMAs: scalar (SMEM) weight x (TH, W) lane slab.
            for ci in range(Cin):
                for a in range(2):
                    for kx in range(3):
                        widx = (((p * 2 + a) * 3 + kx) * Cout + co) * Cin + ci
                        acc = acc + w_ref[widx] * taps[(ci, a, kx)]
            acc = acc + b_ref[co]
            acc_parts[co][p] = jnp.where(acc > 0, acc, 0.01 * acc)   # LeakyReLU(0.01)

    # Pack both row phases on the lane axis -> one wide store per output channel.
    for co in range(Cout):
        o_ref[co] = jnp.concatenate(acc_parts[co], axis=-1).astype(o_ref.dtype)


def _fold_row_phase_weights(w_pt):
    """(Cout, Cin, 3, 3) torch weight -> flat (2*2*3*Cout*Cin,) row-phase weights.

    Output row 2i   (p=0): w[ky=0] acts on original row i-1, (w[ky=1]+w[ky=2]) on row i.
    Output row 2i+1 (p=1): (w[ky=0]+w[ky=1]) acts on row i,  w[ky=2] on row i+1.
    """
    w = w_pt
    wr = jnp.stack([
        jnp.stack([w[:, :, 0, :], w[:, :, 1, :] + w[:, :, 2, :]], axis=0),   # p = 0
        jnp.stack([w[:, :, 0, :] + w[:, :, 1, :], w[:, :, 2, :]], axis=0),   # p = 1
    ], axis=0)                                            # (p, a, Cout, Cin, kx)
    return jnp.transpose(wr, (0, 1, 4, 2, 3)).reshape(-1)  # (p, a, kx, Cout, Cin) flat


def _pick_row_tile(H0, W_up, Cout, budget_bytes=2 * 1024 * 1024):
    """Largest divisor of H0 (a multiple of 8, or H0 itself) whose output block fits."""
    cands = [t for t in range(1, H0 + 1) if H0 % t == 0 and (t == H0 or t % 8 == 0)]
    best = cands[0]
    for t in cands:
        if Cout * t * 2 * W_up * 4 <= budget_bytes:
            best = max(best, t)
    return best


@functools.partial(jax.jit, static_argnames=("row_tile",))
def gen_deconv(x_nchw, w_pt, b, row_tile=None):
    """Forward of GenDeconv: nearest 2x upsample -> 3x3 SAME conv -> LeakyReLU(0.01).

    x_nchw : (N, Cin, H0, W0)    float32
    w_pt   : (Cout, Cin, 3, 3)   float32  (PyTorch conv weight layout)
    b      : (Cout,)             float32
    returns (N, Cout, 2*H0, 2*W0) float32
    """
    N, Cin, H0, W0 = x_nchw.shape
    Cout = w_pt.shape[0]
    H, W = 2 * H0, 2 * W0

    # Column-direction nearest upsample only (2x the small original-res input, not 4x),
    # plus the SAME zero pad, both at original row resolution.  The row-direction
    # upsample is fused into the kernel via the folded row-phase weights.
    xc = jnp.repeat(x_nchw, 2, axis=3)                         # (N, Cin, H0, W)
    xcp = jnp.pad(xc, ((0, 0), (0, 0), (1, 1), (1, 1)))        # (N, Cin, H0+2, W+2)
    Hp, Wcp = H0 + 2, W + 2

    wr = _fold_row_phase_weights(w_pt).astype(jnp.float32)     # SMEM scalars
    bb = b.astype(jnp.float32)

    if row_tile is None:
        row_tile = _pick_row_tile(H0, W, Cout)
    assert H0 % row_tile == 0 and (row_tile == H0 or row_tile % 8 == 0), row_tile
    R = H0 // row_tile

    # Output is written as (N, Cout, H0, 2*W): for each original row i the lane axis
    # holds [output row 2i | output row 2i+1]; the NCHW view is a free reshape.
    out_packed = pl.pallas_call(
        _deconv_rowphase_kernel,
        out_shape=jax.ShapeDtypeStruct((N, Cout, H0, 2 * W), x_nchw.dtype),
        grid=(N, R),
        in_specs=[
            pl.BlockSpec(memory_space=pltpu.MemorySpace.SMEM),             # folded weights
            pl.BlockSpec(memory_space=pltpu.MemorySpace.SMEM),             # bias
            # NOTE: the (small, original-resolution) padded image stays resident per
            # batch; compute and output stores are row-tiled for pipelining.
            pl.BlockSpec((None, Cin, Hp, Wcp), lambda n, r: (n, 0, 0, 0)),
        ],
        out_specs=pl.BlockSpec((None, Cout, row_tile, 2 * W),
                               lambda n, r: (n, 0, r, 0)),
        compiler_params=pltpu.CompilerParams(
            dimension_semantics=("parallel", "parallel"),
            vmem_limit_bytes=48 * 1024 * 1024,
        ),
    )(wr, bb, xcp)

    return out_packed.reshape(N, Cout, H, W)


def _reference(x_nchw, w_pt, b):
    # Pure-JAX reference of the PyTorch module forward.
    x = jnp.repeat(jnp.repeat(x_nchw, 2, axis=2), 2, axis=3)
    y = jax.lax.conv_general_dilated(
        x, w_pt, window_strides=(1, 1), padding="SAME",
        dimension_numbers=("NCHW", "OIHW", "NCHW"))
    y = y + b.reshape(1, -1, 1, 1)
    return jnp.where(y > 0, y, 0.01 * y)


if __name__ == "__main__":
    key = jax.random.PRNGKey(0)
    k_x, k_w, k_b = jax.random.split(key, 3)

    N, Cin, Cout, H0, W0 = 2, 4, 4, 16, 16   # output spatial = 32 x 32

    x = jax.random.normal(k_x, (N, Cin, H0, W0), dtype=jnp.float32)
    # deterministic synthetic parameters (not a checkpoint)
    w = 0.1 * jax.random.normal(k_w, (Cout, Cin, 3, 3), dtype=jnp.float32)
    b = 0.1 * jax.random.normal(k_b, (Cout,), dtype=jnp.float32)

    ref = jax.block_until_ready(_reference(x, w, b))

    # Auto row tile: largest block fitting the VMEM budget (whole image here).
    out = jax.block_until_ready(gen_deconv(x, w, b))
    assert out.shape == (N, Cout, 2 * H0, 2 * W0)
    assert jnp.allclose(out, ref, atol=1e-4, rtol=1e-4)

    # Also exercise the multi-row-tile path (grid = (N, 2)).
    out_tiled = jax.block_until_ready(gen_deconv(x, w, b, row_tile=8))
    assert jnp.allclose(out_tiled, ref, atol=1e-4, rtol=1e-4)

    print("KERNEL_OK")
</pallas_src>

<mosaic_0001>
module attributes {stable_mosaic.version = 11 : i64} {
  func.func @_deconv_rowphase_kernel(%arg0: i32, %arg1: i32, %arg2: memref<192xf32, #tpu.memory_space<smem>>, %arg3: memref<4xf32, #tpu.memory_space<smem>>, %arg4: memref<1x4x18x34xf32, #tpu.memory_space<vmem>>, %arg5: memref<1x4x16x64xf32, #tpu.memory_space<vmem>>) attributes {dimension_semantics = [#tpu.dimension_semantics<parallel>, #tpu.dimension_semantics<parallel>], iteration_bounds = array<i64: 2, 1>, scalar_prefetch = 0 : i64, scratch_operands = 0 : i64, tpu.core_type = #tpu.core_type<tc>, window_params = [{transform_indices = @transform_0, window_bounds = array<i64: 192>}, {transform_indices = @transform_1, window_bounds = array<i64: 4>}, {transform_indices = @transform_2, window_bounds = array<i64: 1, 4, 18, 34>}, {transform_indices = @transform_3, window_bounds = array<i64: 1, 4, 16, 64>}]} {
    %c16_i32 = arith.constant 16 : i32
    %0 = arith.muli %arg1, %c16_i32 : i32
    %1 = tpu.assume_multiple %0, 16 : i32
    %c0_i32 = arith.constant 0 : i32
    %2 = arith.addi %1, %c0_i32 : i32
    %c0_i32_0 = arith.constant 0 : i32
    %3 = arith.addi %2, %c0_i32_0 : i32
    %c0 = arith.constant 0 : index
    %c0_1 = arith.constant 0 : index
    %4 = arith.index_cast %3 : i32 to index
    %c0_2 = arith.constant 0 : index
    %5 = vector.load %arg4[%c0, %c0_1, %4, %c0_2] : memref<1x4x18x34xf32, #tpu.memory_space<vmem>>, vector<1x1x16x34xf32>
    %6 = vector.shape_cast %5 : vector<1x1x16x34xf32> to vector<16x34xf32>
    %7 = vector.extract_strided_slice %6 {offsets = [0, 0], sizes = [16, 32], strides = [1, 1]} : vector<16x34xf32> to vector<16x32xf32>
    %8 = vector.extract_strided_slice %6 {offsets = [0, 1], sizes = [16, 32], strides = [1, 1]} : vector<16x34xf32> to vector<16x32xf32>
    %9 = vector.extract_strided_slice %6 {offsets = [0, 2], sizes = [16, 32], strides = [1, 1]} : vector<16x34xf32> to vector<16x32xf32>
    %c0_i32_3 = arith.constant 0 : i32
    %10 = arith.addi %1, %c0_i32_3 : i32
    %c1_i32 = arith.constant 1 : i32
    %11 = arith.addi %10, %c1_i32 : i32
    %c0_4 = arith.constant 0 : index
    %c0_5 = arith.constant 0 : index
    %12 = arith.index_cast %11 : i32 to index
    %c0_6 = arith.constant 0 : index
    %13 = vector.load %arg4[%c0_4, %c0_5, %12, %c0_6] : memref<1x4x18x34xf32, #tpu.memory_space<vmem>>, vector<1x1x16x34xf32>
    %14 = vector.shape_cast %13 : vector<1x1x16x34xf32> to vector<16x34xf32>
    %15 = vector.extract_strided_slice %14 {offsets = [0, 0], sizes = [16, 32], strides = [1, 1]} : vector<16x34xf32> to vector<16x32xf32>
    %16 = vector.extract_strided_slice %14 {offsets = [0, 1], sizes = [16, 32], strides = [1, 1]} : vector<16x34xf32> to vector<16x32xf32>
    %17 = vector.extract_strided_slice %14 {offsets = [0, 2], sizes = [16, 32], strides = [1, 1]} : vector<16x34xf32> to vector<16x32xf32>
    %c0_i32_7 = arith.constant 0 : i32
    %18 = arith.addi %1, %c0_i32_7 : i32
    %c0_i32_8 = arith.constant 0 : i32
    %19 = arith.addi %18, %c0_i32_8 : i32
    %c0_9 = arith.constant 0 : index
    %c1 = arith.constant 1 : index
    %20 = arith.index_cast %19 : i32 to index
    %c0_10 = arith.constant 0 : index
    %21 = vector.load %arg4[%c0_9, %c1, %20, %c0_10] : memref<1x4x18x34xf32, #tpu.memory_space<vmem>>, vector<1x1x16x34xf32>
    %22 = vector.shape_cast %21 : vector<1x1x16x34xf32> to vector<16x34xf32>
    %23 = vector.extract_strided_slice %22 {offsets = [0, 0], sizes = [16, 32], strides = [1, 1]} : vector<16x34xf32> to vector<16x32xf32>
    %24 = vector.extract_strided_slice %22 {offsets = [0, 1], sizes = [16, 32], strides = [1, 1]} : vector<16x34xf32> to vector<16x32xf32>
    %25 = vector.extract_strided_slice %22 {offsets = [0, 2], sizes = [16, 32], strides = [1, 1]} : vector<16x34xf32> to vector<16x32xf32>
    %c0_i32_11 = arith.constant 0 : i32
    %26 = arith.addi %1, %c0_i32_11 : i32
    %c1_i32_12 = arith.constant 1 : i32
    %27 = arith.addi %26, %c1_i32_12 : i32
    %c0_13 = arith.constant 0 : index
    %c1_14 = arith.constant 1 : index
    %28 = arith.index_cast %27 : i32 to index
    %c0_15 = arith.constant 0 : index
    %29 = vector.load %arg4[%c0_13, %c1_14, %28, %c0_15] : memref<1x4x18x34xf32, #tpu.memory_space<vmem>>, vector<1x1x16x34xf32>
    %30 = vector.shape_cast %29 : vector<1x1x16x34xf32> to vector<16x34xf32>
    %31 = vector.extract_strided_slice %30 {offsets = [0, 0], sizes = [16, 32], strides = [1, 1]} : vector<16x34xf32> to vector<16x32xf32>
    %32 = vector.extract_strided_slice %30 {offsets = [0, 1], sizes = [16, 32], strides = [1, 1]} : vector<16x34xf32> to vector<16x32xf32>
    %33 = vector.extract_strided_slice %30 {offsets = [0, 2], sizes = [16, 32], strides = [1, 1]} : vector<16x34xf32> to vector<16x32xf32>
    %c0_i32_16 = arith.constant 0 : i32
    %34 = arith.addi %1, %c0_i32_16 : i32
    %c0_i32_17 = arith.constant 0 : i32
    %35 = arith.addi %34, %c0_i32_17 : i32
    %c0_18 = arith.constant 0 : index
    %c2 = arith.constant 2 : index
    %36 = arith.index_cast %35 : i32 to index
    %c0_19 = arith.constant 0 : index
    %37 = vector.load %arg4[%c0_18, %c2, %36, %c0_19] : memref<1x4x18x34xf32, #tpu.memory_space<vmem>>, vector<1x1x16x34xf32>
    %38 = vector.shape_cast %37 : vector<1x1x16x34xf32> to vector<16x34xf32>
    %39 = vector.extract_strided_slice %38 {offsets = [0, 0], sizes = [16, 32], strides = [1, 1]} : vector<16x34xf32> to vector<16x32xf32>
    %40 = vector.extract_strided_slice %38 {offsets = [0, 1], sizes = [16, 32], strides = [1, 1]} : vector<16x34xf32> to vector<16x32xf32>
    %41 = vector.extract_strided_slice %38 {offsets = [0, 2], sizes = [16, 32], strides = [1, 1]} : vector<16x34xf32> to vector<16x32xf32>
    %c0_i32_20 = arith.constant 0 : i32
    %42 = arith.addi %1, %c0_i32_20 : i32
    %c1_i32_21 = arith.constant 1 : i32
    %43 = arith.addi %42, %c1_i32_21 : i32
    %c0_22 = arith.constant 0 : index
    %c2_23 = arith.constant 2 : index
    %44 = arith.index_cast %43 : i32 to index
    %c0_24 = arith.constant 0 : index
    %45 = vector.load %arg4[%c0_22, %c2_23, %44, %c0_24] : memref<1x4x18x34xf32, #tpu.memory_space<vmem>>, vector<1x1x16x34xf32>
    %46 = vector.shape_cast %45 : vector<1x1x16x34xf32> to vector<16x34xf32>
    %47 = vector.extract_strided_slice %46 {offsets = [0, 0], sizes = [16, 32], strides = [1, 1]} : vector<16x34xf32> to vector<16x32xf32>
    %48 = vector.extract_strided_slice %46 {offsets = [0, 1], sizes = [16, 32], strides = [1, 1]} : vector<16x34xf32> to vector<16x32xf32>
    %49 = vector.extract_strided_slice %46 {offsets = [0, 2], sizes = [16, 32], strides = [1, 1]} : vector<16x34xf32> to vector<16x32xf32>
    %c0_i32_25 = arith.constant 0 : i32
    %50 = arith.addi %1, %c0_i32_25 : i32
    %c0_i32_26 = arith.constant 0 : i32
    %51 = arith.addi %50, %c0_i32_26 : i32
    %c0_27 = arith.constant 0 : index
    %c3 = arith.constant 3 : index
    %52 = arith.index_cast %51 : i32 to index
    %c0_28 = arith.constant 0 : index
    %53 = vector.load %arg4[%c0_27, %c3, %52, %c0_28] : memref<1x4x18x34xf32, #tpu.memory_space<vmem>>, vector<1x1x16x34xf32>
    %54 = vector.shape_cast %53 : vector<1x1x16x34xf32> to vector<16x34xf32>
    %55 = vector.extract_strided_slice %54 {offsets = [0, 0], sizes = [16, 32], strides = [1, 1]} : vector<16x34xf32> to vector<16x32xf32>
    %56 = vector.extract_strided_slice %54 {offsets = [0, 1], sizes = [16, 32], strides = [1, 1]} : vector<16x34xf32> to vector<16x32xf32>
    %57 = vector.extract_strided_slice %54 {offsets = [0, 2], sizes = [16, 32], strides = [1, 1]} : vector<16x34xf32> to vector<16x32xf32>
    %c0_i32_29 = arith.constant 0 : i32
    %58 = arith.addi %1, %c0_i32_29 : i32
    %c1_i32_30 = arith.constant 1 : i32
    %59 = arith.addi %58, %c1_i32_30 : i32
    %c0_31 = arith.constant 0 : index
    %c3_32 = arith.constant 3 : index
    %60 = arith.index_cast %59 : i32 to index
    %c0_33 = arith.constant 0 : index
    %61 = vector.load %arg4[%c0_31, %c3_32, %60, %c0_33] : memref<1x4x18x34xf32, #tpu.memory_space<vmem>>, vector<1x1x16x34xf32>
    %62 = vector.shape_cast %61 : vector<1x1x16x34xf32> to vector<16x34xf32>
    %63 = vector.extract_strided_slice %62 {offsets = [0, 0], sizes = [16, 32], strides = [1, 1]} : vector<16x34xf32> to vector<16x32xf32>
    %64 = vector.extract_strided_slice %62 {offsets = [0, 1], sizes = [16, 32], strides = [1, 1]} : vector<16x34xf32> to vector<16x32xf32>
    %65 = vector.extract_strided_slice %62 {offsets = [0, 2], sizes = [16, 32], strides = [1, 1]} : vector<16x34xf32> to vector<16x32xf32>
    %cst = arith.constant 0.000000e+00 : f32
    %66 = vector.broadcast %cst : f32 to vector<16x32xf32>
    %c0_34 = arith.constant 0 : index
    %67 = memref.load %arg2[%c0_34] : memref<192xf32, #tpu.memory_space<smem>>
    %68 = vector.broadcast %67 : f32 to vector<16x32xf32>
    %69 = arith.mulf %68, %7 : vector<16x32xf32>
    %70 = arith.addf %66, %69 : vector<16x32xf32>
    %c16 = arith.constant 16 : index
    %71 = memref.load %arg2[%c16] : memref<192xf32, #tpu.memory_space<smem>>
    %72 = vector.broadcast %71 : f32 to vector<16x32xf32>
    %73 = arith.mulf %72, %8 : vector<16x32xf32>
    %74 = arith.addf %70, %73 : vector<16x32xf32>
    %c32 = arith.constant 32 : index
    %75 = memref.load %arg2[%c32] : memref<192xf32, #tpu.memory_space<smem>>
    %76 = vector.broadcast %75 : f32 to vector<16x32xf32>
    %77 = arith.mulf %76, %9 : vector<16x32xf32>
    %78 = arith.addf %74, %77 : vector<16x32xf32>
    %c48 = arith.constant 48 : index
    %79 = memref.load %arg2[%c48] : memref<192xf32, #tpu.memory_space<smem>>
    %80 = vector.broadcast %79 : f32 to vector<16x32xf32>
    %81 = arith.mulf %80, %15 : vector<16x32xf32>
    %82 = arith.addf %78, %81 : vector<16x32xf32>
    %c64 = arith.constant 64 : index
    %83 = memref.load %arg2[%c64] : memref<192xf32, #tpu.memory_space<smem>>
    %84 = vector.broadcast %83 : f32 to vector<16x32xf32>
    %85 = arith.mulf %84, %16 : vector<16x32xf32>
    %86 = arith.addf %82, %85 : vector<16x32xf32>
    %c80 = arith.constant 80 : index
    %87 = memref.load %arg2[%c80] : memref<192xf32, #tpu.memory_space<smem>>
    %88 = vector.broadcast %87 : f32 to vector<16x32xf32>
    %89 = arith.mulf %88, %17 : vector<16x32xf32>
    %90 = arith.addf %86, %89 : vector<16x32xf32>
    %c1_35 = arith.constant 1 : index
    %91 = memref.load %arg2[%c1_35] : memref<192xf32, #tpu.memory_space<smem>>
    %92 = vector.broadcast %91 : f32 to vector<16x32xf32>
    %93 = arith.mulf %92, %23 : vector<16x32xf32>
    %94 = arith.addf %90, %93 : vector<16x32xf32>
    %c17 = arith.constant 17 : index
    %95 = memref.load %arg2[%c17] : memref<192xf32, #tpu.memory_space<smem>>
    %96 = vector.broadcast %95 : f32 to vector<16x32xf32>
    %97 = arith.mulf %96, %24 : vector<16x32xf32>
    %98 = arith.addf %94, %97 : vector<16x32xf32>
    %c33 = arith.constant 33 : index
    %99 = memref.load %arg2[%c33] : memref<192xf32, #tpu.memory_space<smem>>
    %100 = vector.broadcast %99 : f32 to vector<16x32xf32>
    %101 = arith.mulf %100, %25 : vector<16x32xf32>
    %102 = arith.addf %98, %101 : vector<16x32xf32>
    %c49 = arith.constant 49 : index
    %103 = memref.load %arg2[%c49] : memref<192xf32, #tpu.memory_space<smem>>
    %104 = vector.broadcast %103 : f32 to vector<16x32xf32>
    %105 = arith.mulf %104, %31 : vector<16x32xf32>
    %106 = arith.addf %102, %105 : vector<16x32xf32>
    %c65 = arith.constant 65 : index
    %107 = memref.load %arg2[%c65] : memref<192xf32, #tpu.memory_space<smem>>
    %108 = vector.broadcast %107 : f32 to vector<16x32xf32>
    %109 = arith.mulf %108, %32 : vector<16x32xf32>
    %110 = arith.addf %106, %109 : vector<16x32xf32>
    %c81 = arith.constant 81 : index
    %111 = memref.load %arg2[%c81] : memref<192xf32, #tpu.memory_space<smem>>
    %112 = vector.broadcast %111 : f32 to vector<16x32xf32>
    %113 = arith.mulf %112, %33 : vector<16x32xf32>
    %114 = arith.addf %110, %113 : vector<16x32xf32>
    %c2_36 = arith.constant 2 : index
    %115 = memref.load %arg2[%c2_36] : memref<192xf32, #tpu.memory_space<smem>>
    %116 = vector.broadcast %115 : f32 to vector<16x32xf32>
    %117 = arith.mulf %116, %39 : vector<16x32xf32>
    %118 = arith.addf %114, %117 : vector<16x32xf32>
    %c18 = arith.constant 18 : index
    %119 = memref.load %arg2[%c18] : memref<192xf32, #tpu.memory_space<smem>>
    %120 = vector.broadcast %119 : f32 to vector<16x32xf32>
    %121 = arith.mulf %120, %40 : vector<16x32xf32>
    %122 = arith.addf %118, %121 : vector<16x32xf32>
    %c34 = arith.constant 34 : index
    %123 = memref.load %arg2[%c34] : memref<192xf32, #tpu.memory_space<smem>>
    %124 = vector.broadcast %123 : f32 to vector<16x32xf32>
    %125 = arith.mulf %124, %41 : vector<16x32xf32>
    %126 = arith.addf %122, %125 : vector<16x32xf32>
    %c50 = arith.constant 50 : index
    %127 = memref.load %arg2[%c50] : memref<192xf32, #tpu.memory_space<smem>>
    %128 = vector.broadcast %127 : f32 to vector<16x32xf32>
    %129 = arith.mulf %128, %47 : vector<16x32xf32>
    %130 = arith.addf %126, %129 : vector<16x32xf32>
    %c66 = arith.constant 66 : index
    %131 = memref.load %arg2[%c66] : memref<192xf32, #tpu.memory_space<smem>>
    %132 = vector.broadcast %131 : f32 to vector<16x32xf32>
    %133 = arith.mulf %132, %48 : vector<16x32xf32>
    %134 = arith.addf %130, %133 : vector<16x32xf32>
    %c82 = arith.constant 82 : index
    %135 = memref.load %arg2[%c82] : memref<192xf32, #tpu.memory_space<smem>>
    %136 = vector.broadcast %135 : f32 to vector<16x32xf32>
    %137 = arith.mulf %136, %49 : vector<16x32xf32>
    %138 = arith.addf %134, %137 : vector<16x32xf32>
    %c3_37 = arith.constant 3 : index
    %139 = memref.load %arg2[%c3_37] : memref<192xf32, #tpu.memory_space<smem>>
    %140 = vector.broadcast %139 : f32 to vector<16x32xf32>
    %141 = arith.mulf %140, %55 : vector<16x32xf32>
    %142 = arith.addf %138, %141 : vector<16x32xf32>
    %c19 = arith.constant 19 : index
    %143 = memref.load %arg2[%c19] : memref<192xf32, #tpu.memory_space<smem>>
    %144 = vector.broadcast %143 : f32 to vector<16x32xf32>
    %145 = arith.mulf %144, %56 : vector<16x32xf32>
    %146 = arith.addf %142, %145 : vector<16x32xf32>
    %c35 = arith.constant 35 : index
    %147 = memref.load %arg2[%c35] : memref<192xf32, #tpu.memory_space<smem>>
    %148 = vector.broadcast %147 : f32 to vector<16x32xf32>
    %149 = arith.mulf %148, %57 : vector<16x32xf32>
    %150 = arith.addf %146, %149 : vector<16x32xf32>
    %c51 = arith.constant 51 : index
    %151 = memref.load %arg2[%c51] : memref<192xf32, #tpu.memory_space<smem>>
    %152 = vector.broadcast %151 : f32 to vector<16x32xf32>
    %153 = arith.mulf %152, %63 : vector<16x32xf32>
    %154 = arith.addf %150, %153 : vector<16x32xf32>
    %c67 = arith.constant 67 : index
    %155 = memref.load %arg2[%c67] : memref<192xf32, #tpu.memory_space<smem>>
    %156 = vector.broadcast %155 : f32 to vector<16x32xf32>
    %157 = arith.mulf %156, %64 : vector<16x32xf32>
    %158 = arith.addf %154, %157 : vector<16x32xf32>
    %c83 = arith.constant 83 : index
    %159 = memref.load %arg2[%c83] : memref<192xf32, #tpu.memory_space<smem>>
    %160 = vector.broadcast %159 : f32 to vector<16x32xf32>
    %161 = arith.mulf %160, %65 : vector<16x32xf32>
    %162 = arith.addf %158, %161 : vector<16x32xf32>
    %c0_38 = arith.constant 0 : index
    %163 = memref.load %arg3[%c0_38] : memref<4xf32, #tpu.memory_space<smem>>
    %164 = vector.broadcast %163 : f32 to vector<16x32xf32>
    %165 = arith.addf %162, %164 : vector<16x32xf32>
    %cst_39 = arith.constant 0.000000e+00 : f32
    %166 = vector.broadcast %cst_39 : f32 to vector<16x32xf32>
    %167 = arith.cmpf ogt, %165, %166 : vector<16x32xf32>
    %cst_40 = arith.constant 0.00999999977 : f32
    %168 = vector.broadcast %cst_40 : f32 to vector<16x32xf32>
    %169 = arith.mulf %168, %165 : vector<16x32xf32>
    %170 = arith.select %167, %165, %169 : vector<16x32xi1>, vector<16x32xf32>
    %cst_41 = arith.constant 0.000000e+00 : f32
    %171 = vector.broadcast %cst_41 : f32 to vector<16x32xf32>
    %c4 = arith.constant 4 : index
    %172 = memref.load %arg2[%c4] : memref<192xf32, #tpu.memory_space<smem>>
    %173 = vector.broadcast %172 : f32 to vector<16x32xf32>
    %174 = arith.mulf %173, %7 : vector<16x32xf32>
    %175 = arith.addf %171, %174 : vector<16x32xf32>
    %c20 = arith.constant 20 : index
    %176 = memref.load %arg2[%c20] : memref<192xf32, #tpu.memory_space<smem>>
    %177 = vector.broadcast %176 : f32 to vector<16x32xf32>
    %178 = arith.mulf %177, %8 : vector<16x32xf32>
    %179 = arith.addf %175, %178 : vector<16x32xf32>
    %c36 = arith.constant 36 : index
    %180 = memref.load %arg2[%c36] : memref<192xf32, #tpu.memory_space<smem>>
    %181 = vector.broadcast %180 : f32 to vector<16x32xf32>
    %182 = arith.mulf %181, %9 : vector<16x32xf32>
    %183 = arith.addf %179, %182 : vector<16x32xf32>
    %c52 = arith.constant 52 : index
    %184 = memref.load %arg2[%c52] : memref<192xf32, #tpu.memory_space<smem>>
    %185 = vector.broadcast %184 : f32 to vector<16x32xf32>
    %186 = arith.mulf %185, %15 : vector<16x32xf32>
    %187 = arith.addf %183, %186 : vector<16x32xf32>
    %c68 = arith.constant 68 : index
    %188 = memref.load %arg2[%c68] : memref<192xf32, #tpu.memory_space<smem>>
    %189 = vector.broadcast %188 : f32 to vector<16x32xf32>
    %190 = arith.mulf %189, %16 : vector<16x32xf32>
    %191 = arith.addf %187, %190 : vector<16x32xf32>
    %c84 = arith.constant 84 : index
    %192 = memref.load %arg2[%c84] : memref<192xf32, #tpu.memory_space<smem>>
    %193 = vector.broadcast %192 : f32 to vector<16x32xf32>
    %194 = arith.mulf %193, %17 : vector<16x32xf32>
    %195 = arith.addf %191, %194 : vector<16x32xf32>
    %c5 = arith.constant 5 : index
    %196 = memref.load %arg2[%c5] : memref<192xf32, #tpu.memory_space<smem>>
    %197 = vector.broadcast %196 : f32 to vector<16x32xf32>
    %198 = arith.mulf %197, %23 : vector<16x32xf32>
    %199 = arith.addf %195, %198 : vector<16x32xf32>
    %c21 = arith.constant 21 : index
    %200 = memref.load %arg2[%c21] : memref<192xf32, #tpu.memory_space<smem>>
    %201 = vector.broadcast %200 : f32 to vector<16x32xf32>
    %202 = arith.mulf %201, %24 : vector<16x32xf32>
    %203 = arith.addf %199, %202 : vector<16x32xf32>
    %c37 = arith.constant 37 : index
    %204 = memref.load %arg2[%c37] : memref<192xf32, #tpu.memory_space<smem>>
    %205 = vector.broadcast %204 : f32 to vector<16x32xf32>
    %206 = arith.mulf %205, %25 : vector<16x32xf32>
    %207 = arith.addf %203, %206 : vector<16x32xf32>
    %c53 = arith.constant 53 : index
    %208 = memref.load %arg2[%c53] : memref<192xf32, #tpu.memory_space<smem>>
    %209 = vector.broadcast %208 : f32 to vector<16x32xf32>
    %210 = arith.mulf %209, %31 : vector<16x32xf32>
    %211 = arith.addf %207, %210 : vector<16x32xf32>
    %c69 = arith.constant 69 : index
    %212 = memref.load %arg2[%c69] : memref<192xf32, #tpu.memory_space<smem>>
    %213 = vector.broadcast %212 : f32 to vector<16x32xf32>
    %214 = arith.mulf %213, %32 : vector<16x32xf32>
    %215 = arith.addf %211, %214 : vector<16x32xf32>
    %c85 = arith.constant 85 : index
    %216 = memref.load %arg2[%c85] : memref<192xf32, #tpu.memory_space<smem>>
    %217 = vector.broadcast %216 : f32 to vector<16x32xf32>
    %218 = arith.mulf %217, %33 : vector<16x32xf32>
    %219 = arith.addf %215, %218 : vector<16x32xf32>
    %c6 = arith.constant 6 : index
    %220 = memref.load %arg2[%c6] : memref<192xf32, #tpu.memory_space<smem>>
    %221 = vector.broadcast %220 : f32 to vector<16x32xf32>
    %222 = arith.mulf %221, %39 : vector<16x32xf32>
    %223 = arith.addf %219, %222 : vector<16x32xf32>
    %c22 = arith.constant 22 : index
    %224 = memref.load %arg2[%c22] : memref<192xf32, #tpu.memory_space<smem>>
    %225 = vector.broadcast %224 : f32 to vector<16x32xf32>
    %226 = arith.mulf %225, %40 : vector<16x32xf32>
    %227 = arith.addf %223, %226 : vector<16x32xf32>
    %c38 = arith.constant 38 : index
    %228 = memref.load %arg2[%c38] : memref<192xf32, #tpu.memory_space<smem>>
    %229 = vector.broadcast %228 : f32 to vector<16x32xf32>
    %230 = arith.mulf %229, %41 : vector<16x32xf32>
    %231 = arith.addf %227, %230 : vector<16x32xf32>
    %c54 = arith.constant 54 : index
    %232 = memref.load %arg2[%c54] : memref<192xf32, #tpu.memory_space<smem>>
    %233 = vector.broadcast %232 : f32 to vector<16x32xf32>
    %234 = arith.mulf %233, %47 : vector<16x32xf32>
    %235 = arith.addf %231, %234 : vector<16x32xf32>
    %c70 = arith.constant 70 : index
    %236 = memref.load %arg2[%c70] : memref<192xf32, #tpu.memory_space<smem>>
    %237 = vector.broadcast %236 : f32 to vector<16x32xf32>
    %238 = arith.mulf %237, %48 : vector<16x32xf32>
    %239 = arith.addf %235, %238 : vector<16x32xf32>
    %c86 = arith.constant 86 : index
    %240 = memref.load %arg2[%c86] : memref<192xf32, #tpu.memory_space<smem>>
    %241 = vector.broadcast %240 : f32 to vector<16x32xf32>
    %242 = arith.mulf %241, %49 : vector<16x32xf32>
    %243 = arith.addf %239, %242 : vector<16x32xf32>
    %c7 = arith.constant 7 : index
    %244 = memref.load %arg2[%c7] : memref<192xf32, #tpu.memory_space<smem>>
    %245 = vector.broadcast %244 : f32 to vector<16x32xf32>
    %246 = arith.mulf %245, %55 : vector<16x32xf32>
    %247 = arith.addf %243, %246 : vector<16x32xf32>
    %c23 = arith.constant 23 : index
    %248 = memref.load %arg2[%c23] : memref<192xf32, #tpu.memory_space<smem>>
    %249 = vector.broadcast %248 : f32 to vector<16x32xf32>
    %250 = arith.mulf %249, %56 : vector<16x32xf32>
    %251 = arith.addf %247, %250 : vector<16x32xf32>
    %c39 = arith.constant 39 : index
    %252 = memref.load %arg2[%c39] : memref<192xf32, #tpu.memory_space<smem>>
    %253 = vector.broadcast %252 : f32 to vector<16x32xf32>
    %254 = arith.mulf %253, %57 : vector<16x32xf32>
    %255 = arith.addf %251, %254 : vector<16x32xf32>
    %c55 = arith.constant 55 : index
    %256 = memref.load %arg2[%c55] : memref<192xf32, #tpu.memory_space<smem>>
    %257 = vector.broadcast %256 : f32 to vector<16x32xf32>
    %258 = arith.mulf %257, %63 : vector<16x32xf32>
    %259 = arith.addf %255, %258 : vector<16x32xf32>
    %c71 = arith.constant 71 : index
    %260 = memref.load %arg2[%c71] : memref<192xf32, #tpu.memory_space<smem>>
    %261 = vector.broadcast %260 : f32 to vector<16x32xf32>
    %262 = arith.mulf %261, %64 : vector<16x32xf32>
    %263 = arith.addf %259, %262 : vector<16x32xf32>
    %c87 = arith.constant 87 : index
    %264 = memref.load %arg2[%c87] : memref<192xf32, #tpu.memory_space<smem>>
    %265 = vector.broadcast %264 : f32 to vector<16x32xf32>
    %266 = arith.mulf %265, %65 : vector<16x32xf32>
    %267 = arith.addf %263, %266 : vector<16x32xf32>
    %c1_42 = arith.constant 1 : index
    %268 = memref.load %arg3[%c1_42] : memref<4xf32, #tpu.memory_space<smem>>
    %269 = vector.broadcast %268 : f32 to vector<16x32xf32>
    %270 = arith.addf %267, %269 : vector<16x32xf32>
    %cst_43 = arith.constant 0.000000e+00 : f32
    %271 = vector.broadcast %cst_43 : f32 to vector<16x32xf32>
    %272 = arith.cmpf ogt, %270, %271 : vector<16x32xf32>
    %cst_44 = arith.constant 0.00999999977 : f32
    %273 = vector.broadcast %cst_44 : f32 to vector<16x32xf32>
    %274 = arith.mulf %273, %270 : vector<16x32xf32>
    %275 = arith.select %272, %270, %274 : vector<16x32xi1>, vector<16x32xf32>
    %cst_45 = arith.constant 0.000000e+00 : f32
    %276 = vector.broadcast %cst_45 : f32 to vector<16x32xf32>
    %c8 = arith.constant 8 : index
    %277 = memref.load %arg2[%c8] : memref<192xf32, #tpu.memory_space<smem>>
    %278 = vector.broadcast %277 : f32 to vector<16x32xf32>
    %279 = arith.mulf %278, %7 : vector<16x32xf32>
    %280 = arith.addf %276, %279 : vector<16x32xf32>
    %c24 = arith.constant 24 : index
    %281 = memref.load %arg2[%c24] : memref<192xf32, #tpu.memory_space<smem>>
    %282 = vector.broadcast %281 : f32 to vector<16x32xf32>
    %283 = arith.mulf %282, %8 : vector<16x32xf32>
    %284 = arith.addf %280, %283 : vector<16x32xf32>
    %c40 = arith.constant 40 : index
    %285 = memref.load %arg2[%c40] : memref<192xf32, #tpu.memory_space<smem>>
    %286 = vector.broadcast %285 : f32 to vector<16x32xf32>
    %287 = arith.mulf %286, %9 : vector<16x32xf32>
    %288 = arith.addf %284, %287 : vector<16x32xf32>
    %c56 = arith.constant 56 : index
    %289 = memref.load %arg2[%c56] : memref<192xf32, #tpu.memory_space<smem>>
    %290 = vector.broadcast %289 : f32 to vector<16x32xf32>
    %291 = arith.mulf %290, %15 : vector<16x32xf32>
    %292 = arith.addf %288, %291 : vector<16x32xf32>
    %c72 = arith.constant 72 : index
    %293 = memref.load %arg2[%c72] : memref<192xf32, #tpu.memory_space<smem>>
    %294 = vector.broadcast %293 : f32 to vector<16x32xf32>
    %295 = arith.mulf %294, %16 : vector<16x32xf32>
    %296 = arith.addf %292, %295 : vector<16x32xf32>
    %c88 = arith.constant 88 : index
    %297 = memref.load %arg2[%c88] : memref<192xf32, #tpu.memory_space<smem>>
    %298 = vector.broadcast %297 : f32 to vector<16x32xf32>
    %299 = arith.mulf %298, %17 : vector<16x32xf32>
    %300 = arith.addf %296, %299 : vector<16x32xf32>
    %c9 = arith.constant 9 : index
    %301 = memref.load %arg2[%c9] : memref<192xf32, #tpu.memory_space<smem>>
    %302 = vector.broadcast %301 : f32 to vector<16x32xf32>
    %303 = arith.mulf %302, %23 : vector<16x32xf32>
    %304 = arith.addf %300, %303 : vector<16x32xf32>
    %c25 = arith.constant 25 : index
    %305 = memref.load %arg2[%c25] : memref<192xf32, #tpu.memory_space<smem>>
    %306 = vector.broadcast %305 : f32 to vector<16x32xf32>
    %307 = arith.mulf %306, %24 : vector<16x32xf32>
    %308 = arith.addf %304, %307 : vector<16x32xf32>
    %c41 = arith.constant 41 : index
    %309 = memref.load %arg2[%c41] : memref<192xf32, #tpu.memory_space<smem>>
    %310 = vector.broadcast %309 : f32 to vector<16x32xf32>
    %311 = arith.mulf %310, %25 : vector<16x32xf32>
    %312 = arith.addf %308, %311 : vector<16x32xf32>
    %c57 = arith.constant 57 : index
    %313 = memref.load %arg2[%c57] : memref<192xf32, #tpu.memory_space<smem>>
    %314 = vector.broadcast %313 : f32 to vector<16x32xf32>
    %315 = arith.mulf %314, %31 : vector<16x32xf32>
    %316 = arith.addf %312, %315 : vector<16x32xf32>
    %c73 = arith.constant 73 : index
    %317 = memref.load %arg2[%c73] : memref<192xf32, #tpu.memory_space<smem>>
    %318 = vector.broadcast %317 : f32 to vector<16x32xf32>
    %319 = arith.mulf %318, %32 : vector<16x32xf32>
    %320 = arith.addf %316, %319 : vector<16x32xf32>
    %c89 = arith.constant 89 : index
    %321 = memref.load %arg2[%c89] : memref<192xf32, #tpu.memory_space<smem>>
    %322 = vector.broadcast %321 : f32 to vector<16x32xf32>
    %323 = arith.mulf %322, %33 : vector<16x32xf32>
    %324 = arith.addf %320, %323 : vector<16x32xf32>
    %c10 = arith.constant 10 : index
    %325 = memref.load %arg2[%c10] : memref<192xf32, #tpu.memory_space<smem>>
    %326 = vector.broadcast %325 : f32 to vector<16x32xf32>
    %327 = arith.mulf %326, %39 : vector<16x32xf32>
    %328 = arith.addf %324, %327 : vector<16x32xf32>
    %c26 = arith.constant 26 : index
    %329 = memref.load %arg2[%c26] : memref<192xf32, #tpu.memory_space<smem>>
    %330 = vector.broadcast %329 : f32 to vector<16x32xf32>
    %331 = arith.mulf %330, %40 : vector<16x32xf32>
    %332 = arith.addf %328, %331 : vector<16x32xf32>
    %c42 = arith.constant 42 : index
    %333 = memref.load %arg2[%c42] : memref<192xf32, #tpu.memory_space<smem>>
    %334 = vector.broadcast %333 : f32 to vector<16x32xf32>
    %335 = arith.mulf %334, %41 : vector<16x32xf32>
    %336 = arith.addf %332, %335 : vector<16x32xf32>
    %c58 = arith.constant 58 : index
    %337 = memref.load %arg2[%c58] : memref<192xf32, #tpu.memory_space<smem>>
    %338 = vector.broadcast %337 : f32 to vector<16x32xf32>
    %339 = arith.mulf %338, %47 : vector<16x32xf32>
    %340 = arith.addf %336, %339 : vector<16x32xf32>
    %c74 = arith.constant 74 : index
    %341 = memref.load %arg2[%c74] : memref<192xf32, #tpu.memory_space<smem>>
    %342 = vector.broadcast %341 : f32 to vector<16x32xf32>
    %343 = arith.mulf %342, %48 : vector<16x32xf32>
    %344 = arith.addf %340, %343 : vector<16x32xf32>
    %c90 = arith.constant 90 : index
    %345 = memref.load %arg2[%c90] : memref<192xf32, #tpu.memory_space<smem>>
    %346 = vector.broadcast %345 : f32 to vector<16x32xf32>
    %347 = arith.mulf %346, %49 : vector<16x32xf32>
    %348 = arith.addf %344, %347 : vector<16x32xf32>
    %c11 = arith.constant 11 : index
    %349 = memref.load %arg2[%c11] : memref<192xf32, #tpu.memory_space<smem>>
    %350 = vector.broadcast %349 : f32 to vector<16x32xf32>
    %351 = arith.mulf %350, %55 : vector<16x32xf32>
    %352 = arith.addf %348, %351 : vector<16x32xf32>
    %c27 = arith.constant 27 : index
    %353 = memref.load %arg2[%c27] : memref<192xf32, #tpu.memory_space<smem>>
    %354 = vector.broadcast %353 : f32 to vector<16x32xf32>
    %355 = arith.mulf %354, %56 : vector<16x32xf32>
    %356 = arith.addf %352, %355 : vector<16x32xf32>
    %c43 = arith.constant 43 : index
    %357 = memref.load %arg2[%c43] : memref<192xf32, #tpu.memory_space<smem>>
    %358 = vector.broadcast %357 : f32 to vector<16x32xf32>
    %359 = arith.mulf %358, %57 : vector<16x32xf32>
    %360 = arith.addf %356, %359 : vector<16x32xf32>
    %c59 = arith.constant 59 : index
    %361 = memref.load %arg2[%c59] : memref<192xf32, #tpu.memory_space<smem>>
    %362 = vector.broadcast %361 : f32 to vector<16x32xf32>
    %363 = arith.mulf %362, %63 : vector<16x32xf32>
    %364 = arith.addf %360, %363 : vector<16x32xf32>
    %c75 = arith.constant 75 : index
    %365 = memref.load %arg2[%c75] : memref<192xf32, #tpu.memory_space<smem>>
    %366 = vector.broadcast %365 : f32 to vector<16x32xf32>
    %367 = arith.mulf %366, %64 : vector<16x32xf32>
    %368 = arith.addf %364, %367 : vector<16x32xf32>
    %c91 = arith.constant 91 : index
    %369 = memref.load %arg2[%c91] : memref<192xf32, #tpu.memory_space<smem>>
    %370 = vector.broadcast %369 : f32 to vector<16x32xf32>
    %371 = arith.mulf %370, %65 : vector<16x32xf32>
    %372 = arith.addf %368, %371 : vector<16x32xf32>
    %c2_46 = arith.constant 2 : index
    %373 = memref.load %arg3[%c2_46] : memref<4xf32, #tpu.memory_space<smem>>
    %374 = vector.broadcast %373 : f32 to vector<16x32xf32>
    %375 = arith.addf %372, %374 : vector<16x32xf32>
    %cst_47 = arith.constant 0.000000e+00 : f32
    %376 = vector.broadcast %cst_47 : f32 to vector<16x32xf32>
    %377 = arith.cmpf ogt, %375, %376 : vector<16x32xf32>
    %cst_48 = arith.constant 0.00999999977 : f32
    %378 = vector.broadcast %cst_48 : f32 to vector<16x32xf32>
    %379 = arith.mulf %378, %375 : vector<16x32xf32>
    %380 = arith.select %377, %375, %379 : vector<16x32xi1>, vector<16x32xf32>
    %cst_49 = arith.constant 0.000000e+00 : f32
    %381 = vector.broadcast %cst_49 : f32 to vector<16x32xf32>
    %c12 = arith.constant 12 : index
    %382 = memref.load %arg2[%c12] : memref<192xf32, #tpu.memory_space<smem>>
    %383 = vector.broadcast %382 : f32 to vector<16x32xf32>
    %384 = arith.mulf %383, %7 : vector<16x32xf32>
    %385 = arith.addf %381, %384 : vector<16x32xf32>
    %c28 = arith.constant 28 : index
    %386 = memref.load %arg2[%c28] : memref<192xf32, #tpu.memory_space<smem>>
    %387 = vector.broadcast %386 : f32 to vector<16x32xf32>
    %388 = arith.mulf %387, %8 : vector<16x32xf32>
    %389 = arith.addf %385, %388 : vector<16x32xf32>
    %c44 = arith.constant 44 : index
    %390 = memref.load %arg2[%c44] : memref<192xf32, #tpu.memory_space<smem>>
    %391 = vector.broadcast %390 : f32 to vector<16x32xf32>
    %392 = arith.mulf %391, %9 : vector<16x32xf32>
    %393 = arith.addf %389, %392 : vector<16x32xf32>
    %c60 = arith.constant 60 : index
    %394 = memref.load %arg2[%c60] : memref<192xf32, #tpu.memory_space<smem>>
    %395 = vector.broadcast %394 : f32 to vector<16x32xf32>
    %396 = arith.mulf %395, %15 : vector<16x32xf32>
    %397 = arith.addf %393, %396 : vector<16x32xf32>
    %c76 = arith.constant 76 : index
    %398 = memref.load %arg2[%c76] : memref<192xf32, #tpu.memory_space<smem>>
    %399 = vector.broadcast %398 : f32 to vector<16x32xf32>
    %400 = arith.mulf %399, %16 : vector<16x32xf32>
    %401 = arith.addf %397, %400 : vector<16x32xf32>
    %c92 = arith.constant 92 : index
    %402 = memref.load %arg2[%c92] : memref<192xf32, #tpu.memory_space<smem>>
    %403 = vector.broadcast %402 : f32 to vector<16x32xf32>
    %404 = arith.mulf %403, %17 : vector<16x32xf32>
    %405 = arith.addf %401, %404 : vector<16x32xf32>
    %c13 = arith.constant 13 : index
    %406 = memref.load %arg2[%c13] : memref<192xf32, #tpu.memory_space<smem>>
    %407 = vector.broadcast %406 : f32 to vector<16x32xf32>
    %408 = arith.mulf %407, %23 : vector<16x32xf32>
    %409 = arith.addf %405, %408 : vector<16x32xf32>
    %c29 = arith.constant 29 : index
    %410 = memref.load %arg2[%c29] : memref<192xf32, #tpu.memory_space<smem>>
    %411 = vector.broadcast %410 : f32 to vector<16x32xf32>
    %412 = arith.mulf %411, %24 : vector<16x32xf32>
    %413 = arith.addf %409, %412 : vector<16x32xf32>
    %c45 = arith.constant 45 : index
    %414 = memref.load %arg2[%c45] : memref<192xf32, #tpu.memory_space<smem>>
    %415 = vector.broadcast %414 : f32 to vector<16x32xf32>
    %416 = arith.mulf %415, %25 : vector<16x32xf32>
    %417 = arith.addf %413, %416 : vector<16x32xf32>
    %c61 = arith.constant 61 : index
    %418 = memref.load %arg2[%c61] : memref<192xf32, #tpu.memory_space<smem>>
    %419 = vector.broadcast %418 : f32 to vector<16x32xf32>
    %420 = arith.mulf %419, %31 : vector<16x32xf32>
    %421 = arith.addf %417, %420 : vector<16x32xf32>
    %c77 = arith.constant 77 : index
    %422 = memref.load %arg2[%c77] : memref<192xf32, #tpu.memory_space<smem>>
    %423 = vector.broadcast %422 : f32 to vector<16x32xf32>
    %424 = arith.mulf %423, %32 : vector<16x32xf32>
    %425 = arith.addf %421, %424 : vector<16x32xf32>
    %c93 = arith.constant 93 : index
    %426 = memref.load %arg2[%c93] : memref<192xf32, #tpu.memory_space<smem>>
    %427 = vector.broadcast %426 : f32 to vector<16x32xf32>
    %428 = arith.mulf %427, %33 : vector<16x32xf32>
    %429 = arith.addf %425, %428 : vector<16x32xf32>
    %c14 = arith.constant 14 : index
    %430 = memref.load %arg2[%c14] : memref<192xf32, #tpu.memory_space<smem>>
    %431 = vector.broadcast %430 : f32 to vector<16x32xf32>
    %432 = arith.mulf %431, %39 : vector<16x32xf32>
    %433 = arith.addf %429, %432 : vector<16x32xf32>
    %c30 = arith.constant 30 : index
    %434 = memref.load %arg2[%c30] : memref<192xf32, #tpu.memory_space<smem>>
    %435 = vector.broadcast %434 : f32 to vector<16x32xf32>
    %436 = arith.mulf %435, %40 : vector<16x32xf32>
    %437 = arith.addf %433, %436 : vector<16x32xf32>
    %c46 = arith.constant 46 : index
    %438 = memref.load %arg2[%c46] : memref<192xf32, #tpu.memory_space<smem>>
    %439 = vector.broadcast %438 : f32 to vector<16x32xf32>
    %440 = arith.mulf %439, %41 : vector<16x32xf32>
    %441 = arith.addf %437, %440 : vector<16x32xf32>
    %c62 = arith.constant 62 : index
    %442 = memref.load %arg2[%c62] : memref<192xf32, #tpu.memory_space<smem>>
    %443 = vector.broadcast %442 : f32 to vector<16x32xf32>
    %444 = arith.mulf %443, %47 : vector<16x32xf32>
    %445 = arith.addf %441, %444 : vector<16x32xf32>
    %c78 = arith.constant 78 : index
    %446 = memref.load %arg2[%c78] : memref<192xf32, #tpu.memory_space<smem>>
    %447 = vector.broadcast %446 : f32 to vector<16x32xf32>
    %448 = arith.mulf %447, %48 : vector<16x32xf32>
    %449 = arith.addf %445, %448 : vector<16x32xf32>
    %c94 = arith.constant 94 : index
    %450 = memref.load %arg2[%c94] : memref<192xf32, #tpu.memory_space<smem>>
    %451 = vector.broadcast %450 : f32 to vector<16x32xf32>
    %452 = arith.mulf %451, %49 : vector<16x32xf32>
    %453 = arith.addf %449, %452 : vector<16x32xf32>
    %c15 = arith.constant 15 : index
    %454 = memref.load %arg2[%c15] : memref<192xf32, #tpu.memory_space<smem>>
    %455 = vector.broadcast %454 : f32 to vector<16x32xf32>
    %456 = arith.mulf %455, %55 : vector<16x32xf32>
    %457 = arith.addf %453, %456 : vector<16x32xf32>
    %c31 = arith.constant 31 : index
    %458 = memref.load %arg2[%c31] : memref<192xf32, #tpu.memory_space<smem>>
    %459 = vector.broadcast %458 : f32 to vector<16x32xf32>
    %460 = arith.mulf %459, %56 : vector<16x32xf32>
    %461 = arith.addf %457, %460 : vector<16x32xf32>
    %c47 = arith.constant 47 : index
    %462 = memref.load %arg2[%c47] : memref<192xf32, #tpu.memory_space<smem>>
    %463 = vector.broadcast %462 : f32 to vector<16x32xf32>
    %464 = arith.mulf %463, %57 : vector<16x32xf32>
    %465 = arith.addf %461, %464 : vector<16x32xf32>
    %c63 = arith.constant 63 : index
    %466 = memref.load %arg2[%c63] : memref<192xf32, #tpu.memory_space<smem>>
    %467 = vector.broadcast %466 : f32 to vector<16x32xf32>
    %468 = arith.mulf %467, %63 : vector<16x32xf32>
    %469 = arith.addf %465, %468 : vector<16x32xf32>
    %c79 = arith.constant 79 : index
    %470 = memref.load %arg2[%c79] : memref<192xf32, #tpu.memory_space<smem>>
    %471 = vector.broadcast %470 : f32 to vector<16x32xf32>
    %472 = arith.mulf %471, %64 : vector<16x32xf32>
    %473 = arith.addf %469, %472 : vector<16x32xf32>
    %c95 = arith.constant 95 : index
    %474 = memref.load %arg2[%c95] : memref<192xf32, #tpu.memory_space<smem>>
    %475 = vector.broadcast %474 : f32 to vector<16x32xf32>
    %476 = arith.mulf %475, %65 : vector<16x32xf32>
    %477 = arith.addf %473, %476 : vector<16x32xf32>
    %c3_50 = arith.constant 3 : index
    %478 = memref.load %arg3[%c3_50] : memref<4xf32, #tpu.memory_space<smem>>
    %479 = vector.broadcast %478 : f32 to vector<16x32xf32>
    %480 = arith.addf %477, %479 : vector<16x32xf32>
    %cst_51 = arith.constant 0.000000e+00 : f32
    %481 = vector.broadcast %cst_51 : f32 to vector<16x32xf32>
    %482 = arith.cmpf ogt, %480, %481 : vector<16x32xf32>
    %cst_52 = arith.constant 0.00999999977 : f32
    %483 = vector.broadcast %cst_52 : f32 to vector<16x32xf32>
    %484 = arith.mulf %483, %480 : vector<16x32xf32>
    %485 = arith.select %482, %480, %484 : vector<16x32xi1>, vector<16x32xf32>
    %c1_i32_53 = arith.constant 1 : i32
    %486 = arith.addi %1, %c1_i32_53 : i32
    %c0_i32_54 = arith.constant 0 : i32
    %487 = arith.addi %486, %c0_i32_54 : i32
    %c0_55 = arith.constant 0 : index
    %c0_56 = arith.constant 0 : index
    %488 = arith.index_cast %487 : i32 to index
    %c0_57 = arith.constant 0 : index
    %489 = vector.load %arg4[%c0_55, %c0_56, %488, %c0_57] : memref<1x4x18x34xf32, #tpu.memory_space<vmem>>, vector<1x1x16x34xf32>
    %490 = vector.shape_cast %489 : vector<1x1x16x34xf32> to vector<16x34xf32>
    %491 = vector.extract_strided_slice %490 {offsets = [0, 0], sizes = [16, 32], strides = [1, 1]} : vector<16x34xf32> to vector<16x32xf32>
    %492 = vector.extract_strided_slice %490 {offsets = [0, 1], sizes = [16, 32], strides = [1, 1]} : vector<16x34xf32> to vector<16x32xf32>
    %493 = vector.extract_strided_slice %490 {offsets = [0, 2], sizes = [16, 32], strides = [1, 1]} : vector<16x34xf32> to vector<16x32xf32>
    %c1_i32_58 = arith.constant 1 : i32
    %494 = arith.addi %1, %c1_i32_58 : i32
    %c1_i32_59 = arith.constant 1 : i32
    %495 = arith.addi %494, %c1_i32_59 : i32
    %c0_60 = arith.constant 0 : index
    %c0_61 = arith.constant 0 : index
    %496 = arith.index_cast %495 : i32 to index
    %c0_62 = arith.constant 0 : index
    %497 = vector.load %arg4[%c0_60, %c0_61, %496, %c0_62] : memref<1x4x18x34xf32, #tpu.memory_space<vmem>>, vector<1x1x16x34xf32>
    %498 = vector.shape_cast %497 : vector<1x1x16x34xf32> to vector<16x34xf32>
    %499 = vector.extract_strided_slice %498 {offsets = [0, 0], sizes = [16, 32], strides = [1, 1]} : vector<16x34xf32> to vector<16x32xf32>
    %500 = vector.extract_strided_slice %498 {offsets = [0, 1], sizes = [16, 32], strides = [1, 1]} : vector<16x34xf32> to vector<16x32xf32>
    %501 = vector.extract_strided_slice %498 {offsets = [0, 2], sizes = [16, 32], strides = [1, 1]} : vector<16x34xf32> to vector<16x32xf32>
    %c1_i32_63 = arith.constant 1 : i32
    %502 = arith.addi %1, %c1_i32_63 : i32
    %c0_i32_64 = arith.constant 0 : i32
    %503 = arith.addi %502, %c0_i32_64 : i32
    %c0_65 = arith.constant 0 : index
    %c1_66 = arith.constant 1 : index
    %504 = arith.index_cast %503 : i32 to index
    %c0_67 = arith.constant 0 : index
    %505 = vector.load %arg4[%c0_65, %c1_66, %504, %c0_67] : memref<1x4x18x34xf32, #tpu.memory_space<vmem>>, vector<1x1x16x34xf32>
    %506 = vector.shape_cast %505 : vector<1x1x16x34xf32> to vector<16x34xf32>
    %507 = vector.extract_strided_slice %506 {offsets = [0, 0], sizes = [16, 32], strides = [1, 1]} : vector<16x34xf32> to vector<16x32xf32>
    %508 = vector.extract_strided_slice %506 {offsets = [0, 1], sizes = [16, 32], strides = [1, 1]} : vector<16x34xf32> to vector<16x32xf32>
    %509 = vector.extract_strided_slice %506 {offsets = [0, 2], sizes = [16, 32], strides = [1, 1]} : vector<16x34xf32> to vector<16x32xf32>
    %c1_i32_68 = arith.constant 1 : i32
    %510 = arith.addi %1, %c1_i32_68 : i32
    %c1_i32_69 = arith.constant 1 : i32
    %511 = arith.addi %510, %c1_i32_69 : i32
    %c0_70 = arith.constant 0 : index
    %c1_71 = arith.constant 1 : index
    %512 = arith.index_cast %511 : i32 to index
    %c0_72 = arith.constant 0 : index
    %513 = vector.load %arg4[%c0_70, %c1_71, %512, %c0_72] : memref<1x4x18x34xf32, #tpu.memory_space<vmem>>, vector<1x1x16x34xf32>
    %514 = vector.shape_cast %513 : vector<1x1x16x34xf32> to vector<16x34xf32>
    %515 = vector.extract_strided_slice %514 {offsets = [0, 0], sizes = [16, 32], strides = [1, 1]} : vector<16x34xf32> to vector<16x32xf32>
    %516 = vector.extract_strided_slice %514 {offsets = [0, 1], sizes = [16, 32], strides = [1, 1]} : vector<16x34xf32> to vector<16x32xf32>
    %517 = vector.extract_strided_slice %514 {offsets = [0, 2], sizes = [16, 32], strides = [1, 1]} : vector<16x34xf32> to vector<16x32xf32>
    %c1_i32_73 = arith.constant 1 : i32
    %518 = arith.addi %1, %c1_i32_73 : i32
    %c0_i32_74 = arith.constant 0 : i32
    %519 = arith.addi %518, %c0_i32_74 : i32
    %c0_75 = arith.constant 0 : index
    %c2_76 = arith.constant 2 : index
    %520 = arith.index_cast %519 : i32 to index
    %c0_77 = arith.constant 0 : index
    %521 = vector.load %arg4[%c0_75, %c2_76, %520, %c0_77] : memref<1x4x18x34xf32, #tpu.memory_space<vmem>>, vector<1x1x16x34xf32>
    %522 = vector.shape_cast %521 : vector<1x1x16x34xf32> to vector<16x34xf32>
    %523 = vector.extract_strided_slice %522 {offsets = [0, 0], sizes = [16, 32], strides = [1, 1]} : vector<16x34xf32> to vector<16x32xf32>
    %524 = vector.extract_strided_slice %522 {offsets = [0, 1], sizes = [16, 32], strides = [1, 1]} : vector<16x34xf32> to vector<16x32xf32>
    %525 = vector.extract_strided_slice %522 {offsets = [0, 2], sizes = [16, 32], strides = [1, 1]} : vector<16x34xf32> to vector<16x32xf32>
    %c1_i32_78 = arith.constant 1 : i32
    %526 = arith.addi %1, %c1_i32_78 : i32
    %c1_i32_79 = arith.constant 1 : i32
    %527 = arith.addi %526, %c1_i32_79 : i32
    %c0_80 = arith.constant 0 : index
    %c2_81 = arith.constant 2 : index
    %528 = arith.index_cast %527 : i32 to index
    %c0_82 = arith.constant 0 : index
    %529 = vector.load %arg4[%c0_80, %c2_81, %528, %c0_82] : memref<1x4x18x34xf32, #tpu.memory_space<vmem>>, vector<1x1x16x34xf32>
    %530 = vector.shape_cast %529 : vector<1x1x16x34xf32> to vector<16x34xf32>
    %531 = vector.extract_strided_slice %530 {offsets = [0, 0], sizes = [16, 32], strides = [1, 1]} : vector<16x34xf32> to vector<16x32xf32>
    %532 = vector.extract_strided_slice %530 {offsets = [0, 1], sizes = [16, 32], strides = [1, 1]} : vector<16x34xf32> to vector<16x32xf32>
    %533 = vector.extract_strided_slice %530 {offsets = [0, 2], sizes = [16, 32], strides = [1, 1]} : vector<16x34xf32> to vector<16x32xf32>
    %c1_i32_83 = arith.constant 1 : i32
    %534 = arith.addi %1, %c1_i32_83 : i32
    %c0_i32_84 = arith.constant 0 : i32
    %535 = arith.addi %534, %c0_i32_84 : i32
    %c0_85 = arith.constant 0 : index
    %c3_86 = arith.constant 3 : index
    %536 = arith.index_cast %535 : i32 to index
    %c0_87 = arith.constant 0 : index
    %537 = vector.load %arg4[%c0_85, %c3_86, %536, %c0_87] : memref<1x4x18x34xf32, #tpu.memory_space<vmem>>, vector<1x1x16x34xf32>
    %538 = vector.shape_cast %537 : vector<1x1x16x34xf32> to vector<16x34xf32>
    %539 = vector.extract_strided_slice %538 {offsets = [0, 0], sizes = [16, 32], strides = [1, 1]} : vector<16x34xf32> to vector<16x32xf32>
    %540 = vector.extract_strided_slice %538 {offsets = [0, 1], sizes = [16, 32], strides = [1, 1]} : vector<16x34xf32> to vector<16x32xf32>
    %541 = vector.extract_strided_slice %538 {offsets = [0, 2], sizes = [16, 32], strides = [1, 1]} : vector<16x34xf32> to vector<16x32xf32>
    %c1_i32_88 = arith.constant 1 : i32
    %542 = arith.addi %1, %c1_i32_88 : i32
    %c1_i32_89 = arith.constant 1 : i32
    %543 = arith.addi %542, %c1_i32_89 : i32
    %c0_90 = arith.constant 0 : index
    %c3_91 = arith.constant 3 : index
    %544 = arith.index_cast %543 : i32 to index
    %c0_92 = arith.constant 0 : index
    %545 = vector.load %arg4[%c0_90, %c3_91, %544, %c0_92] : memref<1x4x18x34xf32, #tpu.memory_space<vmem>>, vector<1x1x16x34xf32>
    %546 = vector.shape_cast %545 : vector<1x1x16x34xf32> to vector<16x34xf32>
    %547 = vector.extract_strided_slice %546 {offsets = [0, 0], sizes = [16, 32], strides = [1, 1]} : vector<16x34xf32> to vector<16x32xf32>
    %548 = vector.extract_strided_slice %546 {offsets = [0, 1], sizes = [16, 32], strides = [1, 1]} : vector<16x34xf32> to vector<16x32xf32>
    %549 = vector.extract_strided_slice %546 {offsets = [0, 2], sizes = [16, 32], strides = [1, 1]} : vector<16x34xf32> to vector<16x32xf32>
    %cst_93 = arith.constant 0.000000e+00 : f32
    %550 = vector.broadcast %cst_93 : f32 to vector<16x32xf32>
    %c96 = arith.constant 96 : index
    %551 = memref.load %arg2[%c96] : memref<192xf32, #tpu.memory_space<smem>>
    %552 = vector.broadcast %551 : f32 to vector<16x32xf32>
    %553 = arith.mulf %552, %491 : vector<16x32xf32>
    %554 = arith.addf %550, %553 : vector<16x32xf32>
    %c112 = arith.constant 112 : index
    %555 = memref.load %arg2[%c112] : memref<192xf32, #tpu.memory_space<smem>>
    %556 = vector.broadcast %555 : f32 to vector<16x32xf32>
    %557 = arith.mulf %556, %492 : vector<16x32xf32>
    %558 = arith.addf %554, %557 : vector<16x32xf32>
    %c128 = arith.constant 128 : index
    %559 = memref.load %arg2[%c128] : memref<192xf32, #tpu.memory_space<smem>>
    %560 = vector.broadcast %559 : f32 to vector<16x32xf32>
    %561 = arith.mulf %560, %493 : vector<16x32xf32>
    %562 = arith.addf %558, %561 : vector<16x32xf32>
    %c144 = arith.constant 144 : index
    %563 = memref.load %arg2[%c144] : memref<192xf32, #tpu.memory_space<smem>>
    %564 = vector.broadcast %563 : f32 to vector<16x32xf32>
    %565 = arith.mulf %564, %499 : vector<16x32xf32>
    %566 = arith.addf %562, %565 : vector<16x32xf32>
    %c160 = arith.constant 160 : index
    %567 = memref.load %arg2[%c160] : memref<192xf32, #tpu.memory_space<smem>>
    %568 = vector.broadcast %567 : f32 to vector<16x32xf32>
    %569 = arith.mulf %568, %500 : vector<16x32xf32>
    %570 = arith.addf %566, %569 : vector<16x32xf32>
    %c176 = arith.constant 176 : index
    %571 = memref.load %arg2[%c176] : memref<192xf32, #tpu.memory_space<smem>>
    %572 = vector.broadcast %571 : f32 to vector<16x32xf32>
    %573 = arith.mulf %572, %501 : vector<16x32xf32>
    %574 = arith.addf %570, %573 : vector<16x32xf32>
    %c97 = arith.constant 97 : index
    %575 = memref.load %arg2[%c97] : memref<192xf32, #tpu.memory_space<smem>>
    %576 = vector.broadcast %575 : f32 to vector<16x32xf32>
    %577 = arith.mulf %576, %507 : vector<16x32xf32>
    %578 = arith.addf %574, %577 : vector<16x32xf32>
    %c113 = arith.constant 113 : index
    %579 = memref.load %arg2[%c113] : memref<192xf32, #tpu.memory_space<smem>>
    %580 = vector.broadcast %579 : f32 to vector<16x32xf32>
    %581 = arith.mulf %580, %508 : vector<16x32xf32>
    %582 = arith.addf %578, %581 : vector<16x32xf32>
    %c129 = arith.constant 129 : index
    %583 = memref.load %arg2[%c129] : memref<192xf32, #tpu.memory_space<smem>>
    %584 = vector.broadcast %583 : f32 to vector<16x32xf32>
    %585 = arith.mulf %584, %509 : vector<16x32xf32>
    %586 = arith.addf %582, %585 : vector<16x32xf32>
    %c145 = arith.constant 145 : index
    %587 = memref.load %arg2[%c145] : memref<192xf32, #tpu.memory_space<smem>>
    %588 = vector.broadcast %587 : f32 to vector<16x32xf32>
    %589 = arith.mulf %588, %515 : vector<16x32xf32>
    %590 = arith.addf %586, %589 : vector<16x32xf32>
    %c161 = arith.constant 161 : index
    %591 = memref.load %arg2[%c161] : memref<192xf32, #tpu.memory_space<smem>>
    %592 = vector.broadcast %591 : f32 to vector<16x32xf32>
    %593 = arith.mulf %592, %516 : vector<16x32xf32>
    %594 = arith.addf %590, %593 : vector<16x32xf32>
    %c177 = arith.constant 177 : index
    %595 = memref.load %arg2[%c177] : memref<192xf32, #tpu.memory_space<smem>>
    %596 = vector.broadcast %595 : f32 to vector<16x32xf32>
    %597 = arith.mulf %596, %517 : vector<16x32xf32>
    %598 = arith.addf %594, %597 : vector<16x32xf32>
    %c98 = arith.constant 98 : index
    %599 = memref.load %arg2[%c98] : memref<192xf32, #tpu.memory_space<smem>>
    %600 = vector.broadcast %599 : f32 to vector<16x32xf32>
    %601 = arith.mulf %600, %523 : vector<16x32xf32>
    %602 = arith.addf %598, %601 : vector<16x32xf32>
    %c114 = arith.constant 114 : index
    %603 = memref.load %arg2[%c114] : memref<192xf32, #tpu.memory_space<smem>>
    %604 = vector.broadcast %603 : f32 to vector<16x32xf32>
    %605 = arith.mulf %604, %524 : vector<16x32xf32>
    %606 = arith.addf %602, %605 : vector<16x32xf32>
    %c130 = arith.constant 130 : index
    %607 = memref.load %arg2[%c130] : memref<192xf32, #tpu.memory_space<smem>>
    %608 = vector.broadcast %607 : f32 to vector<16x32xf32>
    %609 = arith.mulf %608, %525 : vector<16x32xf32>
    %610 = arith.addf %606, %609 : vector<16x32xf32>
    %c146 = arith.constant 146 : index
    %611 = memref.load %arg2[%c146] : memref<192xf32, #tpu.memory_space<smem>>
    %612 = vector.broadcast %611 : f32 to vector<16x32xf32>
    %613 = arith.mulf %612, %531 : vector<16x32xf32>
    %614 = arith.addf %610, %613 : vector<16x32xf32>
    %c162 = arith.constant 162 : index
    %615 = memref.load %arg2[%c162] : memref<192xf32, #tpu.memory_space<smem>>
    %616 = vector.broadcast %615 : f32 to vector<16x32xf32>
    %617 = arith.mulf %616, %532 : vector<16x32xf32>
    %618 = arith.addf %614, %617 : vector<16x32xf32>
    %c178 = arith.constant 178 : index
    %619 = memref.load %arg2[%c178] : memref<192xf32, #tpu.memory_space<smem>>
    %620 = vector.broadcast %619 : f32 to vector<16x32xf32>
    %621 = arith.mulf %620, %533 : vector<16x32xf32>
    %622 = arith.addf %618, %621 : vector<16x32xf32>
    %c99 = arith.constant 99 : index
    %623 = memref.load %arg2[%c99] : memref<192xf32, #tpu.memory_space<smem>>
    %624 = vector.broadcast %623 : f32 to vector<16x32xf32>
    %625 = arith.mulf %624, %539 : vector<16x32xf32>
    %626 = arith.addf %622, %625 : vector<16x32xf32>
    %c115 = arith.constant 115 : index
    %627 = memref.load %arg2[%c115] : memref<192xf32, #tpu.memory_space<smem>>
    %628 = vector.broadcast %627 : f32 to vector<16x32xf32>
    %629 = arith.mulf %628, %540 : vector<16x32xf32>
    %630 = arith.addf %626, %629 : vector<16x32xf32>
    %c131 = arith.constant 131 : index
    %631 = memref.load %arg2[%c131] : memref<192xf32, #tpu.memory_space<smem>>
    %632 = vector.broadcast %631 : f32 to vector<16x32xf32>
    %633 = arith.mulf %632, %541 : vector<16x32xf32>
    %634 = arith.addf %630, %633 : vector<16x32xf32>
    %c147 = arith.constant 147 : index
    %635 = memref.load %arg2[%c147] : memref<192xf32, #tpu.memory_space<smem>>
    %636 = vector.broadcast %635 : f32 to vector<16x32xf32>
    %637 = arith.mulf %636, %547 : vector<16x32xf32>
    %638 = arith.addf %634, %637 : vector<16x32xf32>
    %c163 = arith.constant 163 : index
    %639 = memref.load %arg2[%c163] : memref<192xf32, #tpu.memory_space<smem>>
    %640 = vector.broadcast %639 : f32 to vector<16x32xf32>
    %641 = arith.mulf %640, %548 : vector<16x32xf32>
    %642 = arith.addf %638, %641 : vector<16x32xf32>
    %c179 = arith.constant 179 : index
    %643 = memref.load %arg2[%c179] : memref<192xf32, #tpu.memory_space<smem>>
    %644 = vector.broadcast %643 : f32 to vector<16x32xf32>
    %645 = arith.mulf %644, %549 : vector<16x32xf32>
    %646 = arith.addf %642, %645 : vector<16x32xf32>
    %c0_94 = arith.constant 0 : index
    %647 = memref.load %arg3[%c0_94] : memref<4xf32, #tpu.memory_space<smem>>
    %648 = vector.broadcast %647 : f32 to vector<16x32xf32>
    %649 = arith.addf %646, %648 : vector<16x32xf32>
    %cst_95 = arith.constant 0.000000e+00 : f32
    %650 = vector.broadcast %cst_95 : f32 to vector<16x32xf32>
    %651 = arith.cmpf ogt, %649, %650 : vector<16x32xf32>
    %cst_96 = arith.constant 0.00999999977 : f32
    %652 = vector.broadcast %cst_96 : f32 to vector<16x32xf32>
    %653 = arith.mulf %652, %649 : vector<16x32xf32>
    %654 = arith.select %651, %649, %653 : vector<16x32xi1>, vector<16x32xf32>
    %cst_97 = arith.constant 0.000000e+00 : f32
    %655 = vector.broadcast %cst_97 : f32 to vector<16x32xf32>
    %c100 = arith.constant 100 : index
    %656 = memref.load %arg2[%c100] : memref<192xf32, #tpu.memory_space<smem>>
    %657 = vector.broadcast %656 : f32 to vector<16x32xf32>
    %658 = arith.mulf %657, %491 : vector<16x32xf32>
    %659 = arith.addf %655, %658 : vector<16x32xf32>
    %c116 = arith.constant 116 : index
    %660 = memref.load %arg2[%c116] : memref<192xf32, #tpu.memory_space<smem>>
    %661 = vector.broadcast %660 : f32 to vector<16x32xf32>
    %662 = arith.mulf %661, %492 : vector<16x32xf32>
    %663 = arith.addf %659, %662 : vector<16x32xf32>
    %c132 = arith.constant 132 : index
    %664 = memref.load %arg2[%c132] : memref<192xf32, #tpu.memory_space<smem>>
    %665 = vector.broadcast %664 : f32 to vector<16x32xf32>
    %666 = arith.mulf %665, %493 : vector<16x32xf32>
    %667 = arith.addf %663, %666 : vector<16x32xf32>
    %c148 = arith.constant 148 : index
    %668 = memref.load %arg2[%c148] : memref<192xf32, #tpu.memory_space<smem>>
    %669 = vector.broadcast %668 : f32 to vector<16x32xf32>
    %670 = arith.mulf %669, %499 : vector<16x32xf32>
    %671 = arith.addf %667, %670 : vector<16x32xf32>
    %c164 = arith.constant 164 : index
    %672 = memref.load %arg2[%c164] : memref<192xf32, #tpu.memory_space<smem>>
    %673 = vector.broadcast %672 : f32 to vector<16x32xf32>
    %674 = arith.mulf %673, %500 : vector<16x32xf32>
    %675 = arith.addf %671, %674 : vector<16x32xf32>
    %c180 = arith.constant 180 : index
    %676 = memref.load %arg2[%c180] : memref<192xf32, #tpu.memory_space<smem>>
    %677 = vector.broadcast %676 : f32 to vector<16x32xf32>
    %678 = arith.mulf %677, %501 : vector<16x32xf32>
    %679 = arith.addf %675, %678 : vector<16x32xf32>
    %c101 = arith.constant 101 : index
    %680 = memref.load %arg2[%c101] : memref<192xf32, #tpu.memory_space<smem>>
    %681 = vector.broadcast %680 : f32 to vector<16x32xf32>
    %682 = arith.mulf %681, %507 : vector<16x32xf32>
    %683 = arith.addf %679, %682 : vector<16x32xf32>
    %c117 = arith.constant 117 : index
    %684 = memref.load %arg2[%c117] : memref<192xf32, #tpu.memory_space<smem>>
    %685 = vector.broadcast %684 : f32 to vector<16x32xf32>
    %686 = arith.mulf %685, %508 : vector<16x32xf32>
    %687 = arith.addf %683, %686 : vector<16x32xf32>
    %c133 = arith.constant 133 : index
    %688 = memref.load %arg2[%c133] : memref<192xf32, #tpu.memory_space<smem>>
    %689 = vector.broadcast %688 : f32 to vector<16x32xf32>
    %690 = arith.mulf %689, %509 : vector<16x32xf32>
    %691 = arith.addf %687, %690 : vector<16x32xf32>
    %c149 = arith.constant 149 : index
    %692 = memref.load %arg2[%c149] : memref<192xf32, #tpu.memory_space<smem>>
    %693 = vector.broadcast %692 : f32 to vector<16x32xf32>
    %694 = arith.mulf %693, %515 : vector<16x32xf32>
    %695 = arith.addf %691, %694 : vector<16x32xf32>
    %c165 = arith.constant 165 : index
    %696 = memref.load %arg2[%c165] : memref<192xf32, #tpu.memory_space<smem>>
    %697 = vector.broadcast %696 : f32 to vector<16x32xf32>
    %698 = arith.mulf %697, %516 : vector<16x32xf32>
    %699 = arith.addf %695, %698 : vector<16x32xf32>
    %c181 = arith.constant 181 : index
    %700 = memref.load %arg2[%c181] : memref<192xf32, #tpu.memory_space<smem>>
    %701 = vector.broadcast %700 : f32 to vector<16x32xf32>
    %702 = arith.mulf %701, %517 : vector<16x32xf32>
    %703 = arith.addf %699, %702 : vector<16x32xf32>
    %c102 = arith.constant 102 : index
    %704 = memref.load %arg2[%c102] : memref<192xf32, #tpu.memory_space<smem>>
    %705 = vector.broadcast %704 : f32 to vector<16x32xf32>
    %706 = arith.mulf %705, %523 : vector<16x32xf32>
    %707 = arith.addf %703, %706 : vector<16x32xf32>
    %c118 = arith.constant 118 : index
    %708 = memref.load %arg2[%c118] : memref<192xf32, #tpu.memory_space<smem>>
    %709 = vector.broadcast %708 : f32 to vector<16x32xf32>
    %710 = arith.mulf %709, %524 : vector<16x32xf32>
    %711 = arith.addf %707, %710 : vector<16x32xf32>
    %c134 = arith.constant 134 : index
    %712 = memref.load %arg2[%c134] : memref<192xf32, #tpu.memory_space<smem>>
    %713 = vector.broadcast %712 : f32 to vector<16x32xf32>
    %714 = arith.mulf %713, %525 : vector<16x32xf32>
    %715 = arith.addf %711, %714 : vector<16x32xf32>
    %c150 = arith.constant 150 : index
    %716 = memref.load %arg2[%c150] : memref<192xf32, #tpu.memory_space<smem>>
    %717 = vector.broadcast %716 : f32 to vector<16x32xf32>
    %718 = arith.mulf %717, %531 : vector<16x32xf32>
    %719 = arith.addf %715, %718 : vector<16x32xf32>
    %c166 = arith.constant 166 : index
    %720 = memref.load %arg2[%c166] : memref<192xf32, #tpu.memory_space<smem>>
    %721 = vector.broadcast %720 : f32 to vector<16x32xf32>
    %722 = arith.mulf %721, %532 : vector<16x32xf32>
    %723 = arith.addf %719, %722 : vector<16x32xf32>
    %c182 = arith.constant 182 : index
    %724 = memref.load %arg2[%c182] : memref<192xf32, #tpu.memory_space<smem>>
    %725 = vector.broadcast %724 : f32 to vector<16x32xf32>
    %726 = arith.mulf %725, %533 : vector<16x32xf32>
    %727 = arith.addf %723, %726 : vector<16x32xf32>
    %c103 = arith.constant 103 : index
    %728 = memref.load %arg2[%c103] : memref<192xf32, #tpu.memory_space<smem>>
    %729 = vector.broadcast %728 : f32 to vector<16x32xf32>
    %730 = arith.mulf %729, %539 : vector<16x32xf32>
    %731 = arith.addf %727, %730 : vector<16x32xf32>
    %c119 = arith.constant 119 : index
    %732 = memref.load %arg2[%c119] : memref<192xf32, #tpu.memory_space<smem>>
    %733 = vector.broadcast %732 : f32 to vector<16x32xf32>
    %734 = arith.mulf %733, %540 : vector<16x32xf32>
    %735 = arith.addf %731, %734 : vector<16x32xf32>
    %c135 = arith.constant 135 : index
    %736 = memref.load %arg2[%c135] : memref<192xf32, #tpu.memory_space<smem>>
    %737 = vector.broadcast %736 : f32 to vector<16x32xf32>
    %738 = arith.mulf %737, %541 : vector<16x32xf32>
    %739 = arith.addf %735, %738 : vector<16x32xf32>
    %c151 = arith.constant 151 : index
    %740 = memref.load %arg2[%c151] : memref<192xf32, #tpu.memory_space<smem>>
    %741 = vector.broadcast %740 : f32 to vector<16x32xf32>
    %742 = arith.mulf %741, %547 : vector<16x32xf32>
    %743 = arith.addf %739, %742 : vector<16x32xf32>
    %c167 = arith.constant 167 : index
    %744 = memref.load %arg2[%c167] : memref<192xf32, #tpu.memory_space<smem>>
    %745 = vector.broadcast %744 : f32 to vector<16x32xf32>
    %746 = arith.mulf %745, %548 : vector<16x32xf32>
    %747 = arith.addf %743, %746 : vector<16x32xf32>
    %c183 = arith.constant 183 : index
    %748 = memref.load %arg2[%c183] : memref<192xf32, #tpu.memory_space<smem>>
    %749 = vector.broadcast %748 : f32 to vector<16x32xf32>
    %750 = arith.mulf %749, %549 : vector<16x32xf32>
    %751 = arith.addf %747, %750 : vector<16x32xf32>
    %c1_98 = arith.constant 1 : index
    %752 = memref.load %arg3[%c1_98] : memref<4xf32, #tpu.memory_space<smem>>
    %753 = vector.broadcast %752 : f32 to vector<16x32xf32>
    %754 = arith.addf %751, %753 : vector<16x32xf32>
    %cst_99 = arith.constant 0.000000e+00 : f32
    %755 = vector.broadcast %cst_99 : f32 to vector<16x32xf32>
    %756 = arith.cmpf ogt, %754, %755 : vector<16x32xf32>
    %cst_100 = arith.constant 0.00999999977 : f32
    %757 = vector.broadcast %cst_100 : f32 to vector<16x32xf32>
    %758 = arith.mulf %757, %754 : vector<16x32xf32>
    %759 = arith.select %756, %754, %758 : vector<16x32xi1>, vector<16x32xf32>
    %cst_101 = arith.constant 0.000000e+00 : f32
    %760 = vector.broadcast %cst_101 : f32 to vector<16x32xf32>
    %c104 = arith.constant 104 : index
    %761 = memref.load %arg2[%c104] : memref<192xf32, #tpu.memory_space<smem>>
    %762 = vector.broadcast %761 : f32 to vector<16x32xf32>
    %763 = arith.mulf %762, %491 : vector<16x32xf32>
    %764 = arith.addf %760, %763 : vector<16x32xf32>
    %c120 = arith.constant 120 : index
    %765 = memref.load %arg2[%c120] : memref<192xf32, #tpu.memory_space<smem>>
    %766 = vector.broadcast %765 : f32 to vector<16x32xf32>
    %767 = arith.mulf %766, %492 : vector<16x32xf32>
    %768 = arith.addf %764, %767 : vector<16x32xf32>
    %c136 = arith.constant 136 : index
    %769 = memref.load %arg2[%c136] : memref<192xf32, #tpu.memory_space<smem>>
    %770 = vector.broadcast %769 : f32 to vector<16x32xf32>
    %771 = arith.mulf %770, %493 : vector<16x32xf32>
    %772 = arith.addf %768, %771 : vector<16x32xf32>
    %c152 = arith.constant 152 : index
    %773 = memref.load %arg2[%c152] : memref<192xf32, #tpu.memory_space<smem>>
    %774 = vector.broadcast %773 : f32 to vector<16x32xf32>
    %775 = arith.mulf %774, %499 : vector<16x32xf32>
    %776 = arith.addf %772, %775 : vector<16x32xf32>
    %c168 = arith.constant 168 : index
    %777 = memref.load %arg2[%c168] : memref<192xf32, #tpu.memory_space<smem>>
    %778 = vector.broadcast %777 : f32 to vector<16x32xf32>
    %779 = arith.mulf %778, %500 : vector<16x32xf32>
    %780 = arith.addf %776, %779 : vector<16x32xf32>
    %c184 = arith.constant 184 : index
    %781 = memref.load %arg2[%c184] : memref<192xf32, #tpu.memory_space<smem>>
    %782 = vector.broadcast %781 : f32 to vector<16x32xf32>
    %783 = arith.mulf %782, %501 : vector<16x32xf32>
    %784 = arith.addf %780, %783 : vector<16x32xf32>
    %c105 = arith.constant 105 : index
    %785 = memref.load %arg2[%c105] : memref<192xf32, #tpu.memory_space<smem>>
    %786 = vector.broadcast %785 : f32 to vector<16x32xf32>
    %787 = arith.mulf %786, %507 : vector<16x32xf32>
    %788 = arith.addf %784, %787 : vector<16x32xf32>
    %c121 = arith.constant 121 : index
    %789 = memref.load %arg2[%c121] : memref<192xf32, #tpu.memory_space<smem>>
    %790 = vector.broadcast %789 : f32 to vector<16x32xf32>
    %791 = arith.mulf %790, %508 : vector<16x32xf32>
    %792 = arith.addf %788, %791 : vector<16x32xf32>
    %c137 = arith.constant 137 : index
    %793 = memref.load %arg2[%c137] : memref<192xf32, #tpu.memory_space<smem>>
    %794 = vector.broadcast %793 : f32 to vector<16x32xf32>
    %795 = arith.mulf %794, %509 : vector<16x32xf32>
    %796 = arith.addf %792, %795 : vector<16x32xf32>
    %c153 = arith.constant 153 : index
    %797 = memref.load %arg2[%c153] : memref<192xf32, #tpu.memory_space<smem>>
    %798 = vector.broadcast %797 : f32 to vector<16x32xf32>
    %799 = arith.mulf %798, %515 : vector<16x32xf32>
    %800 = arith.addf %796, %799 : vector<16x32xf32>
    %c169 = arith.constant 169 : index
    %801 = memref.load %arg2[%c169] : memref<192xf32, #tpu.memory_space<smem>>
    %802 = vector.broadcast %801 : f32 to vector<16x32xf32>
    %803 = arith.mulf %802, %516 : vector<16x32xf32>
    %804 = arith.addf %800, %803 : vector<16x32xf32>
    %c185 = arith.constant 185 : index
    %805 = memref.load %arg2[%c185] : memref<192xf32, #tpu.memory_space<smem>>
    %806 = vector.broadcast %805 : f32 to vector<16x32xf32>
    %807 = arith.mulf %806, %517 : vector<16x32xf32>
    %808 = arith.addf %804, %807 : vector<16x32xf32>
    %c106 = arith.constant 106 : index
    %809 = memref.load %arg2[%c106] : memref<192xf32, #tpu.memory_space<smem>>
    %810 = vector.broadcast %809 : f32 to vector<16x32xf32>
    %811 = arith.mulf %810, %523 : vector<16x32xf32>
    %812 = arith.addf %808, %811 : vector<16x32xf32>
    %c122 = arith.constant 122 : index
    %813 = memref.load %arg2[%c122] : memref<192xf32, #tpu.memory_space<smem>>
    %814 = vector.broadcast %813 : f32 to vector<16x32xf32>
    %815 = arith.mulf %814, %524 : vector<16x32xf32>
    %816 = arith.addf %812, %815 : vector<16x32xf32>
    %c138 = arith.constant 138 : index
    %817 = memref.load %arg2[%c138] : memref<192xf32, #tpu.memory_space<smem>>
    %818 = vector.broadcast %817 : f32 to vector<16x32xf32>
    %819 = arith.mulf %818, %525 : vector<16x32xf32>
    %820 = arith.addf %816, %819 : vector<16x32xf32>
    %c154 = arith.constant 154 : index
    %821 = memref.load %arg2[%c154] : memref<192xf32, #tpu.memory_space<smem>>
    %822 = vector.broadcast %821 : f32 to vector<16x32xf32>
    %823 = arith.mulf %822, %531 : vector<16x32xf32>
    %824 = arith.addf %820, %823 : vector<16x32xf32>
    %c170 = arith.constant 170 : index
    %825 = memref.load %arg2[%c170] : memref<192xf32, #tpu.memory_space<smem>>
    %826 = vector.broadcast %825 : f32 to vector<16x32xf32>
    %827 = arith.mulf %826, %532 : vector<16x32xf32>
    %828 = arith.addf %824, %827 : vector<16x32xf32>
    %c186 = arith.constant 186 : index
    %829 = memref.load %arg2[%c186] : memref<192xf32, #tpu.memory_space<smem>>
    %830 = vector.broadcast %829 : f32 to vector<16x32xf32>
    %831 = arith.mulf %830, %533 : vector<16x32xf32>
    %832 = arith.addf %828, %831 : vector<16x32xf32>
    %c107 = arith.constant 107 : index
    %833 = memref.load %arg2[%c107] : memref<192xf32, #tpu.memory_space<smem>>
    %834 = vector.broadcast %833 : f32 to vector<16x32xf32>
    %835 = arith.mulf %834, %539 : vector<16x32xf32>
    %836 = arith.addf %832, %835 : vector<16x32xf32>
    %c123 = arith.constant 123 : index
    %837 = memref.load %arg2[%c123] : memref<192xf32, #tpu.memory_space<smem>>
    %838 = vector.broadcast %837 : f32 to vector<16x32xf32>
    %839 = arith.mulf %838, %540 : vector<16x32xf32>
    %840 = arith.addf %836, %839 : vector<16x32xf32>
    %c139 = arith.constant 139 : index
    %841 = memref.load %arg2[%c139] : memref<192xf32, #tpu.memory_space<smem>>
    %842 = vector.broadcast %841 : f32 to vector<16x32xf32>
    %843 = arith.mulf %842, %541 : vector<16x32xf32>
    %844 = arith.addf %840, %843 : vector<16x32xf32>
    %c155 = arith.constant 155 : index
    %845 = memref.load %arg2[%c155] : memref<192xf32, #tpu.memory_space<smem>>
    %846 = vector.broadcast %845 : f32 to vector<16x32xf32>
    %847 = arith.mulf %846, %547 : vector<16x32xf32>
    %848 = arith.addf %844, %847 : vector<16x32xf32>
    %c171 = arith.constant 171 : index
    %849 = memref.load %arg2[%c171] : memref<192xf32, #tpu.memory_space<smem>>
    %850 = vector.broadcast %849 : f32 to vector<16x32xf32>
    %851 = arith.mulf %850, %548 : vector<16x32xf32>
    %852 = arith.addf %848, %851 : vector<16x32xf32>
    %c187 = arith.constant 187 : index
    %853 = memref.load %arg2[%c187] : memref<192xf32, #tpu.memory_space<smem>>
    %854 = vector.broadcast %853 : f32 to vector<16x32xf32>
    %855 = arith.mulf %854, %549 : vector<16x32xf32>
    %856 = arith.addf %852, %855 : vector<16x32xf32>
    %c2_102 = arith.constant 2 : index
    %857 = memref.load %arg3[%c2_102] : memref<4xf32, #tpu.memory_space<smem>>
    %858 = vector.broadcast %857 : f32 to vector<16x32xf32>
    %859 = arith.addf %856, %858 : vector<16x32xf32>
    %cst_103 = arith.constant 0.000000e+00 : f32
    %860 = vector.broadcast %cst_103 : f32 to vector<16x32xf32>
    %861 = arith.cmpf ogt, %859, %860 : vector<16x32xf32>
    %cst_104 = arith.constant 0.00999999977 : f32
    %862 = vector.broadcast %cst_104 : f32 to vector<16x32xf32>
    %863 = arith.mulf %862, %859 : vector<16x32xf32>
    %864 = arith.select %861, %859, %863 : vector<16x32xi1>, vector<16x32xf32>
    %cst_105 = arith.constant 0.000000e+00 : f32
    %865 = vector.broadcast %cst_105 : f32 to vector<16x32xf32>
    %c108 = arith.constant 108 : index
    %866 = memref.load %arg2[%c108] : memref<192xf32, #tpu.memory_space<smem>>
    %867 = vector.broadcast %866 : f32 to vector<16x32xf32>
    %868 = arith.mulf %867, %491 : vector<16x32xf32>
    %869 = arith.addf %865, %868 : vector<16x32xf32>
    %c124 = arith.constant 124 : index
    %870 = memref.load %arg2[%c124] : memref<192xf32, #tpu.memory_space<smem>>
    %871 = vector.broadcast %870 : f32 to vector<16x32xf32>
    %872 = arith.mulf %871, %492 : vector<16x32xf32>
    %873 = arith.addf %869, %872 : vector<16x32xf32>
    %c140 = arith.constant 140 : index
    %874 = memref.load %arg2[%c140] : memref<192xf32, #tpu.memory_space<smem>>
    %875 = vector.broadcast %874 : f32 to vector<16x32xf32>
    %876 = arith.mulf %875, %493 : vector<16x32xf32>
    %877 = arith.addf %873, %876 : vector<16x32xf32>
    %c156 = arith.constant 156 : index
    %878 = memref.load %arg2[%c156] : memref<192xf32, #tpu.memory_space<smem>>
    %879 = vector.broadcast %878 : f32 to vector<16x32xf32>
    %880 = arith.mulf %879, %499 : vector<16x32xf32>
    %881 = arith.addf %877, %880 : vector<16x32xf32>
    %c172 = arith.constant 172 : index
    %882 = memref.load %arg2[%c172] : memref<192xf32, #tpu.memory_space<smem>>
    %883 = vector.broadcast %882 : f32 to vector<16x32xf32>
    %884 = arith.mulf %883, %500 : vector<16x32xf32>
    %885 = arith.addf %881, %884 : vector<16x32xf32>
    %c188 = arith.constant 188 : index
    %886 = memref.load %arg2[%c188] : memref<192xf32, #tpu.memory_space<smem>>
    %887 = vector.broadcast %886 : f32 to vector<16x32xf32>
    %888 = arith.mulf %887, %501 : vector<16x32xf32>
    %889 = arith.addf %885, %888 : vector<16x32xf32>
    %c109 = arith.constant 109 : index
    %890 = memref.load %arg2[%c109] : memref<192xf32, #tpu.memory_space<smem>>
    %891 = vector.broadcast %890 : f32 to vector<16x32xf32>
    %892 = arith.mulf %891, %507 : vector<16x32xf32>
    %893 = arith.addf %889, %892 : vector<16x32xf32>
    %c125 = arith.constant 125 : index
    %894 = memref.load %arg2[%c125] : memref<192xf32, #tpu.memory_space<smem>>
    %895 = vector.broadcast %894 : f32 to vector<16x32xf32>
    %896 = arith.mulf %895, %508 : vector<16x32xf32>
    %897 = arith.addf %893, %896 : vector<16x32xf32>
    %c141 = arith.constant 141 : index
    %898 = memref.load %arg2[%c141] : memref<192xf32, #tpu.memory_space<smem>>
    %899 = vector.broadcast %898 : f32 to vector<16x32xf32>
    %900 = arith.mulf %899, %509 : vector<16x32xf32>
    %901 = arith.addf %897, %900 : vector<16x32xf32>
    %c157 = arith.constant 157 : index
    %902 = memref.load %arg2[%c157] : memref<192xf32, #tpu.memory_space<smem>>
    %903 = vector.broadcast %902 : f32 to vector<16x32xf32>
    %904 = arith.mulf %903, %515 : vector<16x32xf32>
    %905 = arith.addf %901, %904 : vector<16x32xf32>
    %c173 = arith.constant 173 : index
    %906 = memref.load %arg2[%c173] : memref<192xf32, #tpu.memory_space<smem>>
    %907 = vector.broadcast %906 : f32 to vector<16x32xf32>
    %908 = arith.mulf %907, %516 : vector<16x32xf32>
    %909 = arith.addf %905, %908 : vector<16x32xf32>
    %c189 = arith.constant 189 : index
    %910 = memref.load %arg2[%c189] : memref<192xf32, #tpu.memory_space<smem>>
    %911 = vector.broadcast %910 : f32 to vector<16x32xf32>
    %912 = arith.mulf %911, %517 : vector<16x32xf32>
    %913 = arith.addf %909, %912 : vector<16x32xf32>
    %c110 = arith.constant 110 : index
    %914 = memref.load %arg2[%c110] : memref<192xf32, #tpu.memory_space<smem>>
    %915 = vector.broadcast %914 : f32 to vector<16x32xf32>
    %916 = arith.mulf %915, %523 : vector<16x32xf32>
    %917 = arith.addf %913, %916 : vector<16x32xf32>
    %c126 = arith.constant 126 : index
    %918 = memref.load %arg2[%c126] : memref<192xf32, #tpu.memory_space<smem>>
    %919 = vector.broadcast %918 : f32 to vector<16x32xf32>
    %920 = arith.mulf %919, %524 : vector<16x32xf32>
    %921 = arith.addf %917, %920 : vector<16x32xf32>
    %c142 = arith.constant 142 : index
    %922 = memref.load %arg2[%c142] : memref<192xf32, #tpu.memory_space<smem>>
    %923 = vector.broadcast %922 : f32 to vector<16x32xf32>
    %924 = arith.mulf %923, %525 : vector<16x32xf32>
    %925 = arith.addf %921, %924 : vector<16x32xf32>
    %c158 = arith.constant 158 : index
    %926 = memref.load %arg2[%c158] : memref<192xf32, #tpu.memory_space<smem>>
    %927 = vector.broadcast %926 : f32 to vector<16x32xf32>
    %928 = arith.mulf %927, %531 : vector<16x32xf32>
    %929 = arith.addf %925, %928 : vector<16x32xf32>
    %c174 = arith.constant 174 : index
    %930 = memref.load %arg2[%c174] : memref<192xf32, #tpu.memory_space<smem>>
    %931 = vector.broadcast %930 : f32 to vector<16x32xf32>
    %932 = arith.mulf %931, %532 : vector<16x32xf32>
    %933 = arith.addf %929, %932 : vector<16x32xf32>
    %c190 = arith.constant 190 : index
    %934 = memref.load %arg2[%c190] : memref<192xf32, #tpu.memory_space<smem>>
    %935 = vector.broadcast %934 : f32 to vector<16x32xf32>
    %936 = arith.mulf %935, %533 : vector<16x32xf32>
    %937 = arith.addf %933, %936 : vector<16x32xf32>
    %c111 = arith.constant 111 : index
    %938 = memref.load %arg2[%c111] : memref<192xf32, #tpu.memory_space<smem>>
    %939 = vector.broadcast %938 : f32 to vector<16x32xf32>
    %940 = arith.mulf %939, %539 : vector<16x32xf32>
    %941 = arith.addf %937, %940 : vector<16x32xf32>
    %c127 = arith.constant 127 : index
    %942 = memref.load %arg2[%c127] : memref<192xf32, #tpu.memory_space<smem>>
    %943 = vector.broadcast %942 : f32 to vector<16x32xf32>
    %944 = arith.mulf %943, %540 : vector<16x32xf32>
    %945 = arith.addf %941, %944 : vector<16x32xf32>
    %c143 = arith.constant 143 : index
    %946 = memref.load %arg2[%c143] : memref<192xf32, #tpu.memory_space<smem>>
    %947 = vector.broadcast %946 : f32 to vector<16x32xf32>
    %948 = arith.mulf %947, %541 : vector<16x32xf32>
    %949 = arith.addf %945, %948 : vector<16x32xf32>
    %c159 = arith.constant 159 : index
    %950 = memref.load %arg2[%c159] : memref<192xf32, #tpu.memory_space<smem>>
    %951 = vector.broadcast %950 : f32 to vector<16x32xf32>
    %952 = arith.mulf %951, %547 : vector<16x32xf32>
    %953 = arith.addf %949, %952 : vector<16x32xf32>
    %c175 = arith.constant 175 : index
    %954 = memref.load %arg2[%c175] : memref<192xf32, #tpu.memory_space<smem>>
    %955 = vector.broadcast %954 : f32 to vector<16x32xf32>
    %956 = arith.mulf %955, %548 : vector<16x32xf32>
    %957 = arith.addf %953, %956 : vector<16x32xf32>
    %c191 = arith.constant 191 : index
    %958 = memref.load %arg2[%c191] : memref<192xf32, #tpu.memory_space<smem>>
    %959 = vector.broadcast %958 : f32 to vector<16x32xf32>
    %960 = arith.mulf %959, %549 : vector<16x32xf32>
    %961 = arith.addf %957, %960 : vector<16x32xf32>
    %c3_106 = arith.constant 3 : index
    %962 = memref.load %arg3[%c3_106] : memref<4xf32, #tpu.memory_space<smem>>
    %963 = vector.broadcast %962 : f32 to vector<16x32xf32>
    %964 = arith.addf %961, %963 : vector<16x32xf32>
    %cst_107 = arith.constant 0.000000e+00 : f32
    %965 = vector.broadcast %cst_107 : f32 to vector<16x32xf32>
    %966 = arith.cmpf ogt, %964, %965 : vector<16x32xf32>
    %cst_108 = arith.constant 0.00999999977 : f32
    %967 = vector.broadcast %cst_108 : f32 to vector<16x32xf32>
    %968 = arith.mulf %967, %964 : vector<16x32xf32>
    %969 = arith.select %966, %964, %968 : vector<16x32xi1>, vector<16x32xf32>
    %970 = tpu.concatenate %170, %654 in 1 : vector<16x32xf32>, vector<16x32xf32> -> vector<16x64xf32>
    %c0_109 = arith.constant 0 : index
    %c0_110 = arith.constant 0 : index
    %c0_111 = arith.constant 0 : index
    %c0_112 = arith.constant 0 : index
    %971 = vector.load %arg5[%c0_109, %c0_110, %c0_111, %c0_112] : memref<1x4x16x64xf32, #tpu.memory_space<vmem>>, vector<1x1x16x64xf32>
    %972 = vector.shape_cast %971 : vector<1x1x16x64xf32> to vector<16x64xf32>
    %973 = vector.shape_cast %970 : vector<16x64xf32> to vector<1x1x16x64xf32>
    tpu.vector_store %arg5[%c0_109, %c0_110, %c0_111, %c0_112], %973 {strides = array<i32>} : memref<1x4x16x64xf32, #tpu.memory_space<vmem>>, vector<1x1x16x64xf32>,
    %974 = tpu.concatenate %275, %759 in 1 : vector<16x32xf32>, vector<16x32xf32> -> vector<16x64xf32>
    %c0_113 = arith.constant 0 : index
    %c1_114 = arith.constant 1 : index
    %c0_115 = arith.constant 0 : index
    %c0_116 = arith.constant 0 : index
    %975 = vector.load %arg5[%c0_113, %c1_114, %c0_115, %c0_116] : memref<1x4x16x64xf32, #tpu.memory_space<vmem>>, vector<1x1x16x64xf32>
    %976 = vector.shape_cast %975 : vector<1x1x16x64xf32> to vector<16x64xf32>
    %977 = vector.shape_cast %974 : vector<16x64xf32> to vector<1x1x16x64xf32>
    tpu.vector_store %arg5[%c0_113, %c1_114, %c0_115, %c0_116], %977 {strides = array<i32>} : memref<1x4x16x64xf32, #tpu.memory_space<vmem>>, vector<1x1x16x64xf32>,
    %978 = tpu.concatenate %380, %864 in 1 : vector<16x32xf32>, vector<16x32xf32> -> vector<16x64xf32>
    %c0_117 = arith.constant 0 : index
    %c2_118 = arith.constant 2 : index
    %c0_119 = arith.constant 0 : index
    %c0_120 = arith.constant 0 : index
    %979 = vector.load %arg5[%c0_117, %c2_118, %c0_119, %c0_120] : memref<1x4x16x64xf32, #tpu.memory_space<vmem>>, vector<1x1x16x64xf32>
    %980 = vector.shape_cast %979 : vector<1x1x16x64xf32> to vector<16x64xf32>
    %981 = vector.shape_cast %978 : vector<16x64xf32> to vector<1x1x16x64xf32>
    tpu.vector_store %arg5[%c0_117, %c2_118, %c0_119, %c0_120], %981 {strides = array<i32>} : memref<1x4x16x64xf32, #tpu.memory_space<vmem>>, vector<1x1x16x64xf32>,
    %982 = tpu.concatenate %485, %969 in 1 : vector<16x32xf32>, vector<16x32xf32> -> vector<16x64xf32>
    %c0_121 = arith.constant 0 : index
    %c3_122 = arith.constant 3 : index
    %c0_123 = arith.constant 0 : index
    %c0_124 = arith.constant 0 : index
    %983 = vector.load %arg5[%c0_121, %c3_122, %c0_123, %c0_124] : memref<1x4x16x64xf32, #tpu.memory_space<vmem>>, vector<1x1x16x64xf32>
    %984 = vector.shape_cast %983 : vector<1x1x16x64xf32> to vector<16x64xf32>
    %985 = vector.shape_cast %982 : vector<16x64xf32> to vector<1x1x16x64xf32>
    tpu.vector_store %arg5[%c0_121, %c3_122, %c0_123, %c0_124], %985 {strides = array<i32>} : memref<1x4x16x64xf32, #tpu.memory_space<vmem>>, vector<1x1x16x64xf32>,
    return
  }
  func.func @transform_0(%arg0: i32, %arg1: i32) -> i32 {
    %c0_i32 = arith.constant 0 : i32
    %c0_i32_0 = arith.constant 0 : i32
    return %c0_i32 : i32
  }
  func.func @transform_1(%arg0: i32, %arg1: i32) -> i32 {
    %c0_i32 = arith.constant 0 : i32
    %c0_i32_0 = arith.constant 0 : i32
    return %c0_i32 : i32
  }
  func.func @transform_2(%arg0: i32, %arg1: i32) -> (i32, i32, i32, i32) {
    %c0_i32 = arith.constant 0 : i32
    %c0_i32_0 = arith.constant 0 : i32
    %c0_i32_1 = arith.constant 0 : i32
    %c0_i32_2 = arith.constant 0 : i32
    return %arg0, %c0_i32, %c0_i32_0, %c0_i32_1 : i32, i32, i32, i32
  }
  func.func @transform_3(%arg0: i32, %arg1: i32) -> (i32, i32, i32, i32) {
    %c0_i32 = arith.constant 0 : i32
    %c0_i32_0 = arith.constant 0 : i32
    %c0_i32_1 = arith.constant 0 : i32
    return %arg0, %c0_i32, %arg1, %c0_i32_0 : i32, i32, i32, i32
  }
}

</mosaic_0001>

<bundles_post_ra>
// kernel: gen_deconv.1
= control target key start
LH: loop header
LB: loop body
LE: loop exit
PB: predicated region body
PF: predicated region fallthrough
CT: control target
= control target key end

     0   :  { %8 = vsyncpa [#allocation3], 0  ;;  %s4846_s0 = inlined_call_operand.vmem [shape: f32[192], index: 0, kind: input, shape index: {}]   ;;  %s4847_s1 = inlined_call_operand.vmem [shape: f32[4], index: 1, kind: input, shape index: {}]   ;;  %s4848_s2 = inlined_call_operand.vmem [shape: f32[2,4,18,34], index: 2, kind: input, shape index: {}]   ;;  %s4849_s3 = inlined_call_operand.vmem [shape: f32[2,4,16,64], index: 3, kind: output, shape index: {}]  }
   0x1   :  { %9 = vsyncpa [#allocation5], 0  ;;  %s3113_s12 = smov 0   ;;  %s3115_s13 = smov 0  }
   0x2   :  { %s3117_s14 = smov 0  }
   0x3 LB: > { %s2708_s15 = sadd.s32 4294967295, %s3086_s14   ;;  %s27_s16 = sadd.s32 1, %s3082_s13  ;;  %s3086_s14 = sphi %s3117_s14, %s15_s14   ;;  %s3082_s13 = sphi %s3115_s13, %s5165_s13   ;;  %s3078_s12 = sphi %s3113_s12, %s5164_s12  }
   0x4   : > { %p29_p0 = scmp.ge.s32.totalorder %s27_s16, 2  ;;  %p2710_p1 = scmp.ge.s32.totalorder %s3086_s14, 1 }
   0x5   : > { %p128_p2 = scmp.lt.s32.totalorder %s3086_s14, 3  ;;  %p3138_p4 = scmp.eq.s32.totalorder %s2708_s15, 0 }
   0x6   : > { %s5167_s16 = smov (%p29_p0, %s27_s16), 0  ;;  %s141_s21 = sshll.u32 %s4846_s0, 4  ;;  %s142_s21 = int_to_ptr.vmem [resolvable:$true] %s141_s21 }
   0x7   : > { %p3134_p3 = pnand %p2710_p1, %p128_p2  ;;  %s152_s24 = sshll.u32 %s4847_s1, 4  ;;  %s153_s24 = int_to_ptr.vmem [resolvable:$true] %s152_s24 }
   0x8   : > { %s4880_s18 = scalar_select %p3138_p4, 1, 0 }
   0x9   : > { %s4879_s17 = scalar_select %p3134_p3, 1, 0 }
   0xa   : > { %p2954_p5 = pneg %p3134_p3  ;;  %s3026_s26 = scalar_lea.vmem %s142_s21, 32 }
   0xb   : > { %p3027_p7 = scmp.ne.s32.totalorder %s142_s21, %s3026_s26  ;;  %p3034_p11 = scmp.lt.s32.totalorder %s142_s21, %s142_s21 }
   0xc   : > { %p3152_p6 = pnand %p3138_p4, %p2954_p5  ;;  %p3035_p12 = scmp.lt.s32.totalorder %s3026_s26, %s3026_s26 }
   0xe   : > { %p3028_p8 = pneg %p3152_p6  ;;  %p3036_p13 = por %p3035_p12, %p3034_p11 }
  0x10   : > { %p3029_p9 = pnand %p3028_p8, %p3027_p7 }
  0x12   : > { %p3030_p10 = pneg %p3029_p9 }
  0x14   : > { %p3037_p0 = pnand %p3036_p13, %p3030_p10 }
  0x16   : > { %3040 = shalt.err (!%p3037_p0)
}
  0x17   : > { %s3088_s27 = smov [#allocation2]   ;;  %s3041_s28 = scalar_lea.vmem %s153_s24, 16 }
  0x18   : > { %2957 = dma.vmem_to_smem (!%p3152_p6), %s142_s21, 32, %s3088_s27, [#allocation3]  }
  0x19   : > { %p3042_p1 = scmp.ne.s32.totalorder %s153_s24, %s3041_s28  ;;  %p3049_p4 = scmp.lt.s32.totalorder %s153_s24, %s153_s24 }
  0x1a   : > { %p3050_p3 = scmp.lt.s32.totalorder %s3041_s28, %s3041_s28 }
  0x1b   : > { %p3044_p2 = pnand %p3042_p1, %p3028_p8 }
  0x1c   : > { %p3051_p7 = por %p3050_p3, %p3049_p4 }
  0x1d   : > { %p3045_p5 = pneg %p3044_p2 }
  0x1f   : > { %p3052_p9 = pnand %p3051_p7, %p3045_p5 }
  0x21   : > { %3055 = shalt.err (!%p3052_p9)
}
  0x22   : > { %s3089_s29 = smov [#allocation4]   ;;  %p4882_p10 = scmp.ne.s32.totalorder %s4879_s17, 0 }
  0x23   : > { %2960 = dma.vmem_to_smem (!%p3152_p6), %s153_s24, 16, %s3089_s29, [#allocation5]  }
  0x24   : > { %173 = sbr.rel (%p4882_p10) target bundleno = 807 (0x327), region = 32 }
  0x2b   : > { %p4883_p11 = scmp.ne.s32.totalorder %s4880_s18, 0 }
  0x2d   : > { %3069 = dma.done.wait (%p4883_p11), [#allocation3], 32  }
  0x2e   : > { %3071 = vsyncadd (%p4883_p11), [#allocation3], 4294967264 }
  0x2f   : > { %3073 = dma.done.wait (%p4883_p11), [#allocation5], 16  }
  0x30   : > { %3075 = vsyncadd (%p4883_p11), [#allocation5], 4294967280 }
  0x31   : > { %183 = sfence }
  0x32   : > { %p206_p3 = scmp.lt.s32.totalorder %s3078_s12, 1  ;;  %s2735_s30 = sld [smem:[#allocation2 + $0x20]]  ;;  %vm2525_vm7 = vcmask 261120   ;;  %vm2528_vm8 = vcmask 523264  }
  0x33   : > { %s2734_s4 = sld [smem:[#allocation2 + $0x10]]  ;;  %s3090_s11 = smov 126  }
  0x34   : > { %s5169_s12 = smov (!%p206_p3, %s3078_s12), 1  ;;  %s2737_s5 = sld [smem:[#allocation2 + $0x40]] }
  0x35   : > { %s2945_s6 = smul.u32 96, %s5169_s12  ;;  %s2738_s10 = sld [smem:[#allocation2 + $0x50]] }
  0x36   : > { %s3091_s15 = smov 127   ;;  %s2740_s17 = sld [smem:[#allocation2 + $0x11]] }
  0x37   : > { %s3180_s9 = scalar_lea.vmem %s4848_s2, %s2945_s6  ;;  %s2741_s18 = sld [smem:[#allocation2 + $0x21]] }
  0x38   : > { %v274_v0 = vstv %s2735_s30  ;;  %v3183_v1 = vld [vmem:[%s3180_s9] sm:$0xff]  ;;  %v3186_v2 = vld [vmem:[%s3180_s9 + $0x8] sm:$0xff]  ;;  %v3212_v18 = vld [vmem:[%s3180_s9 + $0x18] sm:$0xff]  ;;  %s2743_s19 = sld [smem:[#allocation2 + $0x41]]  ;;  %s2746_s21 = sld [smem:[#allocation2 + $0x12]] }
  0x39   : > { %v260_v3 = vstv %s2734_s4  ;;  %v275_v4 = vmul.f32 %v274_v0, %v3183_v1  ;;  %v276_v6 = vmul.f32 %v274_v0, %v3186_v2  ;;  %v3195_v8 = vld [vmem:[%s3180_s9 + $0x9] sm:$0xff]  ;;  %v3198_v10 = vld [vmem:[%s3180_s9 + $0x1] sm:$0xff]  ;;  %s2744_s20 = sld [smem:[#allocation2 + $0x51]]  ;;  %v3226_v26 = vld [vmem:[%s3180_s9 + $0x19] sm:$0xff]  ;;  %s2747_s22 = sld [smem:[#allocation2 + $0x22]] }
  0x3a   : > { %v261_v5 = vmul.f32 %v260_v3, %v3183_v1  ;;  %v262_v7 = vmul.f32 %v260_v3, %v3186_v2  ;;  %v294_v9 = vstv %s2737_s5  ;;  %v3209_v16 = vld [vmem:[%s3180_s9 + $0x20] sm:$0xff]  ;;  %v3237_v32 = vld [vmem:[%s3180_s9 + $0x38] sm:$0xff]  ;;  %v3240_v34 = vld [vmem:[%s3180_s9 + $0x30] sm:$0xff]  ;;  %s2749_s23 = sld [smem:[#allocation2 + $0x42]]  ;;  %s2752_s25 = sld [smem:[#allocation2 + $0x13]] }
  0x3b   : > { %279 = vrot.lane.b32.xlu1 %v275_v4, %s3090_s11  ;;  %v296_v11 = vmul.f32 %v3195_v8, %v294_v9  ;;  %v295_v12 = vmul.f32 %v3198_v10, %v294_v9  ;;  %v308_v13 = vstv %s2738_s10  ;;  %v3223_v24 = vld [vmem:[%s3180_s9 + $0x21] sm:$0xff]  ;;  %s2750_s24 = sld [smem:[#allocation2 + $0x52]]  ;;  %v3251_v40 = vld [vmem:[%s3180_s9 + $0x39] sm:$0xff]  ;;  %s2753_s26 = sld [smem:[#allocation2 + $0x23]] }
  0x3c   : > { %265 = vrot.lane.b32.xlu0 %v261_v5, %s3091_s15  ;;  %v310_v14 = vmul.f32 %v3195_v8, %v308_v13  ;;  %v309_v15 = vmul.f32 %v3198_v10, %v308_v13  ;;  %v328_v17 = vstv %s2740_s17  ;;  %v3254_v42 = vld [vmem:[%s3180_s9 + $0x31] sm:$0xff]  ;;  %v3268_v50 = vld [vmem:[%s3180_s9 + $0x48] sm:$0xff]  ;;  %s2755_s27 = sld [smem:[#allocation2 + $0x43]]  ;;  %s2758_s29 = sld [smem:[#allocation2 + $0x14]] }
  0x3d   : > { %v330_v19 = vmul.f32 %v3209_v16, %v328_v17  ;;  %v329_v20 = vmul.f32 %v3212_v18, %v328_v17  ;;  %v342_v21 = vstv %s2741_s18  ;;  %v3265_v48 = vld [vmem:[%s3180_s9 + $0x50] sm:$0xff]  ;;  %s2756_s28 = sld [smem:[#allocation2 + $0x53]]  ;;  %s2759_s30 = sld [smem:[#allocation2 + $0x24]] }
  0x3e   : > { %v344_v22 = vmul.f32 %v3209_v16, %v342_v21  ;;  %v343_v23 = vmul.f32 %v3212_v18, %v342_v21  ;;  %v362_v25 = vstv %s2743_s19  ;;  %v396_v33 = vstv %s2746_s21  ;;  %v3279_v56 = vld [vmem:[%s3180_s9 + $0x51] sm:$0xff]  ;;  %v3282_v58 = vld [vmem:[%s3180_s9 + $0x49] sm:$0xff]  ;;  %s2761_s4 = sld [smem:[#allocation2 + $0x44]]  ;;  %s2764_s6 = sld [smem:[#allocation2 + $0x15]] }
  0x3f   : > { %281 = vrot.lane.b32.xlu1 %v276_v6, %s3090_s11  ;;  %v364_v27 = vmul.f32 %v3223_v24, %v362_v25  ;;  %v363_v28 = vmul.f32 %v3226_v26, %v362_v25  ;;  %v376_v29 = vstv %s2744_s20  ;;  %v398_v35 = vmul.f32 %v3237_v32, %v396_v33  ;;  %s2762_s5 = sld [smem:[#allocation2 + $0x54]]  ;;  %s2765_s7 = sld [smem:[#allocation2 + $0x25]] }
  0x40   : > { %267 = vrot.lane.b32.xlu0 %v262_v7, %s3091_s15  ;;  %v378_v30 = vmul.f32 %v3223_v24, %v376_v29  ;;  %v377_v31 = vmul.f32 %v3226_v26, %v376_v29  ;;  %v397_v36 = vmul.f32 %v3240_v34, %v396_v33  ;;  %v410_v37 = vstv %s2747_s22  ;;  %s2767_s8 = sld [smem:[#allocation2 + $0x45]]  ;;  %s2770_s17 = sld [smem:[#allocation2 + $0x16]] }
  0x41   : > { %v412_v38 = vmul.f32 %v3237_v32, %v410_v37  ;;  %v411_v39 = vmul.f32 %v3240_v34, %v410_v37  ;;  %v430_v41 = vstv %s2749_s23  ;;  %v444_v45 = vstv %s2750_s24  ;;  %s2768_s10 = sld [smem:[#allocation2 + $0x55]]  ;;  %s2771_s18 = sld [smem:[#allocation2 + $0x26]] }
  0x42   : > { %v432_v43 = vmul.f32 %v3251_v40, %v430_v41  ;;  %v431_v44 = vmul.f32 %v3254_v42, %v430_v41  ;;  %v446_v46 = vmul.f32 %v3251_v40, %v444_v45  ;;  %v445_v47 = vmul.f32 %v3254_v42, %v444_v45  ;;  %s2773_s19 = sld [smem:[#allocation2 + $0x46]]  ;;  %s2776_s21 = sld [smem:[#allocation2 + $0x17]] }
  0x43   : > { %301 = vrot.lane.b32.xlu1 %v296_v11, %s3091_s15  ;;  %v464_v49 = vstv %s2752_s25  ;;  %v478_v53 = vstv %s2753_s26  ;;  %v498_v57 = vstv %s2755_s27  ;;  %s2774_s20 = sld [smem:[#allocation2 + $0x56]]  ;;  %s2777_s22 = sld [smem:[#allocation2 + $0x27]] }
  0x44   : > { %299 = vrot.lane.b32.xlu0 %v295_v12, %s3091_s15  ;;  %v466_v51 = vmul.f32 %v3265_v48, %v464_v49  ;;  %v465_v52 = vmul.f32 %v3268_v50, %v464_v49  ;;  %v480_v54 = vmul.f32 %v3265_v48, %v478_v53  ;;  %v479_v55 = vmul.f32 %v3268_v50, %v478_v53  ;;  %s2779_s23 = sld [smem:[#allocation2 + $0x47]]  ;;  %s2783_s25 = sld [smem:[#allocation2 + $0x18]] }
  0x45   : > { %v500_v59 = vmul.f32 %v3279_v56, %v498_v57  ;;  %v499_v60 = vmul.f32 %v3282_v58, %v498_v57  ;;  %v512_v61 = vstv %s2756_s28  ;;  %v542_v0 = vstv %s2758_s29  ;;  %s2780_s24 = sld [smem:[#allocation2 + $0x57]]  ;;  %s2784_s26 = sld [smem:[#allocation2 + $0x28]] }
  0x46   : > { %v514_v62 = vmul.f32 %v3279_v56, %v512_v61  ;;  %v513_v63 = vmul.f32 %v3282_v58, %v512_v61  ;;  %v544_v3 = vmul.f32 %v542_v0, %v3186_v2  ;;  %v543_v4 = vmul.f32 %v542_v0, %v3183_v1  ;;  %s2786_s27 = sld [smem:[#allocation2 + $0x48]]  ;;  %s2789_s29 = sld [smem:[#allocation2 + $0x19]] }
  0x47   : > { %315 = vrot.lane.b32.xlu1 %v310_v14, %s3090_s11  ;;  %v556_v5 = vstv %s2759_s30  ;;  %v576_v9 = vstv %s2761_s4  ;;  %v590_v13 = vstv %s2762_s5  ;;  %s2787_s28 = sld [smem:[#allocation2 + $0x58]]  ;;  %s2790_s30 = sld [smem:[#allocation2 + $0x29]] }
  0x48   : > { %313 = vrot.lane.b32.xlu0 %v309_v15, %s3090_s11  ;;  %v558_v6 = vmul.f32 %v556_v5, %v3186_v2  ;;  %v557_v7 = vmul.f32 %v556_v5, %v3183_v1  ;;  %v578_v11 = vmul.f32 %v3195_v8, %v576_v9  ;;  %v577_v12 = vmul.f32 %v3198_v10, %v576_v9  ;;  %s2792_s4 = sld [smem:[#allocation2 + $0x49]] }
  0x49   : > { %v592_v14 = vmul.f32 %v3195_v8, %v590_v13  ;;  %v591_v15 = vmul.f32 %v3198_v10, %v590_v13  ;;  %v610_v17 = vstv %s2764_s6  ;;  %v624_v21 = vstv %s2765_s7  ;;  %s2793_s5 = sld [smem:[#allocation2 + $0x59]]  ;;  %s2795_s6 = sld [smem:[#allocation2 + $0x1a]] }
  0x4a   : > { %v644_v25 = vstv %s2767_s8  ;;  %v658_v29 = vstv %s2768_s10  ;;  %v678_v33 = vstv %s2770_s17  ;;  %v692_v37 = vstv %s2771_s18  ;;  %s2796_s7 = sld [smem:[#allocation2 + $0x2a]]  ;;  %s2801_s17 = sld [smem:[#allocation2 + $0x1b]] }
  0x4b   : > { %335 = vrot.lane.b32.xlu1 %v330_v19, %s3091_s15  ;;  %v612_v19 = vmul.f32 %v3209_v16, %v610_v17  ;;  %v712_v41 = vstv %s2773_s19  ;;  %v726_v45 = vstv %s2774_s20  ;;  %v746_v49 = vstv %s2776_s21  ;;  %s2798_s8 = sld [smem:[#allocation2 + $0x4a]]  ;;  %s2802_s18 = sld [smem:[#allocation2 + $0x2b]] }
  0x4c   : > { %333 = vrot.lane.b32.xlu0 %v329_v20, %s3091_s15  ;;  %v611_v20 = vmul.f32 %v3212_v18, %v610_v17  ;;  %v760_v53 = vstv %s2777_s22  ;;  %v780_v57 = vstv %s2779_s23  ;;  %v838_v13 = vstv %s2784_s26  ;;  %s2799_s10 = sld [smem:[#allocation2 + $0x5a]]  ;;  %s2804_s19 = sld [smem:[#allocation2 + $0x4b]] }
  0x4d   : > { %v782_v61 = vmul.f32 %v3279_v56, %v780_v57  ;;  %v840_v17 = vmul.f32 %v838_v13, %v3186_v2  ;;  %s2805_s20 = sld [smem:[#allocation2 + $0x5b]]  ;;  %s2808_s21 = sld [smem:[#allocation2 + $0x1c]] }
  0x4e   : > { %s2809_s22 = sld [smem:[#allocation2 + $0x2c]]  ;;  %s2815_s26 = sld [smem:[#allocation2 + $0x2d]] }
  0x4f   : > { %349 = vrot.lane.b32.xlu1 %v344_v22, %s3090_s11  ;;  %v626_v22 = vmul.f32 %v3209_v16, %v624_v21  ;;  %s2811_s23 = sld [smem:[#allocation2 + $0x4c]] }
  0x50   : > { %347 = vrot.lane.b32.xlu0 %v343_v23, %s3090_s11  ;;  %v625_v23 = vmul.f32 %v3212_v18, %v624_v21 }
  0x53   : > { %369 = vrot.lane.b32.xlu1 %v364_v27, %s3091_s15  ;;  %v646_v27 = vmul.f32 %v3223_v24, %v644_v25 }
  0x54   : > { %367 = vrot.lane.b32.xlu0 %v363_v28, %s3091_s15  ;;  %v645_v28 = vmul.f32 %v3226_v26, %v644_v25 }
  0x57   : > { %383 = vrot.lane.b32.xlu1 %v378_v30, %s3090_s11  ;;  %v660_v30 = vmul.f32 %v3223_v24, %v658_v29 }
  0x58   : > { %381 = vrot.lane.b32.xlu0 %v377_v31, %s3090_s11  ;;  %v659_v31 = vmul.f32 %v3226_v26, %v658_v29 }
  0x5b   : > { %403 = vrot.lane.b32.xlu1 %v398_v35, %s3091_s15  ;;  %v680_v35 = vmul.f32 %v3237_v32, %v678_v33 }
  0x5c   : > { %401 = vrot.lane.b32.xlu0 %v397_v36, %s3091_s15  ;;  %v679_v36 = vmul.f32 %v3240_v34, %v678_v33  ;;  %v892_v33 = vstv %s2789_s29  ;;  %s2820_s29 = sld [smem:[#allocation2 + $0x1e]] }
  0x5f   : > { %417 = vrot.lane.b32.xlu1 %v412_v38, %s3090_s11  ;;  %v694_v38 = vmul.f32 %v3237_v32, %v692_v37 }
  0x60   : > { %415 = vrot.lane.b32.xlu0 %v411_v39, %s3090_s11  ;;  %v693_v39 = vmul.f32 %v3240_v34, %v692_v37  ;;  %v894_v37 = vmul.f32 %v3209_v16, %v892_v33 }
  0x63   : > { %437 = vrot.lane.b32.xlu1 %v432_v43, %s3091_s15  ;;  %v714_v43 = vmul.f32 %v3251_v40, %v712_v41 }
  0x64   : > { %435 = vrot.lane.b32.xlu0 %v431_v44, %s3091_s15  ;;  %v713_v44 = vmul.f32 %v3254_v42, %v712_v41 }
  0x67   : > { %451 = vrot.lane.b32.xlu1 %v446_v46, %s3090_s11  ;;  %v728_v46 = vmul.f32 %v3251_v40, %v726_v45 }
  0x68   : > { %449 = vrot.lane.b32.xlu0 %v445_v47, %s3090_s11  ;;  %v727_v47 = vmul.f32 %v3254_v42, %v726_v45 }
  0x6b   : > { %471 = vrot.lane.b32.xlu1 %v466_v51, %s3091_s15  ;;  %v748_v51 = vmul.f32 %v3265_v48, %v746_v49 }
  0x6c   : > { %469 = vrot.lane.b32.xlu0 %v465_v52, %s3091_s15  ;;  %v747_v52 = vmul.f32 %v3268_v50, %v746_v49 }
  0x6f   : > { %485 = vrot.lane.b32.xlu1 %v480_v54, %s3090_s11  ;;  %v762_v54 = vmul.f32 %v3265_v48, %v760_v53 }
  0x70   : > { %483 = vrot.lane.b32.xlu0 %v479_v55, %s3090_s11  ;;  %v761_v55 = vmul.f32 %v3268_v50, %v760_v53  ;;  %v940_v53 = vstv %s2793_s5  ;;  %s2824_s5 = sld [smem:[#allocation2 + $0x5e]] }
  0x73   : > { %505 = vrot.lane.b32.xlu1 %v500_v59, %s3091_s15 }
  0x74   : > { %503 = vrot.lane.b32.xlu0 %v499_v60, %s3091_s15 }
  0x77   : > { %519 = vrot.lane.b32.xlu1 %v514_v62, %s3090_s11  ;;  %v781_v62 = vmul.f32 %v3282_v58, %v780_v57  ;;  %v942_v57 = vmul.f32 %v3223_v24, %v940_v53 }
  0x78   : > { %517 = vrot.lane.b32.xlu0 %v513_v63, %s3090_s11  ;;  %v794_v63 = vstv %s2780_s24  ;;  %s2812_s24 = sld [smem:[#allocation2 + $0x5c]] }
  0x79   : > { %v795_v5 = vmul.f32 %v3282_v58, %v794_v63 }
  0x7b   : > { %549 = vrot.lane.b32.xlu1 %v544_v3, %s3091_s15 }
  0x7c   : > { %547 = vrot.lane.b32.xlu0 %v543_v4, %s3091_s15  ;;  %v796_v4 = vmul.f32 %v3279_v56, %v794_v63 }
  0x7f   : > { %563 = vrot.lane.b32.xlu1 %v558_v6, %s3090_s11  ;;  %v824_v6 = vstv %s2783_s25  ;;  %s2814_s25 = sld [smem:[#allocation2 + $0x1d]] }
  0x80   : > { %561 = vrot.lane.b32.xlu0 %v557_v7, %s3090_s11 }
  0x83   : > { %583 = vrot.lane.b32.xlu1 %v578_v11, %s3091_s15  ;;  %v826_v11 = vmul.f32 %v824_v6, %v3186_v2 }
  0x84   : > { %581 = vrot.lane.b32.xlu0 %v577_v12, %s3091_s15  ;;  %v825_v12 = vmul.f32 %v824_v6, %v3183_v1 }
  0x87   : > { %597 = vrot.lane.b32.xlu1 %v592_v14, %s3090_s11 }
  0x88   : > { %595 = vrot.lane.b32.xlu0 %v591_v15, %s3090_s11 }
  0x8b   : > { %617 = vrot.lane.b32.xlu1 %v612_v19, %s3091_s15  ;;  %v839_v19 = vmul.f32 %v838_v13, %v3183_v1 }
  0x8c   : > { %615 = vrot.lane.b32.xlu0 %v611_v20, %s3091_s15  ;;  %v858_v20 = vstv %s2786_s27  ;;  %s2817_s27 = sld [smem:[#allocation2 + $0x4d]] }
  0x8d   : > { %v859_v25 = vmul.f32 %v3198_v10, %v858_v20 }
  0x8f   : > { %631 = vrot.lane.b32.xlu1 %v626_v22, %s3090_s11 }
  0x90   : > { %629 = vrot.lane.b32.xlu0 %v625_v23, %s3090_s11  ;;  %v860_v23 = vmul.f32 %v3195_v8, %v858_v20  ;;  %v994_v20 = vstv %s2798_s8  ;;  %s2829_s8 = sld [smem:[#allocation2 + $0x4f]] }
  0x93   : > { %651 = vrot.lane.b32.xlu1 %v646_v27, %s3091_s15  ;;  %v872_v27 = vstv %s2787_s28  ;;  %s2818_s28 = sld [smem:[#allocation2 + $0x5d]] }
  0x94   : > { %649 = vrot.lane.b32.xlu0 %v645_v28, %s3091_s15 }
  0x97   : > { %665 = vrot.lane.b32.xlu1 %v660_v30, %s3090_s11  ;;  %v874_v30 = vmul.f32 %v3195_v8, %v872_v27 }
  0x98   : > { %663 = vrot.lane.b32.xlu0 %v659_v31, %s3090_s11  ;;  %v873_v31 = vmul.f32 %v3198_v10, %v872_v27  ;;  %v996_v27 = vmul.f32 %v3251_v40, %v994_v20 }
  0x9b   : > { %685 = vrot.lane.b32.xlu1 %v680_v35, %s3091_s15 }
  0x9c   : > { %683 = vrot.lane.b32.xlu0 %v679_v36, %s3091_s15 }
  0x9f   : > { %699 = vrot.lane.b32.xlu1 %v694_v38, %s3090_s11  ;;  %v893_v38 = vmul.f32 %v3212_v18, %v892_v33 }
  0xa0   : > { %697 = vrot.lane.b32.xlu0 %v693_v39, %s3090_s11  ;;  %v906_v39 = vstv %s2790_s30  ;;  %s2821_s30 = sld [smem:[#allocation2 + $0x2e]] }
  0xa1   : > { %v907_v45 = vmul.f32 %v3212_v18, %v906_v39 }
  0xa3   : > { %719 = vrot.lane.b32.xlu1 %v714_v43, %s3091_s15 }
  0xa4   : > { %717 = vrot.lane.b32.xlu0 %v713_v44, %s3091_s15  ;;  %v908_v44 = vmul.f32 %v3209_v16, %v906_v39 }
  0xa7   : > { %733 = vrot.lane.b32.xlu1 %v728_v46, %s3090_s11  ;;  %v926_v46 = vstv %s2792_s4  ;;  %s2823_s4 = sld [smem:[#allocation2 + $0x4e]] }
  0xa8   : > { %731 = vrot.lane.b32.xlu0 %v727_v47, %s3090_s11 }
  0xab   : > { %753 = vrot.lane.b32.xlu1 %v748_v51, %s3091_s15  ;;  %v928_v51 = vmul.f32 %v3223_v24, %v926_v46 }
  0xac   : > { %751 = vrot.lane.b32.xlu0 %v747_v52, %s3091_s15  ;;  %v927_v52 = vmul.f32 %v3226_v26, %v926_v46 }
  0xad   : > { %v3348_v59 = vpop.permute.xlu1 %279 }
  0xae   : > { %4884 = vst [vmem:[#allocation8_spill] sm:$0xff] %v3348_v59  ;;  %v3350_v60 = vpop.permute.xlu0 %265 }
  0xaf   : > { %4885 = vst [vmem:[#allocation9_spill] sm:$0xff] %v3350_v60  ;;  %767 = vrot.lane.b32.xlu1 %v762_v54, %s3090_s11 }
  0xb0   : > { %765 = vrot.lane.b32.xlu0 %v761_v55, %s3090_s11 }
  0xb1   : > { %v3356_v0 = vpop.permute.xlu1 %281 }
  0xb2   : > { %4886 = vst [vmem:[#allocation10_spill] sm:$0xff] %v3356_v0  ;;  %v3358_v3 = vpop.permute.xlu0 %267 }
  0xb3   : > { %787 = vrot.lane.b32.xlu1 %v782_v61, %s3091_s15  ;;  %v941_v61 = vmul.f32 %v3226_v26, %v940_v53  ;;  %v1042_v53 = vstv %s2802_s18  ;;  %s2842_s18 = sld [smem:[#allocation2 + $0x80]] }
  0xb4   : > { %785 = vrot.lane.b32.xlu0 %v781_v62, %s3091_s15  ;;  %v960_v62 = vstv %s2795_s6  ;;  %s2826_s6 = sld [smem:[#allocation2 + $0x1f]] }
  0xb5   : > { %v3364_v7 = vpop.permute.xlu1 %301  ;;  %v961_v6 = vmul.f32 %v3240_v34, %v960_v62 }
  0xb6   : > { %4887 = vst [vmem:[#allocation11_spill] sm:$0xff] %v3364_v7  ;;  %v3366_v9 = vpop.permute.xlu0 %299 }
  0xb7   : > { %4888 = vst [vmem:[#allocation12_spill] sm:$0xff] %v3366_v9  ;;  %801 = vrot.lane.b32.xlu1 %v796_v4, %s3090_s11 }
  0xb8   : > { %799 = vrot.lane.b32.xlu0 %v795_v5, %s3090_s11  ;;  %v962_v5 = vmul.f32 %v3237_v32, %v960_v62  ;;  %v1044_v62 = vmul.f32 %v3265_v48, %v1042_v53 }
  0xb9   : > { %v3372_v14 = vpop.permute.xlu1 %315 }
  0xba   : > { %4889 = vst [vmem:[#allocation13_spill] sm:$0xff] %v3372_v14  ;;  %v3374_v15 = vpop.permute.xlu0 %313 }
  0xbb   : > { %4890 = vst [vmem:[#allocation14_spill] sm:$0xff] %v3374_v15  ;;  %831 = vrot.lane.b32.xlu1 %v826_v11, %s3091_s15  ;;  %v974_v11 = vstv %s2796_s7  ;;  %s2827_s7 = sld [smem:[#allocation2 + $0x2f]] }
  0xbc   : > { %829 = vrot.lane.b32.xlu0 %v825_v12, %s3091_s15 }
  0xbd   : > { %v3380_v21 = vpop.permute.xlu1 %335 }
  0xbe   : > { %4891 = vst [vmem:[#allocation15_spill] sm:$0xff] %v3380_v21  ;;  %v3382_v22 = vpop.permute.xlu0 %333 }
  0xbf   : > { %4892 = vst [vmem:[#allocation16_spill] sm:$0xff] %v3382_v22  ;;  %845 = vrot.lane.b32.xlu1 %v840_v17, %s3090_s11  ;;  %v976_v17 = vmul.f32 %v3237_v32, %v974_v11 }
  0xc0   : > { %843 = vrot.lane.b32.xlu0 %v839_v19, %s3090_s11  ;;  %v975_v19 = vmul.f32 %v3240_v34, %v974_v11 }
  0xc1   : > { %v3388_v28 = vpop.permute.xlu1 %349 }
  0xc2   : > { %4893 = vst [vmem:[#allocation17_spill] sm:$0xff] %v3388_v28  ;;  %v3390_v29 = vpop.permute.xlu0 %347 }
  0xc3   : > { %4894 = vst [vmem:[#allocation18_spill] sm:$0xff] %v3390_v29  ;;  %865 = vrot.lane.b32.xlu1 %v860_v23, %s3091_s15 }
  0xc4   : > { %863 = vrot.lane.b32.xlu0 %v859_v25, %s3091_s15 }
  0xc5   : > { %v3396_v35 = vpop.permute.xlu1 %369 }
  0xc6   : > { %4895 = vst [vmem:[#allocation19_spill] sm:$0xff] %v3396_v35  ;;  %v3398_v36 = vpop.permute.xlu0 %367 }
  0xc7   : > { %4896 = vst [vmem:[#allocation20_spill] sm:$0xff] %v3398_v36  ;;  %879 = vrot.lane.b32.xlu1 %v874_v30, %s3090_s11  ;;  %v995_v30 = vmul.f32 %v3254_v42, %v994_v20 }
  0xc8   : > { %877 = vrot.lane.b32.xlu0 %v873_v31, %s3090_s11  ;;  %v1008_v31 = vstv %s2799_s10  ;;  %s2830_s10 = sld [smem:[#allocation2 + $0x5f]] }
  0xc9   : > { %v3404_v41 = vpop.permute.xlu1 %383  ;;  %v1009_v39 = vmul.f32 %v3254_v42, %v1008_v31 }
  0xca   : > { %4897 = vst [vmem:[#allocation21_spill] sm:$0xff] %v3404_v41  ;;  %v3406_v43 = vpop.permute.xlu0 %381 }
  0xcb   : > { %4898 = vst [vmem:[#allocation22_spill] sm:$0xff] %v3406_v43  ;;  %899 = vrot.lane.b32.xlu1 %v894_v37, %s3091_s15 }
  0xcc   : > { %897 = vrot.lane.b32.xlu0 %v893_v38, %s3091_s15  ;;  %v1010_v38 = vmul.f32 %v3251_v40, %v1008_v31 }
  0xcd   : > { %v3412_v47 = vpop.permute.xlu1 %403 }
  0xce   : > { %4899 = vst [vmem:[#allocation23_spill] sm:$0xff] %v3412_v47  ;;  %v3414_v49 = vpop.permute.xlu0 %401 }
  0xcf   : > { %4900 = vst [vmem:[#allocation24_spill] sm:$0xff] %v3414_v49  ;;  %913 = vrot.lane.b32.xlu1 %v908_v44, %s3090_s11  ;;  %v1028_v44 = vstv %s2801_s17  ;;  %s2841_s17 = sld [smem:[#allocation2 + $0x70]] }
  0xd0   : > { %911 = vrot.lane.b32.xlu0 %v907_v45, %s3090_s11 }
  0xd1   : > { %v3420_v54 = vpop.permute.xlu1 %417 }
  0xd2   : > { %4901 = vst [vmem:[#allocation25_spill] sm:$0xff] %v3420_v54  ;;  %v3422_v55 = vpop.permute.xlu0 %415 }
  0xd3   : > { %4902 = vst [vmem:[#allocation26_spill] sm:$0xff] %v3422_v55  ;;  %933 = vrot.lane.b32.xlu1 %v928_v51, %s3091_s15  ;;  %v1030_v51 = vmul.f32 %v3265_v48, %v1028_v44 }
  0xd4   : > { %931 = vrot.lane.b32.xlu0 %v927_v52, %s3091_s15  ;;  %v1029_v52 = vmul.f32 %v3268_v50, %v1028_v44  ;;  %v1106_v44 = vstv %s2808_s21  ;;  %s2847_s21 = sld [smem:[#allocation2 + $0x71]] }
  0xd5   : > { %v3428_v63 = vpop.permute.xlu1 %437 }
  0xd6   : > { %4903 = vst [vmem:[#allocation27_spill] sm:$0xff] %v3428_v63  ;;  %v3430_v4 = vpop.permute.xlu0 %435 }
  0xd7   : > { %4904 = vst [vmem:[#allocation28_spill] sm:$0xff] %v3430_v4  ;;  %947 = vrot.lane.b32.xlu1 %v942_v57, %s3090_s11 }
  0xd8   : > { %945 = vrot.lane.b32.xlu0 %v941_v61, %s3090_s11 }
  0xd9   : > { %v3436_v12 = vpop.permute.xlu1 %451 }
  0xda   : > { %4905 = vst [vmem:[#allocation29_spill] sm:$0xff] %v3436_v12  ;;  %v3438_v13 = vpop.permute.xlu0 %449 }
  0xdb   : > { %4906 = vst [vmem:[#allocation30_spill] sm:$0xff] %v3438_v13  ;;  %967 = vrot.lane.b32.xlu1 %v962_v5, %s3091_s15  ;;  %v1043_v5 = vmul.f32 %v3268_v50, %v1042_v53  ;;  %v1108_v53 = vmul.f32 %v1106_v44, %v3186_v2 }
  0xdc   : > { %965 = vrot.lane.b32.xlu0 %v961_v6, %s3091_s15  ;;  %v1062_v6 = vstv %s2804_s19  ;;  %s2844_s19 = sld [smem:[#allocation2 + $0xa0]] }
  0xdd   : > { %v3444_v23 = vpop.permute.xlu1 %471  ;;  %v1063_v20 = vmul.f32 %v3282_v58, %v1062_v6 }
  0xde   : > { %4907 = vst [vmem:[#allocation31_spill] sm:$0xff] %v3444_v23  ;;  %v3446_v25 = vpop.permute.xlu0 %469 }
  0xdf   : > { %4908 = vst [vmem:[#allocation32_spill] sm:$0xff] %v3446_v25  ;;  %981 = vrot.lane.b32.xlu1 %v976_v17, %s3090_s11 }
  0xe0   : > { %979 = vrot.lane.b32.xlu0 %v975_v19, %s3090_s11  ;;  %v1064_v19 = vmul.f32 %v3279_v56, %v1062_v6 }
  0xe1   : > { %v3452_v33 = vpop.permute.xlu1 %485 }
  0xe2   : > { %4909 = vst [vmem:[#allocation33_spill] sm:$0xff] %v3452_v33  ;;  %v3454_v37 = vpop.permute.xlu0 %483 }
  0xe3   : > { %4910 = vst [vmem:[#allocation34_spill] sm:$0xff] %v3454_v37  ;;  %1001 = vrot.lane.b32.xlu1 %v996_v27, %s3091_s15  ;;  %v1076_v27 = vstv %s2805_s20  ;;  %s2845_s20 = sld [smem:[#allocation2 + $0xb0]] }
  0xe4   : > { %999 = vrot.lane.b32.xlu0 %v995_v30, %s3091_s15 }
  0xe5   : > { %v3460_v45 = vpop.permute.xlu1 %505 }
  0xe6   : > { %4911 = vst [vmem:[#allocation35_spill] sm:$0xff] %v3460_v45  ;;  %v3462_v46 = vpop.permute.xlu0 %503 }
  0xe7   : > { %4912 = vst [vmem:[#allocation36_spill] sm:$0xff] %v3462_v46  ;;  %1015 = vrot.lane.b32.xlu1 %v1010_v38, %s3090_s11  ;;  %v1078_v38 = vmul.f32 %v3279_v56, %v1076_v27 }
  0xe8   : > { %1013 = vrot.lane.b32.xlu0 %v1009_v39, %s3090_s11  ;;  %v1077_v39 = vmul.f32 %v3282_v58, %v1076_v27 }
  0xe9   : > { %v3468_v57 = vpop.permute.xlu1 %519 }
  0xea   : > { %4913 = vst [vmem:[#allocation37_spill] sm:$0xff] %v3468_v57  ;;  %v3470_v61 = vpop.permute.xlu0 %517 }
  0xeb   : > { %4914 = vst [vmem:[#allocation38_spill] sm:$0xff] %v3470_v61  ;;  %1035 = vrot.lane.b32.xlu1 %v1030_v51, %s3091_s15 }
  0xec   : > { %1033 = vrot.lane.b32.xlu0 %v1029_v52, %s3091_s15 }
  0xed   : > { %v3476_v11 = vpop.permute.xlu1 %549 }
  0xee   : > { %4915 = vst [vmem:[#allocation39_spill] sm:$0xff] %v3476_v11  ;;  %v3478_v17 = vpop.permute.xlu0 %547 }
  0xef   : > { %4916 = vst [vmem:[#allocation40_spill] sm:$0xff] %v3478_v17  ;;  %1049 = vrot.lane.b32.xlu1 %v1044_v62, %s3090_s11  ;;  %v1107_v62 = vmul.f32 %v1106_v44, %v3183_v1 }
  0xf0   : > { %1047 = vrot.lane.b32.xlu0 %v1043_v5, %s3090_s11  ;;  %v1120_v5 = vstv %s2809_s22  ;;  %s2848_s22 = sld [smem:[#allocation2 + $0x81]] }
  0xf1   : > { %v3484_v30 = vpop.permute.xlu1 %563  ;;  %v1121_v27 = vmul.f32 %v1120_v5, %v3183_v1 }
  0xf2   : > { %4917 = vst [vmem:[#allocation41_spill] sm:$0xff] %v3484_v30  ;;  %v3486_v31 = vpop.permute.xlu0 %561 }
  0xf3   : > { %4918 = vst [vmem:[#allocation42_spill] sm:$0xff] %v3486_v31  ;;  %1069 = vrot.lane.b32.xlu1 %v1064_v19, %s3091_s15 }
  0xf4   : > { %1067 = vrot.lane.b32.xlu0 %v1063_v20, %s3091_s15  ;;  %v1122_v20 = vmul.f32 %v1120_v5, %v3186_v2 }
  0xf5   : > { %v3492_v51 = vpop.permute.xlu1 %583 }
  0xf6   : > { %4919 = vst [vmem:[#allocation43_spill] sm:$0xff] %v3492_v51  ;;  %v3494_v52 = vpop.permute.xlu0 %581 }
  0xf7   : > { %4920 = vst [vmem:[#allocation44_spill] sm:$0xff] %v3494_v52  ;;  %1083 = vrot.lane.b32.xlu1 %v1078_v38, %s3090_s11  ;;  %v1140_v38 = vstv %s2811_s23  ;;  %s2850_s23 = sld [smem:[#allocation2 + $0xa1]] }
  0xf8   : > { %1081 = vrot.lane.b32.xlu0 %v1077_v39, %s3090_s11  ;;  %v1142_v44 = vmul.f32 %v3195_v8, %v1140_v38 }
  0xf9   : > { %v3500_v6 = vpop.permute.xlu1 %597 }
  0xfa   : > { %4921 = vst [vmem:[#allocation45_spill] sm:$0xff] %v3500_v6  ;;  %v3502_v19 = vpop.permute.xlu0 %595 }
  0xfb   : > { %4922 = vst [vmem:[#allocation46_spill] sm:$0xff] %v3502_v19  ;;  %1113 = vrot.lane.b32.xlu1 %v1108_v53, %s3091_s15  ;;  %v1141_v53 = vmul.f32 %v3198_v10, %v1140_v38  ;;  %v1154_v19 = vstv %s2812_s24  ;;  %s2851_s24 = sld [smem:[#allocation2 + $0xb1]] }
  0xfc   : > { %1111 = vrot.lane.b32.xlu0 %v1107_v62, %s3091_s15  ;;  %v1156_v1 = vmul.f32 %v3195_v8, %v1154_v19  ;;  %v1155_v5 = vmul.f32 %v3198_v10, %v1154_v19 }
  0xfd   : > { %v3508_v39 = vpop.permute.xlu1 %617 }
  0xfe   : > { %4923 = vst [vmem:[#allocation47_spill] sm:$0xff] %v3508_v39  ;;  %v3510_v52 = vpop.permute.xlu0 %615 }
  0xff   : > { %4924 = vst [vmem:[#allocation48_spill] sm:$0xff] %v3510_v52  ;;  %1127 = vrot.lane.b32.xlu1 %v1122_v20, %s3090_s11  ;;  %v1174_v20 = vstv %s2814_s25  ;;  %s2853_s25 = sld [smem:[#allocation2 + $0x72]] }
 0x100   : > { %1125 = vrot.lane.b32.xlu0 %v1121_v27, %s3090_s11  ;;  %v1176_v38 = vmul.f32 %v3209_v16, %v1174_v20 }
 0x101   : > { %v3516_v62 = vpop.permute.xlu1 %631 }
 0x102   : > { %4925 = vst [vmem:[#allocation49_spill] sm:$0xff] %v3516_v62  ;;  %v3518_v2 = vpop.permute.xlu0 %629 }
 0x103   : > { %4926 = vst [vmem:[#allocation50_spill] sm:$0xff] %v3518_v2  ;;  %1147 = vrot.lane.b32.xlu1 %v1142_v44, %s3091_s15  ;;  %v1175_v44 = vmul.f32 %v3212_v18, %v1174_v20  ;;  %v1188_v2 = vstv %s2815_s26  ;;  %s2854_s26 = sld [smem:[#allocation2 + $0x82]] }
 0x104   : > { %1145 = vrot.lane.b32.xlu0 %v1141_v53, %s3091_s15  ;;  %v1190_v19 = vmul.f32 %v3209_v16, %v1188_v2 }
 0x105   : > { %v3524_v27 = vpop.permute.xlu1 %651 }
 0x106   : > { %4927 = vst [vmem:[#allocation51_spill] sm:$0xff] %v3524_v27  ;;  %v3526_v52 = vpop.permute.xlu0 %649 }
 0x107   : > { %4928 = vst [vmem:[#allocation52_spill] sm:$0xff] %v3526_v52  ;;  %1161 = vrot.lane.b32.xlu1 %v1156_v1, %s3090_s11  ;;  %v1189_v1 = vmul.f32 %v3212_v18, %v1188_v2  ;;  %v1208_v52 = vstv %s2817_s27  ;;  %s2856_s27 = sld [smem:[#allocation2 + $0xa2]] }
 0x108   : > { %1159 = vrot.lane.b32.xlu0 %v1155_v5, %s3090_s11  ;;  %v1210_v20 = vmul.f32 %v3223_v24, %v1208_v52 }
 0x109   : > { %v3532_v53 = vpop.permute.xlu1 %665 }
 0x10a   : > { %4929 = vst [vmem:[#allocation53_spill] sm:$0xff] %v3532_v53  ;;  %v3534_v62 = vpop.permute.xlu0 %663  ;;  %v3640_v53 = vld [vmem:[%s3180_s9 + $0x2] sm:$0xff] }
 0x10b   : > { %4930 = vst [vmem:[#allocation54_spill] sm:$0xff] %v3534_v62  ;;  %1181 = vrot.lane.b32.xlu1 %v1176_v38, %s3091_s15  ;;  %v1209_v38 = vmul.f32 %v3226_v26, %v1208_v52  ;;  %v1222_v62 = vstv %s2818_s28  ;;  %s2857_s28 = sld [smem:[#allocation2 + $0xb2]] }
 0x10c   : > { %1179 = vrot.lane.b32.xlu0 %v1175_v44, %s3091_s15  ;;  %v1224_v18 = vmul.f32 %v3223_v24, %v1222_v62  ;;  %v1223_v2 = vmul.f32 %v3226_v26, %v1222_v62 }
 0x10d   : > { %v3540_v5 = vpop.permute.xlu1 %685 }
 0x10e   : > { %4931 = vst [vmem:[#allocation55_spill] sm:$0xff] %v3540_v5  ;;  %v3542_v27 = vpop.permute.xlu0 %683  ;;  %v3637_v5 = vld [vmem:[%s3180_s9 + $0xa] sm:$0xff] }
 0x10f   : > { %4932 = vst [vmem:[#allocation56_spill] sm:$0xff] %v3542_v27  ;;  %1195 = vrot.lane.b32.xlu1 %v1190_v19, %s3090_s11  ;;  %v1242_v19 = vstv %s2820_s29  ;;  %s2859_s29 = sld [smem:[#allocation2 + $0x73]] }
 0x110   : > { %1193 = vrot.lane.b32.xlu0 %v1189_v1, %s3090_s11  ;;  %v1244_v52 = vmul.f32 %v3237_v32, %v1242_v19 }
 0x111   : > { %v3548_v44 = vpop.permute.xlu1 %699 }
 0x112   : > { %4933 = vst [vmem:[#allocation57_spill] sm:$0xff] %v3548_v44  ;;  %v3550_v16 = vpop.permute.xlu0 %697 }
 0x113   : > { %4934 = vst [vmem:[#allocation58_spill] sm:$0xff] %v3550_v16  ;;  %1215 = vrot.lane.b32.xlu1 %v1210_v20, %s3091_s15  ;;  %v1243_v20 = vmul.f32 %v3240_v34, %v1242_v19  ;;  %v1256_v16 = vstv %s2821_s30  ;;  %s2860_s30 = sld [smem:[#allocation2 + $0x83]] }
 0x114   : > { %1213 = vrot.lane.b32.xlu0 %v1209_v38, %s3091_s15  ;;  %v1258_v62 = vmul.f32 %v3237_v32, %v1256_v16 }
 0x115   : > { %v3556_v1 = vpop.permute.xlu1 %719 }
 0x116   : > { %4935 = vst [vmem:[#allocation59_spill] sm:$0xff] %v3556_v1  ;;  %v3558_v27 = vpop.permute.xlu0 %717 }
 0x117   : > { %4936 = vst [vmem:[#allocation60_spill] sm:$0xff] %v3558_v27  ;;  %1229 = vrot.lane.b32.xlu1 %v1224_v18, %s3090_s11  ;;  %v1257_v18 = vmul.f32 %v3240_v34, %v1256_v16  ;;  %v1276_v27 = vstv %s2823_s4  ;;  %s2862_s4 = sld [smem:[#allocation2 + $0xa3]] }
 0x118   : > { %1227 = vrot.lane.b32.xlu0 %v1223_v2, %s3090_s11  ;;  %v1278_v19 = vmul.f32 %v3251_v40, %v1276_v27 }
 0x119   : > { %v3564_v38 = vpop.permute.xlu1 %733 }
 0x11a   : > { %4937 = vst [vmem:[#allocation61_spill] sm:$0xff] %v3564_v38  ;;  %v3566_v44 = vpop.permute.xlu0 %731 }
 0x11b   : > { %4938 = vst [vmem:[#allocation62_spill] sm:$0xff] %v3566_v44  ;;  %1249 = vrot.lane.b32.xlu1 %v1244_v52, %s3091_s15  ;;  %v1277_v52 = vmul.f32 %v3254_v42, %v1276_v27  ;;  %v1290_v44 = vstv %s2824_s5  ;;  %s2863_s5 = sld [smem:[#allocation2 + $0xb3]] }
 0x11c   : > { %1247 = vrot.lane.b32.xlu0 %v1243_v20, %s3091_s15  ;;  %v1292_v34 = vmul.f32 %v3251_v40, %v1290_v44  ;;  %v1291_v16 = vmul.f32 %v3254_v42, %v1290_v44 }
 0x11d   : > { %v3572_v2 = vpop.permute.xlu1 %753 }
 0x11e   : > { %4939 = vst [vmem:[#allocation63_spill] sm:$0xff] %v3572_v2  ;;  %v3574_v1 = vpop.permute.xlu0 %751 }
 0x11f   : > { %4940 = vst [vmem:[#allocation64_spill] sm:$0xff] %v3574_v1  ;;  %1263 = vrot.lane.b32.xlu1 %v1258_v62, %s3090_s11  ;;  %v1310_v62 = vstv %s2826_s6  ;;  %s2865_s6 = sld [smem:[#allocation2 + $0x74]] }
 0x120   : > { %1261 = vrot.lane.b32.xlu0 %v1257_v18, %s3090_s11  ;;  %v1312_v27 = vmul.f32 %v3265_v48, %v1310_v62 }
 0x121   : > { %v3580_v20 = vpop.permute.xlu1 %767 }
 0x122   : > { %4941 = vst [vmem:[#allocation65_spill] sm:$0xff] %v3580_v20  ;;  %v3582_v32 = vpop.permute.xlu0 %765 }
 0x123   : > { %4942 = vst [vmem:[#allocation66_spill] sm:$0xff] %v3582_v32  ;;  %1283 = vrot.lane.b32.xlu1 %v1278_v19, %s3091_s15  ;;  %v1311_v19 = vmul.f32 %v3268_v50, %v1310_v62  ;;  %v1324_v32 = vstv %s2827_s7  ;;  %s2866_s7 = sld [smem:[#allocation2 + $0x84]] }
 0x124   : > { %1281 = vrot.lane.b32.xlu0 %v1277_v52, %s3091_s15  ;;  %v1326_v44 = vmul.f32 %v3265_v48, %v1324_v32 }
 0x125   : > { %v3588_v18 = vpop.permute.xlu1 %787 }
 0x126   : > { %4943 = vst [vmem:[#allocation67_spill] sm:$0xff] %v3588_v18  ;;  %v3590_v1 = vpop.permute.xlu0 %785 }
 0x127   : > { %4944 = vst [vmem:[#allocation68_spill] sm:$0xff] %v3590_v1  ;;  %1297 = vrot.lane.b32.xlu1 %v1292_v34, %s3090_s11  ;;  %v1325_v34 = vmul.f32 %v3268_v50, %v1324_v32  ;;  %v1344_v1 = vstv %s2829_s8  ;;  %s2868_s8 = sld [smem:[#allocation2 + $0xa4]] }
 0x128   : > { %1295 = vrot.lane.b32.xlu0 %v1291_v16, %s3090_s11  ;;  %v1346_v62 = vmul.f32 %v3279_v56, %v1344_v1 }
 0x129   : > { %v3596_v52 = vpop.permute.xlu1 %801  ;;  %v1698_v6 = vstv %s2866_s7  ;;  %s2920_s7 = sld [smem:[#allocation2 + $0x8d]] }
 0x12a   : > { %4945 = vst [vmem:[#allocation69_spill] sm:$0xff] %v3596_v52  ;;  %v3598_v20 = vpop.permute.xlu0 %799  ;;  %v1418_v52 = vstv %s2842_s18  ;;  %s2872_s18 = sld [smem:[#allocation2 + $0x85]] }
 0x12b   : > { %4946 = vst [vmem:[#allocation70_spill] sm:$0xff] %v3598_v20  ;;  %1317 = vrot.lane.b32.xlu1 %v1312_v27, %s3091_s15  ;;  %v1345_v27 = vmul.f32 %v3282_v58, %v1344_v1  ;;  %v1358_v20 = vstv %s2830_s10  ;;  %v1420_v38 = vmul.f32 %v3195_v8, %v1418_v52  ;;  %s2869_s10 = sld [smem:[#allocation2 + $0xb4]] }
 0x12c   : > { %1315 = vrot.lane.b32.xlu0 %v1311_v19, %s3091_s15  ;;  %v1360_v50 = vmul.f32 %v3279_v56, %v1358_v20  ;;  %v1359_v32 = vmul.f32 %v3282_v58, %v1358_v20 }
 0x12d   : > { %v3604_v16 = vpop.permute.xlu1 %831 }
 0x12e   : > { %4947 = vst [vmem:[#allocation71_spill] sm:$0xff] %v3604_v16  ;;  %v3606_v18 = vpop.permute.xlu0 %829 }
 0x12f   : > { %4948 = vst [vmem:[#allocation72_spill] sm:$0xff] %v3606_v18  ;;  %1331 = vrot.lane.b32.xlu1 %v1326_v44, %s3090_s11  ;;  %v1404_v44 = vstv %s2841_s17  ;;  %s2871_s17 = sld [smem:[#allocation2 + $0x75]]  ;;  %v2326_v45 = vstv %s2920_s7  ;;  %s4088_s7 = sld [smem:[#allocation2 + $0xba]] }
 0x130   : > { %1329 = vrot.lane.b32.xlu0 %v1325_v34, %s3090_s11 }
 0x131   : > { %v3612_v19 = vpop.permute.xlu1 %845 }
 0x132   : > { %4949 = vst [vmem:[#allocation73_spill] sm:$0xff] %v3612_v19  ;;  %v3614_v48 = vpop.permute.xlu0 %843 }
 0x133   : > { %4950 = vst [vmem:[#allocation74_spill] sm:$0xff] %v3614_v48  ;;  %1351 = vrot.lane.b32.xlu1 %v1346_v62, %s3091_s15  ;;  %v1406_v62 = vmul.f32 %v3195_v8, %v1404_v44 }
 0x134   : > { %1349 = vrot.lane.b32.xlu0 %v1345_v27, %s3091_s15  ;;  %v1405_v27 = vmul.f32 %v3198_v10, %v1404_v44 }
 0x135   : > { %v3620_v34 = vpop.permute.xlu1 %865 }
 0x136   : > { %4951 = vst [vmem:[#allocation75_spill] sm:$0xff] %v3620_v34  ;;  %v3622_v1 = vpop.permute.xlu0 %863  ;;  %v3783_v34 = vld [vmem:[%s3180_s9 + $0x1] sm:$0xff] }
 0x137   : > { %4952 = vst [vmem:[#allocation76_spill] sm:$0xff] %v3622_v1  ;;  %1365 = vrot.lane.b32.xlu1 %v1360_v50, %s3090_s11  ;;  %v1419_v50 = vmul.f32 %v3198_v10, %v1418_v52  ;;  %v3779_v1 = vld [vmem:[%s3180_s9 + $0x9] sm:$0xff] }
 0x138   : > { %1363 = vrot.lane.b32.xlu0 %v1359_v32, %s3090_s11  ;;  %v1438_v32 = vstv %s2844_s19  ;;  %s2874_s19 = sld [smem:[#allocation2 + $0xa5]] }
 0x139   : > { %v3628_v2 = vpop.permute.xlu1 %879  ;;  %v1439_v8 = vmul.f32 %v3640_v53, %v1438_v32 }
 0x13a   : > { %4953 = vst [vmem:[#allocation77_spill] sm:$0xff] %v3628_v2  ;;  %v3630_v20 = vpop.permute.xlu0 %877 }
 0x13b   : > { %4954 = vst [vmem:[#allocation78_spill] sm:$0xff] %v3630_v20  ;;  %1411 = vrot.lane.b32.xlu1 %v1406_v62, %s3091_s15  ;;  %v1440_v62 = vmul.f32 %v3637_v5, %v1438_v32  ;;  %v3678_v20 = vld [vmem:[%s3180_s9 + $0x1a] sm:$0xff] }
 0x13c   : > { %1409 = vrot.lane.b32.xlu0 %v1405_v27, %s3091_s15  ;;  %v1452_v27 = vstv %s2845_s20  ;;  %s2875_s20 = sld [smem:[#allocation2 + $0xb5]] }
 0x13d   : > { %v3642_v44 = vpop.permute.xlu1 %899 }
 0x13e   : > { %4955 = vst [vmem:[#allocation79_spill] sm:$0xff] %v3642_v44  ;;  %v3644_v39 = vpop.permute.xlu0 %897  ;;  %v1472_v44 = vstv %s2847_s21  ;;  %s2877_s21 = sld [smem:[#allocation2 + $0x76]] }
 0x13f   : > { %4956 = vst [vmem:[#allocation80_spill] sm:$0xff] %v3644_v39  ;;  %1425 = vrot.lane.b32.xlu1 %v1420_v38, %s3090_s11  ;;  %v1454_v39 = vmul.f32 %v3637_v5, %v1452_v27  ;;  %v1453_v38 = vmul.f32 %v3640_v53, %v1452_v27 }
 0x140   : > { %1423 = vrot.lane.b32.xlu0 %v1419_v50, %s3090_s11 }
 0x141   : > { %v3650_v10 = vpop.permute.xlu1 %913 }
 0x142   : > { %4957 = vst [vmem:[#allocation81_spill] sm:$0xff] %v3650_v10  ;;  %v3652_v52 = vpop.permute.xlu0 %911 }
 0x143   : > { %4958 = vst [vmem:[#allocation82_spill] sm:$0xff] %v3652_v52  ;;  %1445 = vrot.lane.b32.xlu1 %v1440_v62, %s3091_s15  ;;  %v1474_v62 = vmul.f32 %v3223_v24, %v1472_v44  ;;  %v1486_v52 = vstv %s2848_s22  ;;  %s2878_s22 = sld [smem:[#allocation2 + $0x86]] }
 0x144   : > { %1443 = vrot.lane.b32.xlu0 %v1439_v8, %s3091_s15  ;;  %v1473_v8 = vmul.f32 %v3226_v26, %v1472_v44 }
 0x145   : > { %v3658_v50 = vpop.permute.xlu1 %933 }
 0x146   : > { %4959 = vst [vmem:[#allocation83_spill] sm:$0xff] %v3658_v50  ;;  %v3660_v32 = vpop.permute.xlu0 %931  ;;  %v3675_v50 = vld [vmem:[%s3180_s9 + $0x22] sm:$0xff] }
 0x147   : > { %4960 = vst [vmem:[#allocation84_spill] sm:$0xff] %v3660_v32  ;;  %1459 = vrot.lane.b32.xlu1 %v1454_v39, %s3090_s11  ;;  %v1488_v32 = vmul.f32 %v3223_v24, %v1486_v52  ;;  %v1487_v39 = vmul.f32 %v3226_v26, %v1486_v52 }
 0x148   : > { %1457 = vrot.lane.b32.xlu0 %v1453_v38, %s3090_s11  ;;  %v1506_v38 = vstv %s2850_s23  ;;  %s2889_s23 = sld [smem:[#allocation2 + $0x78]] }
 0x149   : > { %v3666_v10 = vpop.permute.xlu1 %947  ;;  %v1507_v24 = vmul.f32 %v3678_v20, %v1506_v38 }
 0x14a   : > { %4961 = vst [vmem:[#allocation85_spill] sm:$0xff] %v3666_v10  ;;  %v3668_v27 = vpop.permute.xlu0 %945 }
 0x14b   : > { %4962 = vst [vmem:[#allocation86_spill] sm:$0xff] %v3668_v27  ;;  %1479 = vrot.lane.b32.xlu1 %v1474_v62, %s3091_s15  ;;  %v1508_v62 = vmul.f32 %v3675_v50, %v1506_v38  ;;  %v3716_v27 = vld [vmem:[%s3180_s9 + $0x32] sm:$0xff] }
 0x14c   : > { %1477 = vrot.lane.b32.xlu0 %v1473_v8, %s3091_s15  ;;  %v1520_v8 = vstv %s2851_s24  ;;  %s2913_s24 = sld [smem:[#allocation2 + $0x7c]] }
 0x14d   : > { %v3680_v44 = vpop.permute.xlu1 %967 }
 0x14e   : > { %4963 = vst [vmem:[#allocation87_spill] sm:$0xff] %v3680_v44  ;;  %v3682_v2 = vpop.permute.xlu0 %965  ;;  %v1540_v44 = vstv %s2853_s25  ;;  %s2890_s25 = sld [smem:[#allocation2 + $0x88]] }
 0x14f   : > { %4964 = vst [vmem:[#allocation88_spill] sm:$0xff] %v3682_v2  ;;  %1493 = vrot.lane.b32.xlu1 %v1488_v32, %s3090_s11  ;;  %v1522_v2 = vmul.f32 %v3675_v50, %v1520_v8  ;;  %v1521_v32 = vmul.f32 %v3678_v20, %v1520_v8 }
 0x150   : > { %1491 = vrot.lane.b32.xlu0 %v1487_v39, %s3090_s11 }
 0x151   : > { %v3688_v26 = vpop.permute.xlu1 %981 }
 0x152   : > { %4965 = vst [vmem:[#allocation89_spill] sm:$0xff] %v3688_v26  ;;  %v3690_v52 = vpop.permute.xlu0 %979 }
 0x153   : > { %4966 = vst [vmem:[#allocation90_spill] sm:$0xff] %v3690_v52  ;;  %1513 = vrot.lane.b32.xlu1 %v1508_v62, %s3091_s15  ;;  %v1542_v62 = vmul.f32 %v3251_v40, %v1540_v44  ;;  %v1554_v52 = vstv %s2854_s26  ;;  %s2914_s26 = sld [smem:[#allocation2 + $0x8c]] }
 0x154   : > { %1511 = vrot.lane.b32.xlu0 %v1507_v24, %s3091_s15  ;;  %v1541_v24 = vmul.f32 %v3254_v42, %v1540_v44 }
 0x155   : > { %v3696_v39 = vpop.permute.xlu1 %1001 }
 0x156   : > { %4967 = vst [vmem:[#allocation91_spill] sm:$0xff] %v3696_v39  ;;  %v3698_v38 = vpop.permute.xlu0 %999  ;;  %v3713_v39 = vld [vmem:[%s3180_s9 + $0x3a] sm:$0xff] }
 0x157   : > { %4968 = vst [vmem:[#allocation92_spill] sm:$0xff] %v3698_v38  ;;  %1527 = vrot.lane.b32.xlu1 %v1522_v2, %s3090_s11  ;;  %v1556_v38 = vmul.f32 %v3251_v40, %v1554_v52  ;;  %v1555_v2 = vmul.f32 %v3254_v42, %v1554_v52 }
 0x158   : > { %1525 = vrot.lane.b32.xlu0 %v1521_v32, %s3090_s11  ;;  %v1574_v32 = vstv %s2856_s27  ;;  %s2892_s27 = sld [smem:[#allocation2 + $0xa8]] }
 0x159   : > { %v3704_v26 = vpop.permute.xlu1 %1015  ;;  %v1575_v40 = vmul.f32 %v3716_v27, %v1574_v32 }
 0x15a   : > { %4969 = vst [vmem:[#allocation93_spill] sm:$0xff] %v3704_v26  ;;  %v3706_v8 = vpop.permute.xlu0 %1013 }
 0x15b   : > { %4970 = vst [vmem:[#allocation94_spill] sm:$0xff] %v3706_v8  ;;  %1547 = vrot.lane.b32.xlu1 %v1542_v62, %s3091_s15  ;;  %v1576_v62 = vmul.f32 %v3713_v39, %v1574_v32  ;;  %v3754_v8 = vld [vmem:[%s3180_s9 + $0x4a] sm:$0xff] }
 0x15c   : > { %1545 = vrot.lane.b32.xlu0 %v1541_v24, %s3091_s15  ;;  %v1588_v24 = vstv %s2857_s28  ;;  %s2916_s28 = sld [smem:[#allocation2 + $0xac]] }
 0x15d   : > { %v3718_v44 = vpop.permute.xlu1 %1035 }
 0x15e   : > { %4971 = vst [vmem:[#allocation95_spill] sm:$0xff] %v3718_v44  ;;  %v3720_v10 = vpop.permute.xlu0 %1033  ;;  %v1608_v44 = vstv %s2859_s29  ;;  %s2893_s29 = sld [smem:[#allocation2 + $0xb8]] }
 0x15f   : > { %4972 = vst [vmem:[#allocation96_spill] sm:$0xff] %v3720_v10  ;;  %1561 = vrot.lane.b32.xlu1 %v1556_v38, %s3090_s11  ;;  %v1590_v10 = vmul.f32 %v3713_v39, %v1588_v24  ;;  %v1589_v38 = vmul.f32 %v3716_v27, %v1588_v24 }
 0x160   : > { %1559 = vrot.lane.b32.xlu0 %v1555_v2, %s3090_s11 }
 0x161   : > { %v3726_v42 = vpop.permute.xlu1 %1049 }
 0x162   : > { %4973 = vst [vmem:[#allocation97_spill] sm:$0xff] %v3726_v42  ;;  %v3728_v52 = vpop.permute.xlu0 %1047 }
 0x163   : > { %4974 = vst [vmem:[#allocation98_spill] sm:$0xff] %v3728_v52  ;;  %1581 = vrot.lane.b32.xlu1 %v1576_v62, %s3091_s15  ;;  %v1610_v62 = vmul.f32 %v3279_v56, %v1608_v44  ;;  %v1622_v52 = vstv %s2860_s30  ;;  %s2917_s30 = sld [smem:[#allocation2 + $0xbc]] }
 0x164   : > { %1579 = vrot.lane.b32.xlu0 %v1575_v40, %s3091_s15  ;;  %v1609_v40 = vmul.f32 %v3282_v58, %v1608_v44  ;;  %v2012_v19 = vstv %s2893_s29  ;;  %s4044_s29 = sld [smem:[#allocation2 + $0xaa]] }
 0x165   : > { %v3734_v2 = vpop.permute.xlu1 %1069 }
 0x166   : > { %4975 = vst [vmem:[#allocation99_spill] sm:$0xff] %v3734_v2  ;;  %v3736_v32 = vpop.permute.xlu0 %1067  ;;  %v3751_v2 = vld [vmem:[%s3180_s9 + $0x52] sm:$0xff] }
 0x167   : > { %4976 = vst [vmem:[#allocation100_spill] sm:$0xff] %v3736_v32  ;;  %1595 = vrot.lane.b32.xlu1 %v1590_v10, %s3090_s11  ;;  %v1624_v32 = vmul.f32 %v3279_v56, %v1622_v52  ;;  %v1623_v10 = vmul.f32 %v3282_v58, %v1622_v52  ;;  %v1656_v58 = vstv %s2863_s5  ;;  %s2919_s5 = sld [smem:[#allocation2 + $0x7d]] }
 0x168   : > { %1593 = vrot.lane.b32.xlu0 %v1589_v38, %s3090_s11  ;;  %v1642_v38 = vstv %s2862_s4  ;;  %s2895_s4 = sld [smem:[#allocation2 + $0x79]] }
 0x169   : > { %v3742_v42 = vpop.permute.xlu1 %1083  ;;  %v1643_v56 = vmul.f32 %v3754_v8, %v1642_v38  ;;  %v2292_v16 = vstv %s2917_s30  ;;  %s4062_s30 = sld [smem:[#allocation2 + $0xae]] }
 0x16a   : > { %4977 = vst [vmem:[#allocation101_spill] sm:$0xff] %v3742_v42  ;;  %v3744_v24 = vpop.permute.xlu0 %1081 }
 0x16b   : > { %4978 = vst [vmem:[#allocation102_spill] sm:$0xff] %v3744_v24  ;;  %1615 = vrot.lane.b32.xlu1 %v1610_v62, %s3091_s15  ;;  %v1644_v62 = vmul.f32 %v3751_v2, %v1642_v38  ;;  %v1684_v24 = vstv %s2865_s6  ;;  %s2896_s6 = sld [smem:[#allocation2 + $0x89]] }
 0x16c   : > { %1613 = vrot.lane.b32.xlu0 %v1609_v40, %s3091_s15 }
 0x16d   : > { %v3756_v44 = vpop.permute.xlu1 %1113  ;;  %v2312_v11 = vstv %s2919_s5  ;;  %s4067_s5 = sld [smem:[#allocation2 + $0x91]] }
 0x16e   : > { %4979 = vst [vmem:[#allocation103_spill] sm:$0xff] %v3756_v44  ;;  %v3758_v26 = vpop.permute.xlu0 %1111  ;;  %v2032_v30 = vstv %s2895_s4  ;;  %s4064_s4 = sld [smem:[#allocation2 + $0x65]] }
 0x16f   : > { %4980 = vst [vmem:[#allocation104_spill] sm:$0xff] %v3758_v26  ;;  %1629 = vrot.lane.b32.xlu1 %v1624_v32, %s3090_s11  ;;  %v1658_v32 = vmul.f32 %v3751_v2, %v1656_v58 }
 0x170   : > { %1627 = vrot.lane.b32.xlu0 %v1623_v10, %s3090_s11  ;;  %v1657_v10 = vmul.f32 %v3754_v8, %v1656_v58 }
 0x171   : > { %v3764_v52 = vpop.permute.xlu1 %1127  ;;  %v2046_v57 = vstv %s2896_s6  ;;  %s4078_s6 = sld [smem:[#allocation2 + $0xb6]] }
 0x172   : > { %4981 = vst [vmem:[#allocation105_spill] sm:$0xff] %v3764_v52  ;;  %v3766_v40 = vpop.permute.xlu0 %1125 }
 0x173   : > { %4982 = vst [vmem:[#allocation106_spill] sm:$0xff] %v3766_v40  ;;  %1649 = vrot.lane.b32.xlu1 %v1644_v62, %s3091_s15  ;;  %v1686_v62 = vmul.f32 %v3779_v1, %v1684_v24 }
 0x174   : > { %1647 = vrot.lane.b32.xlu0 %v1643_v56, %s3091_s15  ;;  %v1685_v56 = vmul.f32 %v3783_v34, %v1684_v24 }
 0x175   : > { %v3772_v42 = vpop.permute.xlu1 %1147 }
 0x176   : > { %4983 = vst [vmem:[#allocation107_spill] sm:$0xff] %v3772_v42  ;;  %v3774_v38 = vpop.permute.xlu0 %1145 }
 0x177   : > { %4984 = vst [vmem:[#allocation108_spill] sm:$0xff] %v3774_v38  ;;  %1663 = vrot.lane.b32.xlu1 %v1658_v32, %s3090_s11  ;;  %v1700_v32 = vmul.f32 %v3779_v1, %v1698_v6  ;;  %v1718_v38 = vstv %s2868_s8  ;;  %s2898_s8 = sld [smem:[#allocation2 + $0xa9]] }
 0x178   : > { %1661 = vrot.lane.b32.xlu0 %v1657_v10, %s3090_s11  ;;  %v1699_v10 = vmul.f32 %v3783_v34, %v1698_v6  ;;  %v1720_v24 = vmul.f32 %v3637_v5, %v1718_v38 }
 0x179   : > { %v3786_v58 = vpop.permute.xlu1 %1161 }
 0x17a   : > { %4985 = vst [vmem:[#allocation109_spill] sm:$0xff] %v3786_v58  ;;  %v3788_v40 = vpop.permute.xlu0 %1159  ;;  %v1766_v58 = vstv %s2872_s18  ;;  %s2923_s18 = sld [smem:[#allocation2 + $0xbd]] }
 0x17b   : > { %4986 = vst [vmem:[#allocation110_spill] sm:$0xff] %v3788_v40  ;;  %1691 = vrot.lane.b32.xlu1 %v1686_v62, %s3091_s15  ;;  %v1719_v62 = vmul.f32 %v3640_v53, %v1718_v38 }
 0x17c   : > { %1689 = vrot.lane.b32.xlu0 %v1685_v56, %s3091_s15  ;;  %v1732_v56 = vstv %s2869_s10  ;;  %s2922_s10 = sld [smem:[#allocation2 + $0xad]] }
 0x17d   : > { %v3794_v42 = vpop.permute.xlu1 %1181  ;;  %v2066_v33 = vstv %s2898_s8  ;;  %s4090_s8 = sld [smem:[#allocation2 + $0x95]] }
 0x17e   : > { %4987 = vst [vmem:[#allocation111_spill] sm:$0xff] %v3794_v42  ;;  %v3796_v52 = vpop.permute.xlu0 %1179 }
 0x17f   : > { %4988 = vst [vmem:[#allocation112_spill] sm:$0xff] %v3796_v52  ;;  %1705 = vrot.lane.b32.xlu1 %v1700_v32, %s3090_s11  ;;  %v1734_v32 = vmul.f32 %v3637_v5, %v1732_v56  ;;  %v1752_v52 = vstv %s2871_s17  ;;  %s2899_s17 = sld [smem:[#allocation2 + $0xb9]] }
 0x180   : > { %1703 = vrot.lane.b32.xlu0 %v1699_v10, %s3090_s11  ;;  %v1733_v10 = vmul.f32 %v3640_v53, %v1732_v56 }
 0x181   : > { %v3802_v40 = vpop.permute.xlu1 %1195 }
 0x182   : > { %4989 = vst [vmem:[#allocation113_spill] sm:$0xff] %v3802_v40  ;;  %v3804_v6 = vpop.permute.xlu0 %1193  ;;  %v3817_v40 = vld [vmem:[%s3180_s9 + $0x21] sm:$0xff]  ;;  %v2346_v23 = vstv %s2922_s10  ;;  %s4102_s10 = sld [smem:[#allocation2 + $0xbe]] }
 0x183   : > { %4990 = vst [vmem:[#allocation114_spill] sm:$0xff] %v3804_v6  ;;  %1725 = vrot.lane.b32.xlu1 %v1720_v24, %s3091_s15  ;;  %v1754_v24 = vmul.f32 %v3817_v40, %v1752_v52  ;;  %v3821_v6 = vld [vmem:[%s3180_s9 + $0x19] sm:$0xff] }
 0x184   : > { %1723 = vrot.lane.b32.xlu0 %v1719_v62, %s3091_s15  ;;  %v1753_v62 = vmul.f32 %v3821_v6, %v1752_v52 }
 0x185   : > { %v3810_v42 = vpop.permute.xlu1 %1215  ;;  %v2080_v12 = vstv %s2899_s17  ;;  %s4108_s17 = sld [smem:[#allocation2 + $0x62]] }
 0x186   : > { %4991 = vst [vmem:[#allocation115_spill] sm:$0xff] %v3810_v42  ;;  %v3812_v38 = vpop.permute.xlu0 %1213 }
 0x187   : > { %4992 = vst [vmem:[#allocation116_spill] sm:$0xff] %v3812_v38  ;;  %1739 = vrot.lane.b32.xlu1 %v1734_v32, %s3090_s11  ;;  %v1768_v32 = vmul.f32 %v3817_v40, %v1766_v58  ;;  %v1786_v38 = vstv %s2874_s19  ;;  %s2901_s19 = sld [smem:[#allocation2 + $0x7a]] }
 0x188   : > { %1737 = vrot.lane.b32.xlu0 %v1733_v10, %s3090_s11  ;;  %v1767_v10 = vmul.f32 %v3821_v6, %v1766_v58  ;;  %v1788_v52 = vmul.f32 %v3675_v50, %v1786_v38 }
 0x189   : > { %v3824_v56 = vpop.permute.xlu1 %1229 }
 0x18a   : > { %4993 = vst [vmem:[#allocation117_spill] sm:$0xff] %v3824_v56  ;;  %v3826_v51 = vpop.permute.xlu0 %1227  ;;  %v1834_v56 = vstv %s2878_s22  ;;  %s3994_s22 = sld [smem:[#allocation2 + $0x90]] }
 0x18b   : > { %4994 = vst [vmem:[#allocation118_spill] sm:$0xff] %v3826_v51  ;;  %1759 = vrot.lane.b32.xlu1 %v1754_v24, %s3091_s15  ;;  %v1787_v24 = vmul.f32 %v3678_v20, %v1786_v38 }
 0x18c   : > { %1757 = vrot.lane.b32.xlu0 %v1753_v62, %s3091_s15  ;;  %v1800_v62 = vstv %s2875_s20  ;;  %s2840_s20 = sld [smem:[#allocation2 + $0x60]] }
 0x18d   : > { %v3832_v42 = vpop.permute.xlu1 %1249  ;;  %v2100_v55 = vstv %s2901_s19  ;;  %s4120_s19 = sld [smem:[#allocation2 + $0x66]] }
 0x18e   : > { %4995 = vst [vmem:[#allocation119_spill] sm:$0xff] %v3832_v42  ;;  %v3834_v26 = vpop.permute.xlu0 %1247 }
 0x18f   : > { %4996 = vst [vmem:[#allocation120_spill] sm:$0xff] %v3834_v26  ;;  %1773 = vrot.lane.b32.xlu1 %v1768_v32, %s3090_s11  ;;  %v1802_v32 = vmul.f32 %v3675_v50, %v1800_v62  ;;  %v1820_v26 = vstv %s2877_s21  ;;  %s2925_s21 = sld [smem:[#allocation2 + $0x7e]] }
 0x190   : > { %1771 = vrot.lane.b32.xlu0 %v1767_v10, %s3090_s11  ;;  %v1801_v10 = vmul.f32 %v3678_v20, %v1800_v62  ;;  %v1432_v36 = vstv %s3994_s22  ;;  %s4141_s22 = sld [smem:[#allocation2 + $0x7f]] }
 0x191   : > { %v3840_v51 = vpop.permute.xlu1 %1263 }
 0x192   : > { %4997 = vst [vmem:[#allocation121_spill] sm:$0xff] %v3840_v51  ;;  %v3842_v58 = vpop.permute.xlu0 %1261  ;;  %v3855_v51 = vld [vmem:[%s3180_s9 + $0x39] sm:$0xff]  ;;  %v1398_v49 = vstv %s2840_s20  ;;  %s4129_s20 = sld [smem:[#allocation2 + $0x7b]] }
 0x193   : > { %4998 = vst [vmem:[#allocation122_spill] sm:$0xff] %v3842_v58  ;;  %1793 = vrot.lane.b32.xlu1 %v1788_v52, %s3091_s15  ;;  %v1822_v52 = vmul.f32 %v3855_v51, %v1820_v26  ;;  %v3859_v58 = vld [vmem:[%s3180_s9 + $0x31] sm:$0xff]  ;;  %v1400_v41 = vmul.f32 %v3779_v1, %v1398_v49 }
 0x194   : > { %1791 = vrot.lane.b32.xlu0 %v1787_v24, %s3091_s15  ;;  %v1821_v24 = vmul.f32 %v3859_v58, %v1820_v26 }
 0x195   : > { %v3848_v42 = vpop.permute.xlu1 %1283  ;;  %v2380_v47 = vstv %s2925_s21  ;;  %s4139_s21 = sld [smem:[#allocation2 + $0x92]] }
 0x196   : > { %4999 = vst [vmem:[#allocation123_spill] sm:$0xff] %v3848_v42  ;;  %v3850_v38 = vpop.permute.xlu0 %1281 }
 0x197   : > { %5000 = vst [vmem:[#allocation124_spill] sm:$0xff] %v3850_v38  ;;  %1807 = vrot.lane.b32.xlu1 %v1802_v32, %s3090_s11  ;;  %v1836_v32 = vmul.f32 %v3855_v51, %v1834_v56  ;;  %v1964_v38 = vstv %s2889_s23  ;;  %s4000_s23 = sld [smem:[#allocation2 + $0x8a]] }
 0x198   : > { %1805 = vrot.lane.b32.xlu0 %v1801_v10, %s3090_s11  ;;  %v1835_v10 = vmul.f32 %v3859_v58, %v1834_v56  ;;  %v1966_v26 = vmul.f32 %v3779_v1, %v1964_v38 }
 0x199   : > { %v3862_v62 = vpop.permute.xlu1 %1297 }
 0x19a   : > { %5001 = vst [vmem:[#allocation125_spill] sm:$0xff] %v3862_v62  ;;  %v3864_v44 = vpop.permute.xlu0 %1295 }
 0x19b   : > { %5002 = vst [vmem:[#allocation126_spill] sm:$0xff] %v3864_v44  ;;  %1827 = vrot.lane.b32.xlu1 %v1822_v52, %s3091_s15  ;;  %v1965_v52 = vmul.f32 %v3783_v34, %v1964_v38  ;;  %v2244_v44 = vstv %s2913_s24  ;;  %s4010_s24 = sld [smem:[#allocation2 + $0x64]] }
 0x19c   : > { %1825 = vrot.lane.b32.xlu0 %v1821_v24, %s3091_s15  ;;  %v2246_v56 = vmul.f32 %v3779_v1, %v2244_v44 }
 0x19d   : > { %v3870_v42 = vpop.permute.xlu1 %1317  ;;  %v2114_v35 = vstv %s4000_s23  ;;  %s4161_s23 = sld [smem:[#allocation2 + $0x87]] }
 0x19e   : > { %5003 = vst [vmem:[#allocation127_spill] sm:$0xff] %v3870_v42  ;;  %v3872_v48 = vpop.permute.xlu0 %1315  ;;  %v2116_v22 = vmul.f32 %v3855_v51, %v2114_v35  ;;  %v2115_v21 = vmul.f32 %v3859_v58, %v2114_v35 }
 0x19f   : > { %5004 = vst [vmem:[#allocation128_spill] sm:$0xff] %v3872_v48  ;;  %1841 = vrot.lane.b32.xlu1 %v1836_v32, %s3090_s11  ;;  %v2245_v32 = vmul.f32 %v3783_v34, %v2244_v44  ;;  %v1978_v48 = vstv %s2890_s25  ;;  %s4012_s25 = sld [smem:[#allocation2 + $0x8e]] }
 0x1a0   : > { %1839 = vrot.lane.b32.xlu0 %v1835_v10, %s3090_s11  ;;  %v1980_v38 = vmul.f32 %v3779_v1, %v1978_v48 }
 0x1a1   : > { %v3878_v24 = vpop.permute.xlu1 %1331 }
 0x1a2   : > { %5005 = vst [vmem:[#allocation129_spill] sm:$0xff] %v3878_v24  ;;  %v3880_v62 = vpop.permute.xlu0 %1329 }
 0x1a3   : > { %5006 = vst [vmem:[#allocation130_spill] sm:$0xff] %v3880_v62  ;;  %1971 = vrot.lane.b32.xlu1 %v1966_v26, %s3091_s15  ;;  %v1979_v26 = vmul.f32 %v3783_v34, %v1978_v48  ;;  %v2258_v62 = vstv %s2914_s26  ;;  %s4025_s26 = sld [smem:[#allocation2 + $0xa6]] }
 0x1a4   : > { %1969 = vrot.lane.b32.xlu0 %v1965_v52, %s3091_s15  ;;  %v2260_v44 = vmul.f32 %v3779_v1, %v2258_v62 }
 0x1a5   : > { %v3886_v10 = vpop.permute.xlu1 %1351 }
 0x1a6   : > { %5007 = vst [vmem:[#allocation131_spill] sm:$0xff] %v3886_v10  ;;  %v3888_v42 = vpop.permute.xlu0 %1349 }
 0x1a7   : > { %5008 = vst [vmem:[#allocation132_spill] sm:$0xff] %v3888_v42  ;;  %2251 = vrot.lane.b32.xlu1 %v2246_v56, %s3091_s15  ;;  %v2259_v56 = vmul.f32 %v3783_v34, %v2258_v62  ;;  %v1998_v42 = vstv %s2892_s27  ;;  %s4028_s27 = sld [smem:[#allocation2 + $0x94]] }
 0x1a8   : > { %2249 = vrot.lane.b32.xlu0 %v2245_v32, %s3091_s15  ;;  %v2000_v48 = vmul.f32 %v3637_v5, %v1998_v42 }
 0x1a9   : > { %v3894_v52 = vpop.permute.xlu1 %1365 }
 0x1aa   : > { %5009 = vst [vmem:[#allocation133_spill] sm:$0xff] %v3894_v52  ;;  %v3896_v24 = vpop.permute.xlu0 %1363 }
 0x1ab   : > { %5010 = vst [vmem:[#allocation134_spill] sm:$0xff] %v3896_v24  ;;  %1985 = vrot.lane.b32.xlu1 %v1980_v38, %s3090_s11  ;;  %v1999_v38 = vmul.f32 %v3640_v53, %v1998_v42  ;;  %v2278_v24 = vstv %s2916_s28  ;;  %v2014_v42 = vmul.f32 %v3637_v5, %v2012_v19  ;;  %s4037_s28 = sld [smem:[#allocation2 + $0x61]] }
 0x1ac   : > { %1983 = vrot.lane.b32.xlu0 %v1979_v26, %s3090_s11  ;;  %v2280_v62 = vmul.f32 %v3637_v5, %v2278_v24 }
 0x1ad   : > { %v3902_v32 = vpop.permute.xlu1 %1411  ;;  %v1712_v14 = vstv %s4028_s27  ;;  %s4182_s27 = sld [smem:[#allocation2 + $0x6c]] }
 0x1ae   : > { %v3904_v10 = vpop.permute.xlu0 %1409 }
 0x1af   : > { %2265 = vrot.lane.b32.xlu1 %v2260_v44, %s3090_s11  ;;  %v2279_v44 = vmul.f32 %v3640_v53, %v2278_v24  ;;  %v2294_v24 = vmul.f32 %v3637_v5, %v2292_v16 }
 0x1b0   : > { %2263 = vrot.lane.b32.xlu0 %v2259_v56, %s3090_s11 }
 0x1b1   : > { %v3910_v26 = vpop.permute.xlu1 %1425 }
 0x1b2   : > { %v3912_v52 = vpop.permute.xlu0 %1423 }
 0x1b3   : > { %2005 = vrot.lane.b32.xlu1 %v2000_v48, %s3091_s15  ;;  %v2013_v48 = vmul.f32 %v3640_v53, %v2012_v19  ;;  %v2034_v19 = vmul.f32 %v3817_v40, %v2032_v30 }
 0x1b4   : > { %2003 = vrot.lane.b32.xlu0 %v1999_v38, %s3091_s15 }
 0x1b5   : > { %v3918_v56 = vpop.permute.xlu1 %1445 }
 0x1b6   : > { %v3920_v18 = vpop.permute.xlu0 %1443 }
 0x1b7   : > { %2285 = vrot.lane.b32.xlu1 %v2280_v62, %s3091_s15  ;;  %v2293_v62 = vmul.f32 %v3640_v53, %v2292_v16  ;;  %v2314_v16 = vmul.f32 %v3817_v40, %v2312_v11 }
 0x1b8   : > { %2283 = vrot.lane.b32.xlu0 %v2279_v44, %s3091_s15 }
 0x1b9   : > { %v3926_v38 = vpop.permute.xlu1 %1459 }
 0x1ba   : > { %v3928_v31 = vpop.permute.xlu0 %1457 }
 0x1bb   : > { %2019 = vrot.lane.b32.xlu1 %v2014_v42, %s3090_s11  ;;  %v2033_v42 = vmul.f32 %v3821_v6, %v2032_v30  ;;  %v2048_v30 = vmul.f32 %v3817_v40, %v2046_v57 }
 0x1bc   : > { %2017 = vrot.lane.b32.xlu0 %v2013_v48, %s3090_s11 }
 0x1bd   : > { %v3934_v44 = vpop.permute.xlu1 %1479 }
 0x1be   : > { %v3936_v17 = vpop.permute.xlu0 %1477 }
 0x1bf   : > { %2299 = vrot.lane.b32.xlu1 %v2294_v24, %s3090_s11  ;;  %v2313_v24 = vmul.f32 %v3821_v6, %v2312_v11  ;;  %v2328_v11 = vmul.f32 %v3817_v40, %v2326_v45 }
 0x1c0   : > { %2297 = vrot.lane.b32.xlu0 %v2293_v62, %s3090_s11 }
 0x1c1   : > { %v3942_v48 = vpop.permute.xlu1 %1493 }
 0x1c2   : > { %v3944_v61 = vpop.permute.xlu0 %1491 }
 0x1c3   : > { %2039 = vrot.lane.b32.xlu1 %v2034_v19, %s3091_s15  ;;  %v2047_v19 = vmul.f32 %v3821_v6, %v2046_v57  ;;  %v2068_v57 = vmul.f32 %v3675_v50, %v2066_v33 }
 0x1c4   : > { %2037 = vrot.lane.b32.xlu0 %v2033_v42, %s3091_s15 }
 0x1c5   : > { %v3950_v62 = vpop.permute.xlu1 %1513 }
 0x1c6   : > { %v3952_v46 = vpop.permute.xlu0 %1511 }
 0x1c7   : > { %2319 = vrot.lane.b32.xlu1 %v2314_v16, %s3091_s15  ;;  %v2327_v16 = vmul.f32 %v3821_v6, %v2326_v45  ;;  %v2348_v45 = vmul.f32 %v3675_v50, %v2346_v23 }
 0x1c8   : > { %2317 = vrot.lane.b32.xlu0 %v2313_v24, %s3091_s15 }
 0x1c9   : > { %v3958_v42 = vpop.permute.xlu1 %1527 }
 0x1ca   : > { %v3960_v37 = vpop.permute.xlu0 %1525 }
 0x1cb   : > { %2053 = vrot.lane.b32.xlu1 %v2048_v30, %s3090_s11  ;;  %v2067_v30 = vmul.f32 %v3678_v20, %v2066_v33  ;;  %v2082_v33 = vmul.f32 %v3675_v50, %v2080_v12 }
 0x1cc   : > { %2051 = vrot.lane.b32.xlu0 %v2047_v19, %s3090_s11 }
 0x1cd   : > { %v3966_v24 = vpop.permute.xlu1 %1547 }
 0x1ce   : > { %v3968_v25 = vpop.permute.xlu0 %1545 }
 0x1cf   : > { %2333 = vrot.lane.b32.xlu1 %v2328_v11, %s3090_s11  ;;  %v2347_v11 = vmul.f32 %v3678_v20, %v2346_v23 }
 0x1d0   : > { %2331 = vrot.lane.b32.xlu0 %v2327_v16, %s3090_s11 }
 0x1d1   : > { %v3974_v19 = vpop.permute.xlu1 %1561 }
 0x1d2   : > { %v3976_v13 = vpop.permute.xlu0 %1559 }
 0x1d3   : > { %2073 = vrot.lane.b32.xlu1 %v2068_v57, %s3091_s15  ;;  %v2081_v57 = vmul.f32 %v3678_v20, %v2080_v12 }
 0x1d4   : > { %2071 = vrot.lane.b32.xlu0 %v2067_v30, %s3091_s15  ;;  %v2360_v30 = vstv %s2923_s18  ;;  %s4116_s18 = sld [smem:[#allocation2 + $0x77]] }
 0x1d5   : > { %v3982_v16 = vpop.permute.xlu1 %1581 }
 0x1d6   : > { %v3984_v4 = vpop.permute.xlu0 %1579 }
 0x1d7   : > { %2353 = vrot.lane.b32.xlu1 %v2348_v45, %s3091_s15  ;;  %v2362_v45 = vmul.f32 %v3675_v50, %v2360_v30 }
 0x1d8   : > { %2351 = vrot.lane.b32.xlu0 %v2347_v11, %s3091_s15  ;;  %v2361_v11 = vmul.f32 %v3678_v20, %v2360_v30 }
 0x1d9   : > { %v3990_v63 = vpop.permute.xlu1 %1595 }
 0x1da   : > { %v3992_v23 = vpop.permute.xlu0 %1593 }
 0x1db   : > { %2087 = vrot.lane.b32.xlu1 %v2082_v33, %s3090_s11  ;;  %v2102_v33 = vmul.f32 %v3855_v51, %v2100_v55 }
 0x1dc   : > { %2085 = vrot.lane.b32.xlu0 %v2081_v57, %s3090_s11  ;;  %v2101_v57 = vmul.f32 %v3859_v58, %v2100_v55  ;;  %v2382_v55 = vmul.f32 %v3855_v51, %v2380_v47 }
 0x1dd   : > { %v4002_v12 = vpop.permute.xlu1 %1615 }
 0x1de   : > { %v4004_v54 = vpop.permute.xlu0 %1613 }
 0x1df   : > { %2367 = vrot.lane.b32.xlu1 %v2362_v45, %s3090_s11  ;;  %v1399_v45 = vmul.f32 %v3783_v34, %v1398_v49  ;;  %v1416_v49 = vadd.f32 %v3902_v32, %v1400_v41  ;;  %v1678_v32 = vstv %s4010_s24  ;;  %s4169_s24 = sld [smem:[#allocation2 + $0x68]] }
 0x1e0   : > { %2365 = vrot.lane.b32.xlu0 %v2361_v11, %s3090_s11  ;;  %v2381_v11 = vmul.f32 %v3859_v58, %v2380_v47  ;;  %v1433_v47 = vmul.f32 %v3640_v53, %v1432_v36  ;;  %v1680_v35 = vmul.f32 %v3779_v1, %v1678_v32 }
 0x1e1   : > { %v4014_v30 = vpop.permute.xlu1 %1629  ;;  %v1430_v41 = vadd.f32 %v3910_v26, %v1416_v49  ;;  %v1854_v26 = vstv %s4025_s26  ;;  %s4175_s26 = sld [smem:[#allocation2 + $0x63]] }
 0x1e2   : > { %v4016_v43 = vpop.permute.xlu0 %1627  ;;  %v1856_v7 = vmul.f32 %v3713_v39, %v1854_v26 }
 0x1e3   : > { %2107 = vrot.lane.b32.xlu1 %v2102_v33, %s3091_s15  ;;  %v1415_v33 = vadd.f32 %v3904_v10, %v1399_v45  ;;  %v2394_v45 = vstv %s4012_s25  ;;  %s4171_s25 = sld [smem:[#allocation2 + $0x8b]] }
 0x1e4   : > { %2105 = vrot.lane.b32.xlu0 %v2101_v57, %s3091_s15  ;;  %v1434_v57 = vmul.f32 %v3637_v5, %v1432_v36 }
 0x1e5   : > { %v4030_v29 = vpop.permute.xlu1 %1649  ;;  %v1429_v10 = vadd.f32 %v3912_v52, %v1415_v33  ;;  %v1679_v33 = vmul.f32 %v3783_v34, %v1678_v32 }
 0x1e6   : > { %v4032_v28 = vpop.permute.xlu0 %1647  ;;  %v1436_v49 = vadd.f32 %v1434_v57, %v1430_v41  ;;  %v1855_v57 = vmul.f32 %v3716_v27, %v1854_v26  ;;  %v1713_v41 = vmul.f32 %v3640_v53, %v1712_v14 }
 0x1e7   : > { %2387 = vrot.lane.b32.xlu1 %v2382_v55, %s3091_s15  ;;  %v2396_v55 = vmul.f32 %v3855_v51, %v2394_v45  ;;  %v1435_v52 = vadd.f32 %v1433_v47, %v1429_v10  ;;  %v1714_v47 = vmul.f32 %v3637_v5, %v1712_v14  ;;  %v2134_v10 = vstv %s4044_s29  ;;  %s4200_s29 = sld [smem:[#allocation2 + $0xa7]] }
 0x1e8   : > { %2385 = vrot.lane.b32.xlu0 %v2381_v11, %s3091_s15  ;;  %v2395_v11 = vmul.f32 %v3859_v58, %v2394_v45  ;;  %v1450_v32 = vadd.f32 %v3918_v56, %v1436_v49 }
 0x1e9   : > { %v4050_v15 = vpop.permute.xlu1 %1663  ;;  %v1449_v45 = vadd.f32 %v3920_v18, %v1435_v52  ;;  %v2135_v18 = vmul.f32 %v3716_v27, %v2134_v10 }
 0x1ea   : > { %v4052_v36 = vpop.permute.xlu0 %1661  ;;  %v1464_v5 = vadd.f32 %v3926_v38, %v1450_v32  ;;  %v2414_v38 = vstv %s4062_s30  ;;  %v1868_v32 = vstv %s4078_s6  ;;  %s4202_s30 = sld [smem:[#allocation2 + $0x98]]  ;;  %s4219_s6 = sld [smem:[#allocation2 + $0xab]] }
 0x1eb   : > { %2121 = vrot.lane.b32.xlu1 %v2116_v22, %s3090_s11  ;;  %v1463_v14 = vadd.f32 %v3928_v31, %v1449_v45  ;;  %v1746_v31 = vstv %s4064_s4  ;;  %s4204_s4 = sld [smem:[#allocation2 + $0x93]] }
 0x1ec   : > { %2119 = vrot.lane.b32.xlu0 %v2115_v21, %s3090_s11  ;;  %v1466_v21 = vstv %s4037_s28  ;;  %s4188_s28 = sld [smem:[#allocation2 + $0x8f]] }
 0x1ed   : > { %v1692_v22 = vpop.permute.xlu1 %1691  ;;  %v1468_v0 = vmul.f32 %v3817_v40, %v1466_v21 }
 0x1ee   : > { %v1690_v9 = vpop.permute.xlu0 %1689  ;;  %v1696_v59 = vadd.f32 %v1692_v22, %v1680_v35  ;;  %v2416_v22 = vmul.f32 %v3713_v39, %v2414_v38 }
 0x1ef   : > { %2401 = vrot.lane.b32.xlu1 %v2396_v55, %s3090_s11  ;;  %v1695_v60 = vadd.f32 %v1690_v9, %v1679_v33  ;;  %v1467_v55 = vmul.f32 %v3821_v6, %v1466_v21  ;;  %v2136_v9 = vmul.f32 %v3713_v39, %v2134_v10  ;;  %v2415_v21 = vmul.f32 %v3716_v27, %v2414_v38 }
 0x1f0   : > { %2399 = vrot.lane.b32.xlu0 %v2395_v11, %s3090_s11  ;;  %v1747_v10 = vmul.f32 %v3821_v6, %v1746_v31 }
 0x1f1   : > { %v1706_v11 = vpop.permute.xlu1 %1705  ;;  %v1469_v33 = vadd.f32 %v1467_v55, %v1463_v14 }
 0x1f2   : > { %v1704_v26 = vpop.permute.xlu0 %1703  ;;  %v1710_v53 = vadd.f32 %v1706_v11, %v1696_v59 }
 0x1f3   : > { %v1709_v56 = vadd.f32 %v1704_v26, %v1695_v60  ;;  %1861 = vrot.lane.b32.xlu1 %v1856_v7, %s3091_s15  ;;  %v1470_v60 = vadd.f32 %v1468_v0, %v1464_v5  ;;  %v1500_v7 = vstv %s4067_s5  ;;  %v1483_v5 = vadd.f32 %v3936_v17, %v1469_v33  ;;  %s4206_s5 = sld [smem:[#allocation2 + $0x9c]] }
 0x1f4   : > { %1859 = vrot.lane.b32.xlu0 %v1855_v57, %s3091_s15  ;;  %v1716_v35 = vadd.f32 %v1714_v47, %v1710_v53  ;;  %v1748_v57 = vmul.f32 %v3817_v40, %v1746_v31  ;;  %v1502_v0 = vmul.f32 %v3675_v50, %v1500_v7  ;;  %v1501_v45 = vmul.f32 %v3678_v20, %v1500_v7 }
 0x1f5   : > { %v1715_v49 = vadd.f32 %v1713_v41, %v1709_v56  ;;  %v1726_v59 = vpop.permute.xlu1 %1725  ;;  %v1484_v26 = vadd.f32 %v3934_v44, %v1470_v60  ;;  %v1870_v56 = vmul.f32 %v3713_v39, %v1868_v32  ;;  %v1497_v17 = vadd.f32 %v3944_v61, %v1483_v5 }
 0x1f6   : > { %v1724_v52 = vpop.permute.xlu0 %1723  ;;  %v1730_v47 = vadd.f32 %v1726_v59, %v1716_v35  ;;  %v1780_v35 = vstv %s4090_s8  ;;  %s4242_s8 = sld [smem:[#allocation2 + $0xb7]] }
 0x1f7   : > { %2141 = vrot.lane.b32.xlu1 %v2136_v9, %s3091_s15  ;;  %v1729_v41 = vadd.f32 %v1724_v52, %v1715_v49  ;;  %v1869_v9 = vmul.f32 %v3716_v27, %v1868_v32  ;;  %v1498_v44 = vadd.f32 %v3942_v48, %v1484_v26  ;;  %v1782_v61 = vmul.f32 %v3675_v50, %v1780_v35 }
 0x1f8   : > { %2139 = vrot.lane.b32.xlu0 %v2135_v18, %s3091_s15  ;;  %v2148_v18 = vstv %s4088_s7  ;;  %s4231_s7 = sld [smem:[#allocation2 + $0xaf]] }
 0x1f9   : > { %v1740_v55 = vpop.permute.xlu1 %1739  ;;  %v2150_v33 = vmul.f32 %v3713_v39, %v2148_v18  ;;  %v2149_v48 = vmul.f32 %v3716_v27, %v2148_v18  ;;  %v1504_v7 = vadd.f32 %v1502_v0, %v1498_v44  ;;  %v1888_v0 = vstv %s4116_s18  ;;  %s4272_s18 = sld [smem:[#allocation2 + $0xbf]] }
 0x1fa   : > { %v1738_v11 = vpop.permute.xlu0 %1737  ;;  %v1744_v14 = vadd.f32 %v1740_v55, %v1730_v47  ;;  %v1814_v18 = vstv %s4120_s19  ;;  %s525_s19 = sld [smem:[#allocation4]] }
 0x1fb   : > { %v1743_v53 = vadd.f32 %v1738_v11, %v1729_v41  ;;  %2421 = vrot.lane.b32.xlu1 %v2416_v22, %s3091_s15  ;;  %v1503_v22 = vadd.f32 %v1501_v45, %v1497_v17  ;;  %v4151_v17 = vld [vmem:[%s3180_s9 + $0x51] sm:$0xff] }
 0x1fc   : > { %2419 = vrot.lane.b32.xlu0 %v2415_v21, %s3091_s15  ;;  %v1750_v49 = vadd.f32 %v1748_v57, %v1744_v14  ;;  %v1781_v21 = vmul.f32 %v3678_v20, %v1780_v35  ;;  %v2428_v57 = vstv %s4102_s10  ;;  %v1518_v20 = vadd.f32 %v3950_v62, %v1504_v7  ;;  %s4257_s10 = sld [smem:[#allocation2 + $0xbb]] }
 0x1fd   : > { %v1749_v38 = vadd.f32 %v1747_v10, %v1743_v53  ;;  %v1760_v31 = vpop.permute.xlu1 %1759  ;;  %v1534_v10 = vstv %s4108_s17  ;;  %v2430_v11 = vmul.f32 %v3713_v39, %v2428_v57  ;;  %v2429_v50 = vmul.f32 %v3716_v27, %v2428_v57  ;;  %s4259_s17 = sld [smem:[#allocation2 + $0x69]] }
 0x1fe   : > { %v1758_v59 = vpop.permute.xlu0 %1757  ;;  %v1764_v52 = vadd.f32 %v1760_v31, %v1750_v49  ;;  %v1517_v45 = vadd.f32 %v3952_v46, %v1503_v22  ;;  %v1536_v14 = vmul.f32 %v3855_v51, %v1534_v10  ;;  %v1535_v53 = vmul.f32 %v3859_v58, %v1534_v10 }
 0x1ff   : > { %v1763_v60 = vadd.f32 %v1758_v59, %v1749_v38  ;;  %1875 = vrot.lane.b32.xlu1 %v1870_v56, %s3090_s11  ;;  %v1532_v62 = vadd.f32 %v3958_v42, %v1518_v20  ;;  %v1890_v49 = vmul.f32 %v4151_v17, %v1888_v0  ;;  %v4155_v38 = vld [vmem:[%s3180_s9 + $0x49] sm:$0xff]  ;;  %v1816_v59 = vmul.f32 %v3855_v51, %v1814_v18 }
 0x200   : > { %1873 = vrot.lane.b32.xlu0 %v1869_v9, %s3090_s11  ;;  %v1531_v46 = vadd.f32 %v3960_v37, %v1517_v45  ;;  %v1889_v31 = vmul.f32 %v4155_v38, %v1888_v0  ;;  %v1815_v42 = vmul.f32 %v3859_v58, %v1814_v18  ;;  %v2168_v37 = vstv %s4129_s20  ;;  %s4274_s20 = sld [smem:[#allocation2 + $0x6d]] }
 0x201   : > { %v1774_v47 = vpop.permute.xlu1 %1773  ;;  %v2170_v22 = vmul.f32 %v4151_v17, %v2168_v37  ;;  %v2169_v51 = vmul.f32 %v4155_v38, %v2168_v37  ;;  %v1958_v18 = vstv %s4169_s24  ;;  %s2739_s24 = sld [smem:[#allocation2 + $0x1]] }
 0x202   : > { %v1772_v41 = vpop.permute.xlu0 %1771  ;;  %v1778_v32 = vadd.f32 %v1774_v47, %v1764_v52  ;;  %v2448_v47 = vstv %s4141_s22  ;;  %s4314_s22 = sld [smem:[#allocation2]] }
 0x203   : > { %v1777_v55 = vadd.f32 %v1772_v41, %v1763_v60  ;;  %2155 = vrot.lane.b32.xlu1 %v2150_v33, %s3090_s11  ;;  %v1538_v33 = vadd.f32 %v1536_v14, %v1532_v62  ;;  %v2450_v20 = vmul.f32 %v4151_v17, %v2448_v47  ;;  %v2449_v45 = vmul.f32 %v4155_v38, %v2448_v47 }
 0x204   : > { %2153 = vrot.lane.b32.xlu0 %v2149_v48, %s3090_s11  ;;  %v1784_v26 = vadd.f32 %v1782_v61, %v1778_v32  ;;  %v1537_v48 = vadd.f32 %v1535_v53, %v1531_v46  ;;  %v2182_v62 = vstv %s4171_s25  ;;  %v1922_v47 = vstv %s4200_s29  ;;  %s2742_s25 = sld [smem:[#allocation2 + $0x31]]  ;;  %s2900_s29 = sld [smem:[#allocation2 + $0x6a]] }
 0x205   : > { %v1783_v5 = vadd.f32 %v1781_v21, %v1777_v55  ;;  %v1794_v56 = vpop.permute.xlu1 %1793  ;;  %v1568_v21 = vstv %s4139_s21  ;;  %v1552_v32 = vadd.f32 %v3966_v24, %v1538_v33  ;;  %v2462_v33 = vstv %s4188_s28  ;;  %s2921_s21 = sld [smem:[#allocation2 + $0x9d]]  ;;  %s2751_s28 = sld [smem:[#allocation2 + $0x3]] }
 0x206   : > { %v1792_v9 = vpop.permute.xlu0 %1791  ;;  %v1798_v35 = vadd.f32 %v1794_v56, %v1784_v26  ;;  %v1551_v55 = vadd.f32 %v3968_v25, %v1537_v48  ;;  %v1570_v0 = vmul.f32 %v3713_v39, %v1568_v21  ;;  %v1569_v26 = vmul.f32 %v3716_v27, %v1568_v21 }
 0x207   : > { %v1797_v44 = vadd.f32 %v1792_v9, %v1783_v5  ;;  %2435 = vrot.lane.b32.xlu1 %v2430_v11, %s3090_s11  ;;  %v1566_v24 = vadd.f32 %v3974_v19, %v1552_v32  ;;  %v1902_v5 = vstv %s4161_s23  ;;  %s3092_s23 = smov 32  }
 0x208   : > { %2433 = vrot.lane.b32.xlu0 %v2429_v50, %s3090_s11  ;;  %v1565_v25 = vadd.f32 %v3976_v13, %v1551_v55  ;;  %v1904_v19 = vmul.f32 %v4151_v17, %v1902_v5  ;;  %v1903_v13 = vmul.f32 %v4155_v38, %v1902_v5 }
 0x209   : > { %v1808_v52 = vpop.permute.xlu1 %1807  ;;  %v1572_v27 = vadd.f32 %v1570_v0, %v1566_v24  ;;  %v3002_v24 = vld [vmem:[%s3180_s9 + $0xa] sm:$0xff] }
 0x20a   : > { %v1806_v60 = vpop.permute.xlu0 %1805  ;;  %v1812_v61 = vadd.f32 %v1808_v52, %v1798_v35  ;;  %v1571_v9 = vadd.f32 %v1569_v26, %v1565_v25 }
 0x20b   : > { %v1811_v7 = vadd.f32 %v1806_v60, %v1797_v44  ;;  %1895 = vrot.lane.b32.xlu1 %v1890_v49, %s3091_s15  ;;  %v1602_v44 = vstv %s4175_s26  ;;  %v1960_v49 = vmul.f32 %v3779_v1, %v1958_v18  ;;  %v1586_v37 = vadd.f32 %v3982_v16, %v1572_v27  ;;  %s2745_s26 = sld [smem:[#allocation2 + $0x2]] }
 0x20c   : > { %1893 = vrot.lane.b32.xlu0 %v1889_v31, %s3091_s15  ;;  %v1818_v58 = vadd.f32 %v1816_v59, %v1812_v61  ;;  %v2238_v31 = vstv %s4182_s27  ;;  %v2184_v59 = vmul.f32 %v4151_v17, %v2182_v62  ;;  %v1585_v52 = vadd.f32 %v3984_v4, %v1571_v9  ;;  %s2748_s27 = sld [smem:[#allocation2 + $0x32]] }
 0x20d   : > { %v1817_v57 = vadd.f32 %v1815_v42, %v1811_v7  ;;  %v1828_v41 = vpop.permute.xlu1 %1827  ;;  %v2183_v42 = vmul.f32 %v4155_v38, %v2182_v62  ;;  %v1959_v60 = vmul.f32 %v3783_v34, %v1958_v18  ;;  %v1604_v48 = vmul.f32 %v4151_v17, %v1602_v44 }
 0x20e   : > { %v1826_v10 = vpop.permute.xlu0 %1825  ;;  %v1832_v11 = vadd.f32 %v1828_v41, %v1818_v58  ;;  %v1603_v16 = vmul.f32 %v4155_v38, %v1602_v44  ;;  %v2240_v4 = vmul.f32 %v3779_v1, %v2238_v31  ;;  %v2239_v21 = vmul.f32 %v3783_v34, %v2238_v31 }
 0x20f   : > { %v1831_v50 = vadd.f32 %v1826_v10, %v1817_v57  ;;  %2175 = vrot.lane.b32.xlu1 %v2170_v22, %s3091_s15  ;;  %v1600_v22 = vadd.f32 %v3990_v63, %v1586_v37  ;;  %v2464_v58 = vmul.f32 %v4151_v17, %v2462_v33  ;;  %v2463_v57 = vmul.f32 %v4155_v38, %v2462_v33 }
 0x210   : > { %2173 = vrot.lane.b32.xlu0 %v2169_v51, %s3091_s15  ;;  %v1599_v51 = vadd.f32 %v3992_v23, %v1585_v52  ;;  %v1992_v41 = vstv %s4202_s30  ;;  %v1636_v10 = vstv %s4204_s4  ;;  %v2272_v34 = vstv %s4206_s5  ;;  %s2924_s30 = sld [smem:[#allocation2 + $0x6e]]  ;;  %s4442_s5 = sld [smem:[#allocation2 + $0x33]] }
 0x211   : > { %v1842_v39 = vpop.permute.xlu1 %1841  ;;  %v1606_v55 = vadd.f32 %v1604_v48, %v1600_v22  ;;  %v1994_v25 = vmul.f32 %v3002_v24, %v1992_v41  ;;  %v1637_v27 = vmul.f32 %v3754_v8, %v1636_v10  ;;  %v2274_v62 = vmul.f32 %v3002_v24, %v2272_v34  ;;  %s4440_s4 = sld [smem:[#allocation2 + $0x96]] }
 0x212   : > { %v1840_v14 = vpop.permute.xlu0 %1839  ;;  %v4190_v53 = vadd.f32 %v1842_v39, %v1832_v11  ;;  %v1605_v11 = vadd.f32 %v1603_v16, %v1599_v51  ;;  %v3003_v39 = vld [vmem:[%s3180_s9 + $0x2] sm:$0xff]  ;;  %v2482_v37 = vstv %s4231_s7  ;;  %v1936_v22 = vstv %s4242_s8  ;;  %s4461_s7 = sld [smem:[#allocation2 + $0x9e]]  ;;  %s4463_s8 = sld [smem:[#allocation2 + $0x67]] }
 0x213   : > { %v4192_v56 = vadd.f32 %v1840_v14, %v1831_v50  ;;  %2455 = vrot.lane.b32.xlu1 %v2450_v20, %s3091_s15  ;;  %v1924_v20 = vmul.f32 %v3751_v2, %v1922_v47  ;;  %v1993_v14 = vmul.f32 %v3003_v39, %v1992_v41 }
 0x214   : > { %2453 = vrot.lane.b32.xlu0 %v2449_v45, %s3091_s15  ;;  %v1923_v45 = vmul.f32 %v3754_v8, %v1922_v47 }
 0x215   : > { %v1972_v46 = vpop.permute.xlu1 %1971 }
 0x216   : > { %v1970_v35 = vpop.permute.xlu0 %1969  ;;  %v1976_v63 = vadd.f32 %v1972_v46, %v1960_v49  ;;  %v1620_v46 = vadd.f32 %v4002_v12, %v1606_v55 }
 0x217   : > { %1909 = vrot.lane.b32.xlu1 %v1904_v19, %s3090_s11  ;;  %v1975_v23 = vadd.f32 %v1970_v35, %v1959_v60  ;;  %v2202_v19 = vstv %s4219_s6  ;;  %v1619_v35 = vadd.f32 %v4004_v54, %v1605_v11  ;;  %v2026_v11 = vstv %s4259_s17  ;;  %s4450_s6 = sld [smem:[#allocation2 + $0x9a]]  ;;  %s4494_s17 = sld [smem:[#allocation2 + $0x6f]] }
 0x218   : > { %1907 = vrot.lane.b32.xlu0 %v1903_v13, %s3090_s11  ;;  %v1638_v13 = vmul.f32 %v3751_v2, %v1636_v10  ;;  %v2204_v31 = vmul.f32 %v3751_v2, %v2202_v19  ;;  %v1634_v52 = vadd.f32 %v4014_v30, %v1620_v46 }
 0x219   : > { %v2252_v61 = vpop.permute.xlu1 %2251  ;;  %v1633_v12 = vadd.f32 %v4016_v43, %v1619_v35  ;;  %v4307_v35 = vld [vmem:[%s3180_s9 + $0x19] sm:$0xff] }
 0x21a   : > { %v2250_v7 = vpop.permute.xlu0 %2249  ;;  %v2256_v26 = vadd.f32 %v2252_v61, %v2240_v4  ;;  %v1640_v51 = vadd.f32 %v1638_v13, %v1634_v52  ;;  %5012 = vst [vmem:[#allocation136_spill] sm:$0xff] %v4307_v35 }
 0x21b   : > { %2189 = vrot.lane.b32.xlu1 %v2184_v59, %s3090_s11  ;;  %v2255_v5 = vadd.f32 %v2250_v7, %v2239_v21  ;;  %v2203_v59 = vmul.f32 %v3754_v8, %v2202_v19  ;;  %v4264_v8 = vld [vmem:[%s3180_s9 + $0x52] sm:$0xff]  ;;  %v4268_v7 = vld [vmem:[%s3180_s9 + $0x4a] sm:$0xff]  ;;  %v1639_v16 = vadd.f32 %v1637_v27, %v1633_v12 }
 0x21c   : > { %2187 = vrot.lane.b32.xlu0 %v2183_v42, %s3090_s11  ;;  %v2273_v42 = vmul.f32 %v3003_v39, %v2272_v34  ;;  %v2484_v30 = vmul.f32 %v4264_v8, %v2482_v37  ;;  %v2483_v43 = vmul.f32 %v4268_v7, %v2482_v37  ;;  %v1938_v47 = vmul.f32 %v4264_v8, %v1936_v22 }
 0x21d   : > { %v1986_v32 = vpop.permute.xlu1 %1985  ;;  %v1937_v41 = vmul.f32 %v4268_v7, %v1936_v22  ;;  %v1654_v10 = vadd.f32 %v4030_v29, %v1640_v51  ;;  %v2306_v39 = vstv %s4274_s20  ;;  %s4533_s20 = sld [smem:[#allocation2 + $0x9f]] }
 0x21e   : > { %v1984_v1 = vpop.permute.xlu0 %1983  ;;  %v1990_v50 = vadd.f32 %v1986_v32, %v1976_v63  ;;  %v1653_v32 = vadd.f32 %v4032_v28, %v1639_v16  ;;  %v2028_v28 = vmul.f32 %v3817_v40, %v2026_v11 }
 0x21f   : > { %v1989_v0 = vadd.f32 %v1984_v1, %v1975_v23  ;;  %2469 = vrot.lane.b32.xlu1 %v2464_v58, %s3090_s11  ;;  %v2216_v1 = vstv %s4257_s10  ;;  %s4477_s10 = sld [smem:[#allocation2 + $0x6b]] }
 0x220   : > { %2467 = vrot.lane.b32.xlu0 %v2463_v57, %s3090_s11  ;;  %v1996_v54 = vadd.f32 %v1994_v25, %v1990_v50  ;;  %v1668_v50 = vadd.f32 %v4050_v15, %v1654_v10  ;;  %v2218_v29 = vmul.f32 %v4264_v8, %v2216_v1  ;;  %v2217_v24 = vmul.f32 %v4268_v7, %v2216_v1 }
 0x221   : > { %v2266_v9 = vpop.permute.xlu1 %2265  ;;  %v1995_v60 = vadd.f32 %v1993_v14, %v1989_v0  ;;  %v1667_v0 = vadd.f32 %v4052_v36, %v1653_v32  ;;  %v2027_v25 = vmul.f32 %v3821_v6, %v2026_v11  ;;  %v254_v1 = vstv %s4314_s22  ;;  %s4570_s22 = sld [smem:[#allocation4 + $0x3]] }
 0x222   : > { %v2264_v18 = vpop.permute.xlu0 %2263  ;;  %v2270_v44 = vadd.f32 %v2266_v9, %v2256_v26  ;;  %v2496_v26 = vstv %s4272_s18  ;;  %s4503_s18 = sld [smem:[#allocation2 + $0x97]] }
 0x223   : > { %v2269_v49 = vadd.f32 %v2264_v18, %v2255_v5  ;;  %1929 = vrot.lane.b32.xlu1 %v1924_v20, %s3091_s15  ;;  %v4293_v5 = vstv %s525_s19  ;;  %v2498_v40 = vmul.f32 %v4264_v8, %v2496_v26  ;;  %v2497_v6 = vmul.f32 %v4268_v7, %v2496_v26  ;;  %s4523_s19 = sld [smem:[#allocation2 + $0x9b]] }
 0x224   : > { %1927 = vrot.lane.b32.xlu0 %v1923_v45, %s3091_s15  ;;  %v2276_v4 = vadd.f32 %v2274_v62, %v2270_v44  ;;  %v1670_v14 = vadd.f32 %v1668_v50, %v4293_v5  ;;  %v1669_v19 = vadd.f32 %v1667_v0, %v4293_v5  ;;  %v4303_v62 = vld [vmem:[%s3180_s9 + $0x21] sm:$0xff]  ;;  %v2307_v44 = vmul.f32 %v4307_v35, %v2306_v39 }
 0x225   : > { %v2006_v33 = vpop.permute.xlu1 %2005  ;;  %v2275_v21 = vadd.f32 %v2273_v42, %v2269_v49  ;;  %5011 = vst [vmem:[#allocation135_spill] sm:$0xff] %v4303_v62  ;;  %v2308_v46 = vmul.f32 %v4303_v62, %v2306_v39  ;;  %v4325_v0 = vld [vmem:[%s3180_s9 + $0x8] sm:$0xff] }
 0x226   : > { %v2004_v48 = vpop.permute.xlu0 %2003  ;;  %v2010_v2 = vadd.f32 %v2006_v33, %v1996_v54  ;;  %v1674_v37 = vmul.f32 0.01, %v1670_v14  ;;  %v1673_v52 = vmul.f32 0.01, %v1669_v19  ;;  %vm1672_vm0 = vcmp.gt.f32.partialorder %v1670_v14, 0.0 }
 0x227   : > { %v2009_v61 = vadd.f32 %v2004_v48, %v1995_v60  ;;  %2209 = vrot.lane.b32.xlu1 %v2204_v31, %s3091_s15  ;;  %vm1671_vm1 = vcmp.gt.f32.partialorder %v1669_v19, 0.0 }
 0x228   : > { %2207 = vrot.lane.b32.xlu0 %v2203_v59, %s3091_s15 }
 0x229   : > { %v2286_v58 = vpop.permute.xlu1 %2285 }
 0x22a   : > { %v2284_v57 = vpop.permute.xlu0 %2283  ;;  %v2290_v63 = vadd.f32 %v2286_v58, %v2276_v4 }
 0x22b   : > { %v2289_v23 = vadd.f32 %v2284_v57, %v2275_v21  ;;  %2489 = vrot.lane.b32.xlu1 %v2484_v30, %s3091_s15  ;;  %v1675_v30 = vsel %vm1671_vm1, %v1669_v19, %v1673_v52  ;;  %v3008_v21 = vld [vmem:[%s3180_s9 + $0x22] sm:$0xff]  ;;  %v3009_v57 = vld [vmem:[%s3180_s9 + $0x1a] sm:$0xff] }
 0x22c   : > { %2487 = vrot.lane.b32.xlu0 %v2483_v43, %s3091_s15  ;;  %s4310_s15 = sld [smem:[#allocation2 + $0x99]] }
 0x22d   : > { %v2020_v34 = vpop.permute.xlu1 %2019 }
 0x22e   : > { %v2018_v55 = vpop.permute.xlu0 %2017  ;;  %v2024_v20 = vadd.f32 %v2020_v34, %v2010_v2 }
 0x22f   : > { %v2023_v45 = vadd.f32 %v2018_v55, %v2009_v61  ;;  %1943 = vrot.lane.b32.xlu1 %v1938_v47, %s3090_s11  ;;  %v1676_v61 = vsel %vm1672_vm0, %v1670_v14, %v1674_v37 }
 0x230   : > { %1941 = vrot.lane.b32.xlu0 %v1937_v41, %s3090_s11  ;;  %v2030_v9 = vadd.f32 %v2028_v28, %v2024_v20  ;;  %v2340_v41 = vstv %s2921_s21  ;;  %v256_v20 = vmul.f32 %v4325_v0, %v254_v1  ;;  %s4554_s21 = sld [smem:[#allocation4 + $0x2]] }
 0x231   : > { %v2300_v15 = vpop.permute.xlu1 %2299  ;;  %v2029_v18 = vadd.f32 %v2027_v25, %v2023_v45  ;;  %v2342_v11 = vmul.f32 %v3008_v21, %v2340_v41  ;;  %v2341_v50 = vmul.f32 %v3009_v57, %v2340_v41 }
 0x232   : > { %v2298_v36 = vpop.permute.xlu0 %2297  ;;  %v2304_v13 = vadd.f32 %v2300_v15, %v2290_v63  ;;  %v2060_v51 = vstv %s4310_s15  ;;  %v272_v15 = vadd.f32 %v3358_v3, %v256_v20  ;;  %s4552_s15 = sld [smem:[#allocation4 + $0x1]] }
 0x233   : > { %v2303_v27 = vadd.f32 %v2298_v36, %v2289_v23  ;;  %2223 = vrot.lane.b32.xlu1 %v2218_v29, %s3090_s11  ;;  %v2062_v58 = vmul.f32 %v3008_v21, %v2060_v51  ;;  %v2061_v63 = vmul.f32 %v3009_v57, %v2060_v51  ;;  %v5020_v21 = vld [vmem:[#allocation12_spill] sm:$0xff]  ;;  %v5021_v57 = vld [vmem:[#allocation13_spill] sm:$0xff] }
 0x234   : > { %2221 = vrot.lane.b32.xlu0 %v2217_v24, %s3090_s11  ;;  %v2310_v12 = vadd.f32 %v2308_v46, %v2304_v13  ;;  %v4330_v13 = vld [vmem:[%s3180_s9] sm:$0xff] }
 0x235   : > { %v2040_v49 = vpop.permute.xlu1 %2039  ;;  %v2309_v54 = vadd.f32 %v2307_v44, %v2303_v27  ;;  %5013 = vst [vmem:[#allocation137_spill] sm:$0xff] %v4330_v13  ;;  %v255_v27 = vmul.f32 %v4330_v13, %v254_v1 }
 0x236   : > { %v2038_v31 = vpop.permute.xlu0 %2037  ;;  %v2044_v59 = vadd.f32 %v2040_v49, %v2030_v9 }
 0x237   : > { %v2043_v42 = vadd.f32 %v2038_v31, %v2029_v18  ;;  %2503 = vrot.lane.b32.xlu1 %v2498_v40, %s3090_s11  ;;  %v4336_v18 = vld [vmem:[%s3180_s9 + $0x9] sm:$0xff] }
 0x238   : > { %2501 = vrot.lane.b32.xlu0 %v2497_v6, %s3090_s11  ;;  %s4322_s11 = sld [smem:[#allocation2 + $0x30]]  ;;  %v5014_v6 = vld [vmem:[#allocation10_spill] sm:$0xff] }
 0x239   : > { %v2320_v60 = vpop.permute.xlu1 %2319  ;;  %v286_v9 = vadd.f32 %v5014_v6, %v272_v15  ;;  %5015 = vst [vmem:[#allocation10_spill] sm:$0xff] %v4336_v18  ;;  %v5026_v15 = vld [vmem:[#allocation16_spill] sm:$0xff] }
 0x23a   : > { %v2318_v33 = vpop.permute.xlu0 %2317  ;;  %v2324_v48 = vadd.f32 %v2320_v60, %v2310_v12 }
 0x23b   : > { %v2323_v2 = vadd.f32 %v2318_v33, %v2309_v54  ;;  %2521 = vrot.lane.b32.xlu1 %v1676_v61, %s3092_s23  ;;  %v5017_v33 = vld [vmem:[#allocation8_spill] sm:$0xff] }
 0x23c   : > { %2519 = vrot.lane.b32.xlu0 %v1675_v30, %s3092_s23  ;;  %v5019_v30 = vld [vmem:[#allocation11_spill] sm:$0xff] }
 0x23d   : > { %v2054_v43 = vpop.permute.xlu1 %2053 }
 0x23e   : > { %v2052_v22 = vpop.permute.xlu0 %2051  ;;  %v2058_v16 = vadd.f32 %v2054_v43, %v2044_v59  ;;  %v288_v40 = vstv %s4322_s11  ;;  %v5016_v59 = vld [vmem:[#allocation9_spill] sm:$0xff]  ;;  %s2944_s11 = sshll.u32 %s5169_s12, 6 }
 0x23f   : > { %v2057_v4 = vadd.f32 %v2052_v22, %v2043_v42  ;;  %v290_v46 = vmul.f32 %v4336_v18, %v288_v40  ;;  %v271_v42 = vadd.f32 %v5016_v59, %v255_v27  ;;  %v5028_v27 = vld [vmem:[#allocation18_spill] sm:$0xff]  ;;  %s4600_s12 = scalar_lea.vmem %s4849_s3, %s2944_s11  ;;  %s4742_s11 = sld [smem:[#allocation2 + $0xb]] }
 0x240   : > { %v2064_v34 = vadd.f32 %v2062_v58, %v2058_v16  ;;  %v322_v16 = vstv %s2739_s24  ;;  %s4752_s24 = sld [smem:[#allocation2 + $0xf]] }
 0x241   : > { %v2334_v23 = vpop.permute.xlu1 %2333  ;;  %v2063_v55 = vadd.f32 %v2061_v63, %v2057_v4  ;;  %v292_v37 = vadd.f32 %v290_v46, %v286_v9 }
 0x242   : > { %v2332_v47 = vpop.permute.xlu0 %2331  ;;  %v2338_v10 = vadd.f32 %v2334_v23, %v2324_v48  ;;  %v285_v48 = vadd.f32 %v5017_v33, %v271_v42  ;;  %v4361_v23 = vld [vmem:[%s3180_s9 + $0x20] sm:$0xff] }
 0x243   : > { %v2337_v32 = vadd.f32 %v2332_v47, %v2323_v2  ;;  %v4350_v2 = vld [vmem:[%s3180_s9 + $0x1] sm:$0xff]  ;;  %v306_v43 = vadd.f32 %v5019_v30, %v292_v37  ;;  %5022 = vst [vmem:[#allocation8_spill] sm:$0xff] %v4361_v23  ;;  %v324_v47 = vmul.f32 %v4361_v23, %v322_v16  ;;  %v390_v37 = vstv %s2745_s26  ;;  %s2757_s26 = sld [smem:[#allocation2 + $0x4]] }
 0x244   : > { %v2344_v25 = vadd.f32 %v2342_v11, %v2338_v10  ;;  %5018 = vst [vmem:[#allocation9_spill] sm:$0xff] %v4350_v2  ;;  %v289_v61 = vmul.f32 %v4350_v2, %v288_v40  ;;  %v5030_v33 = vld [vmem:[#allocation20_spill] sm:$0xff] }
 0x245   : > { %v2074_v45 = vpop.permute.xlu1 %2073  ;;  %v2343_v26 = vadd.f32 %v2341_v50, %v2337_v32  ;;  %v320_v63 = vadd.f32 %v5021_v57, %v306_v43  ;;  %v5023_v32 = vld [vmem:[#allocation14_spill] sm:$0xff]  ;;  %v4399_v43 = vld [vmem:[%s3180_s9 + $0x38] sm:$0xff] }
 0x246   : > { %v2072_v29 = vpop.permute.xlu0 %2071  ;;  %v2078_v24 = vadd.f32 %v2074_v45, %v2064_v34  ;;  %v291_v4 = vadd.f32 %v289_v61, %v285_v48  ;;  %v4370_v34 = vld [vmem:[%s3180_s9 + $0x18] sm:$0xff]  ;;  %v5031_v61 = vld [vmem:[#allocation21_spill] sm:$0xff]  ;;  %5032 = vst [vmem:[#allocation12_spill] sm:$0xff] %v4399_v43 }
 0x247   : > { %v2077_v28 = vadd.f32 %v2072_v29, %v2063_v55  ;;  %5024 = vst [vmem:[#allocation11_spill] sm:$0xff] %v4370_v34  ;;  %v323_v55 = vmul.f32 %v4370_v34, %v322_v16  ;;  %v326_v11 = vadd.f32 %v324_v47, %v320_v63  ;;  %v356_v29 = vstv %s2742_s25  ;;  %v4408_v63 = vld [vmem:[%s3180_s9 + $0x30] sm:$0xff]  ;;  %s4758_s25 = sld [smem:[#allocation2 + $0x37]] }
 0x248   : > { %v305_v58 = vadd.f32 %v5020_v21, %v291_v4  ;;  %v357_v6 = vmul.f32 %v4307_v35, %v356_v29  ;;  %v392_v16 = vmul.f32 %v4399_v43, %v390_v37  ;;  %5034 = vst [vmem:[#allocation13_spill] sm:$0xff] %v4408_v63  ;;  %v391_v47 = vmul.f32 %v4408_v63, %v390_v37 }
 0x249   : > { %v2354_v36 = vpop.permute.xlu1 %2353 }
 0x24a   : > { %v2352_v39 = vpop.permute.xlu0 %2351  ;;  %v2358_v14 = vadd.f32 %v2354_v36, %v2344_v25  ;;  %v319_v1 = vadd.f32 %v5023_v32, %v305_v58  ;;  %v5033_v58 = vld [vmem:[#allocation22_spill] sm:$0xff] }
 0x24b   : > { %v2357_v19 = vadd.f32 %v2352_v39, %v2343_v26  ;;  %v5027_v39 = vld [vmem:[#allocation17_spill] sm:$0xff] }
 0x24c   : > { %v325_v45 = vadd.f32 %v323_v55, %v319_v1 }
 0x24d   : > { %v2088_v44 = vpop.permute.xlu1 %2087 }
 0x24e   : > { %v2086_v49 = vpop.permute.xlu0 %2085  ;;  %v4339_v3 = vadd.f32 %v2088_v44, %v2078_v24  ;;  %v5025_v24 = vld [vmem:[#allocation15_spill] sm:$0xff]  ;;  %v339_v36 = vadd.f32 %v5026_v15, %v325_v45  ;;  %v424_v45 = vstv %s2748_s27  ;;  %s2760_s27 = sld [smem:[#allocation2 + $0x34]] }
 0x24f   : > { %v4341_v31 = vadd.f32 %v2086_v49, %v2077_v28  ;;  %v340_v28 = vadd.f32 %v5025_v24, %v326_v11 }
 0x250   : > { %v353_v40 = vadd.f32 %v5028_v27, %v339_v36  ;;  %v5036_v36 = vld [vmem:[#allocation24_spill] sm:$0xff] }
 0x251   : > { %v2368_v52 = vpop.permute.xlu1 %2367  ;;  %v4423_v27 = vld [vmem:[%s3180_s9 + $0x39] sm:$0xff] }
 0x252   : > { %v2366_v12 = vpop.permute.xlu0 %2365  ;;  %v4344_v54 = vadd.f32 %v2368_v52, %v2358_v14  ;;  %v354_v14 = vadd.f32 %v5027_v39, %v340_v28  ;;  %v359_v49 = vadd.f32 %v357_v6, %v353_v40  ;;  %v5029_v52 = vld [vmem:[#allocation19_spill] sm:$0xff]  ;;  %5038 = vst [vmem:[#allocation14_spill] sm:$0xff] %v4423_v27  ;;  %v426_v40 = vmul.f32 %v4423_v27, %v424_v45  ;;  %v5039_v6 = vld [vmem:[#allocation26_spill] sm:$0xff] }
 0x253   : > { %v4346_v60 = vadd.f32 %v2366_v12, %v2357_v19  ;;  %v358_v19 = vmul.f32 %v4303_v62, %v356_v29  ;;  %v5035_v29 = vld [vmem:[#allocation23_spill] sm:$0xff] }
 0x254   : > { %v373_v48 = vadd.f32 %v5030_v33, %v359_v49  ;;  %v4428_v49 = vld [vmem:[%s3180_s9 + $0x31] sm:$0xff] }
 0x255   : > { %v4354_v22 = vpop.permute.xlu1 %2107  ;;  %v360_v44 = vadd.f32 %v358_v19, %v354_v14  ;;  %v5037_v14 = vld [vmem:[#allocation25_spill] sm:$0xff]  ;;  %5040 = vst [vmem:[#allocation15_spill] sm:$0xff] %v4428_v49  ;;  %v425_v37 = vmul.f32 %v4428_v49, %v424_v45 }
 0x256   : > { %v4356_v51 = vpop.permute.xlu0 %2105  ;;  %v387_v57 = vadd.f32 %v5033_v58, %v373_v48  ;;  %v5041_v58 = vld [vmem:[#allocation27_spill] sm:$0xff] }
 0x257   : > { %v374_v12 = vadd.f32 %v5029_v52, %v360_v44 }
 0x258   : > { %v393_v11 = vadd.f32 %v391_v47, %v387_v57  ;;  %v5042_v47 = vld [vmem:[#allocation28_spill] sm:$0xff] }
 0x259   : > { %v4364_v41 = vpop.permute.xlu1 %2387  ;;  %v388_v30 = vadd.f32 %v5031_v61, %v374_v12 }
 0x25a   : > { %v4366_v10 = vpop.permute.xlu0 %2385  ;;  %v407_v39 = vadd.f32 %v5036_v36, %v393_v11  ;;  %v5043_v11 = vld [vmem:[#allocation29_spill] sm:$0xff] }
 0x25b   : > { %v394_v32 = vadd.f32 %v392_v16, %v388_v30  ;;  %v458_v16 = vstv %s2751_s28  ;;  %s2782_s28 = sld [smem:[#allocation2 + $0x8]] }
 0x25c   : > { %v421_v44 = vadd.f32 %v5039_v6, %v407_v39 }
 0x25d   : > { %v4373_v50 = vpop.permute.xlu1 %2121  ;;  %v408_v24 = vadd.f32 %v5035_v29, %v394_v32  ;;  %v4447_v29 = vld [vmem:[%s3180_s9 + $0x50] sm:$0xff] }
 0x25e   : > { %v4375_v20 = vpop.permute.xlu0 %2119  ;;  %v427_v48 = vadd.f32 %v425_v37, %v421_v44  ;;  %5044 = vst [vmem:[#allocation16_spill] sm:$0xff] %v4447_v29  ;;  %v2094_v44 = vstv %s2900_s29  ;;  %s2807_s29 = sld [smem:[#allocation2 + $0xc]] }
 0x25f   : > { %v422_v19 = vadd.f32 %v5037_v14, %v408_v24  ;;  %v460_v24 = vmul.f32 %v4447_v29, %v458_v16  ;;  %v5045_v14 = vld [vmem:[#allocation30_spill] sm:$0xff]  ;;  %v2128_v29 = vstv %s4450_s6  ;;  %s4644_s6 = sld [smem:[#allocation2 + $0xd]] }
 0x260   : > { %v441_v32 = vadd.f32 %v5042_v47, %v427_v48  ;;  %v2374_v47 = vstv %s2924_s30  ;;  %s2785_s30 = sld [smem:[#allocation2 + $0x38]] }
 0x261   : > { %v4378_v25 = vpop.permute.xlu1 %2401  ;;  %v428_v33 = vadd.f32 %v426_v40, %v422_v19  ;;  %v4458_v40 = vld [vmem:[%s3180_s9 + $0x48] sm:$0xff] }
 0x262   : > { %v4380_v26 = vpop.permute.xlu0 %2399  ;;  %v455_v19 = vadd.f32 %v5045_v14, %v441_v32  ;;  %5046 = vst [vmem:[#allocation17_spill] sm:$0xff] %v4458_v40  ;;  %v459_v6 = vmul.f32 %v4458_v40, %v458_v16  ;;  %v1848_v16 = vstv %s4440_s4  ;;  %v5047_v14 = vld [vmem:[#allocation31_spill] sm:$0xff]  ;;  %s4618_s4 = sld [smem:[#allocation2 + $0x3c]] }
 0x263   : > { %v442_v57 = vadd.f32 %v5041_v58, %v428_v33  ;;  %v2096_v58 = vmul.f32 %v4423_v27, %v2094_v44 }
 0x264   : > { %v461_v32 = vadd.f32 %v459_v6, %v455_v19  ;;  %v3022_v6 = vld [vmem:[%s3180_s9 + $0x3a] sm:$0xff] }
 0x265   : > { %v4387_v9 = vpop.permute.xlu1 %1861  ;;  %v456_v45 = vadd.f32 %v5043_v11, %v442_v57  ;;  %v2095_v57 = vmul.f32 %v4428_v49, %v2094_v44  ;;  %v492_v11 = vstv %s4442_s5  ;;  %v2098_v44 = vadd.f32 %v2096_v58, %v4339_v3  ;;  %s4632_s5 = sld [smem:[#allocation2 + $0x9]] }
 0x266   : > { %v4389_v46 = vpop.permute.xlu0 %1859  ;;  %v1850_v35 = vmul.f32 %v3022_v6, %v1848_v16  ;;  %v494_v34 = vmul.f32 %v4151_v17, %v492_v11  ;;  %v493_v23 = vmul.f32 %v4155_v38, %v492_v11  ;;  %v2130_v3 = vmul.f32 %v3022_v6, %v2128_v29 }
 0x267   : > { %v462_v37 = vadd.f32 %v460_v24, %v456_v45  ;;  %v2376_v45 = vmul.f32 %v4423_v27, %v2374_v47  ;;  %v2375_v24 = vmul.f32 %v4428_v49, %v2374_v47  ;;  %v2097_v19 = vadd.f32 %v2095_v57, %v4341_v31  ;;  %v5048_v27 = vld [vmem:[#allocation32_spill] sm:$0xff]  ;;  %v5049_v47 = vld [vmem:[#allocation33_spill] sm:$0xff] }
 0x268   : > { %v475_v62 = vadd.f32 %v5048_v27, %v461_v32  ;;  %v2112_v2 = vadd.f32 %v4354_v22, %v2098_v44  ;;  %v2408_v58 = vstv %s4461_s7  ;;  %v1882_v27 = vstv %s4463_s8  ;;  %s4650_s7 = sld [smem:[#allocation2 + $0x35]]  ;;  %s4661_s8 = sld [smem:[#allocation2 + $0x39]] }
 0x269   : > { %v4391_v59 = vpop.permute.xlu1 %2141  ;;  %v476_v40 = vadd.f32 %v5047_v14, %v462_v37  ;;  %v3023_v37 = vld [vmem:[%s3180_s9 + $0x32] sm:$0xff]  ;;  %v2111_v18 = vadd.f32 %v4356_v51, %v2097_v19  ;;  %v2378_v31 = vadd.f32 %v2376_v45, %v4344_v54  ;;  %v2377_v57 = vadd.f32 %v2375_v24, %v4346_v60 }
 0x26a   : > { %v4393_v42 = vpop.permute.xlu0 %2139  ;;  %v1849_v14 = vmul.f32 %v3023_v37, %v1848_v16  ;;  %v2129_v16 = vmul.f32 %v3023_v37, %v2128_v29  ;;  %v2126_v22 = vadd.f32 %v4373_v50, %v2112_v2  ;;  %v1852_v11 = vadd.f32 %v1850_v35, %v4190_v53  ;;  %v5050_v54 = vld [vmem:[#allocation34_spill] sm:$0xff] }
 0x26b   : > { %v490_v49 = vadd.f32 %v5049_v47, %v476_v40  ;;  %v2125_v51 = vadd.f32 %v4375_v20, %v2111_v18  ;;  %v489_v45 = vadd.f32 %v5050_v54, %v475_v62  ;;  %v2392_v60 = vadd.f32 %v4364_v41, %v2378_v31 }
 0x26c   : > { %v1851_v44 = vadd.f32 %v1849_v14, %v4192_v56  ;;  %v2391_v29 = vadd.f32 %v4366_v10, %v2377_v57  ;;  %v2410_v24 = vmul.f32 %v3022_v6, %v2408_v58  ;;  %v1866_v19 = vadd.f32 %v4387_v9, %v1852_v11 }
 0x26d   : > { %v4402_v4 = vpop.permute.xlu1 %2421  ;;  %v2409_v13 = vmul.f32 %v3023_v37, %v2408_v58  ;;  %v1884_v2 = vmul.f32 %v4151_v17, %v1882_v27  ;;  %v2406_v18 = vadd.f32 %v4378_v25, %v2392_v60  ;;  %v1883_v56 = vmul.f32 %v4155_v38, %v1882_v27 }
 0x26e   : > { %v4404_v21 = vpop.permute.xlu0 %2419  ;;  %v1865_v47 = vadd.f32 %v4389_v46, %v1851_v44  ;;  %v2405_v53 = vadd.f32 %v4380_v26, %v2391_v29  ;;  %v2162_v62 = vstv %s4477_s10  ;;  %v2132_v10 = vadd.f32 %v2130_v3, %v2126_v22  ;;  %s4671_s10 = sld [smem:[#allocation2 + $0x3d]] }
 0x26f   : > { %v2131_v50 = vadd.f32 %v2129_v16, %v2125_v51  ;;  %v496_v25 = vadd.f32 %v494_v34, %v490_v49  ;;  %v495_v46 = vadd.f32 %v493_v23, %v489_v45  ;;  %v2164_v37 = vmul.f32 %v4151_v17, %v2162_v62 }
 0x270   : > { %v2146_v26 = vadd.f32 %v4391_v59, %v2132_v10  ;;  %v2442_v14 = vstv %s4494_s17  ;;  %v2412_v58 = vadd.f32 %v2410_v24, %v2406_v18  ;;  %v2411_v31 = vadd.f32 %v2409_v13, %v2405_v53  ;;  %v5052_v24 = vld [vmem:[#allocation36_spill] sm:$0xff]  ;;  %s4677_s17 = sld [smem:[#allocation2 + $0x6]] }
 0x271   : > { %v4411_v1 = vpop.permute.xlu1 %1875  ;;  %v2145_v6 = vadd.f32 %v4393_v42, %v2131_v50  ;;  %v2163_v57 = vmul.f32 %v4155_v38, %v2162_v62  ;;  %v1916_v27 = vstv %s4503_s18  ;;  %v5051_v42 = vld [vmem:[#allocation35_spill] sm:$0xff]  ;;  %v2444_v22 = vmul.f32 %v4151_v17, %v2442_v14  ;;  %s4688_s18 = sld [smem:[#allocation2 + $0xa]] }
 0x272   : > { %v4413_v55 = vpop.permute.xlu0 %1873  ;;  %v1880_v20 = vadd.f32 %v4411_v1, %v1866_v19  ;;  %v2426_v49 = vadd.f32 %v4402_v4, %v2412_v58  ;;  %v2425_v13 = vadd.f32 %v4404_v21, %v2411_v31  ;;  %v2443_v44 = vmul.f32 %v4155_v38, %v2442_v14 }
 0x273   : > { %v1879_v9 = vadd.f32 %v4413_v55, %v1865_v47  ;;  %v510_v55 = vadd.f32 %v5051_v42, %v496_v25  ;;  %v1917_v45 = vmul.f32 %v4268_v7, %v1916_v27  ;;  %v2196_v60 = vstv %s4523_s19  ;;  %s4698_s19 = sld [smem:[#allocation2 + $0xe]] }
 0x274   : > { %v1886_v59 = vadd.f32 %v1884_v2, %v1880_v20  ;;  %v509_v38 = vadd.f32 %v5052_v24, %v495_v46  ;;  %v2198_v2 = vmul.f32 %v4264_v8, %v2196_v60  ;;  %v5054_v46 = vld [vmem:[#allocation38_spill] sm:$0xff] }
 0x275   : > { %v4416_v28 = vpop.permute.xlu1 %2155  ;;  %v1885_v1 = vadd.f32 %v1883_v56, %v1879_v9  ;;  %v2476_v56 = vstv %s4533_s20  ;;  %s4704_s20 = sld [smem:[#allocation2 + $0x36]] }
 0x276   : > { %v4418_v15 = vpop.permute.xlu0 %2153  ;;  %v2160_v34 = vadd.f32 %v4416_v28, %v2146_v26  ;;  %v1918_v28 = vmul.f32 %v4264_v8, %v1916_v27  ;;  %v523_v26 = vadd.f32 %v5054_v46, %v509_v38  ;;  %v2478_v14 = vmul.f32 %v4264_v8, %v2476_v56 }
 0x277   : > { %v2159_v23 = vadd.f32 %v4418_v15, %v2145_v6  ;;  %v818_v46 = vstv %s2782_s28 }
 0x278   : > { %v2166_v29 = vadd.f32 %v2164_v37, %v2160_v34 }
 0x279   : > { %v4431_v52 = vpop.permute.xlu1 %2435  ;;  %v2165_v17 = vadd.f32 %v2163_v57, %v2159_v23  ;;  %v4577_v23 = vstv %s4552_s15  ;;  %s4715_s15 = sld [smem:[#allocation2 + $0x3a]] }
 0x27a   : > { %v4433_v12 = vpop.permute.xlu0 %2433  ;;  %v2440_v15 = vadd.f32 %v4431_v52, %v2426_v49  ;;  %v5053_v52 = vld [vmem:[#allocation37_spill] sm:$0xff] }
 0x27b   : > { %v2439_v54 = vadd.f32 %v4433_v12, %v2425_v13  ;;  %v524_v12 = vadd.f32 %v5053_v52, %v510_v55 }
 0x27c   : > { %v2446_v18 = vadd.f32 %v2444_v22, %v2440_v15 }
 0x27d   : > { %v4435_v61 = vpop.permute.xlu1 %1895  ;;  %v2445_v53 = vadd.f32 %v2443_v44, %v2439_v54 }
 0x27e   : > { %v4437_v30 = vpop.permute.xlu0 %1893  ;;  %v1900_v51 = vadd.f32 %v4435_v61, %v1886_v59 }
 0x27f   : > { %v1899_v11 = vadd.f32 %v4437_v30, %v1885_v1 }
 0x281   : > { %v4452_v36 = vpop.permute.xlu1 %2175 }
 0x282   : > { %v4454_v39 = vpop.permute.xlu0 %2173  ;;  %v2180_v19 = vadd.f32 %v4452_v36, %v2166_v29 }
 0x283   : > { %v2179_v47 = vadd.f32 %v4454_v39, %v2165_v17  ;;  %v4567_v39 = vadd.f32 %v4293_v5, %v524_v12 }
 0x285   : > { %v4465_v33 = vpop.permute.xlu1 %2455  ;;  %v532_v8 = vmul.f32 0.01, %v4567_v39  ;;  %vm530_vm4 = vcmp.gt.f32.partialorder %v4567_v39, 0.0 }
 0x286   : > { %v4467_v48 = vpop.permute.xlu0 %2453  ;;  %v2460_v25 = vadd.f32 %v4465_v33, %v2446_v18  ;;  %v2477_v33 = vmul.f32 %v4268_v7, %v2476_v56 }
 0x287   : > { %v2459_v36 = vadd.f32 %v4467_v48, %v2445_v53 }
 0x289   : > { %v4479_v63 = vpop.permute.xlu1 %1909 }
 0x28a   : > { %v4481_v43 = vpop.permute.xlu0 %1907  ;;  %v1914_v61 = vadd.f32 %v4479_v63, %v1900_v51  ;;  %v2197_v63 = vmul.f32 %v4268_v7, %v2196_v60  ;;  %v527_v7 = vadd.f32 %v4293_v5, %v523_v26  ;;  %v5056_v26 = vld [vmem:[#allocation39_spill] sm:$0xff] }
 0x28b   : > { %v1913_v30 = vadd.f32 %v4481_v43, %v1899_v11 }
 0x28c   : > { %v1920_v20 = vadd.f32 %v1918_v28, %v1914_v61  ;;  %v531_v60 = vmul.f32 0.01, %v527_v7  ;;  %vm529_vm5 = vcmp.gt.f32.partialorder %v527_v7, 0.0 }
 0x28d   : > { %v4499_v32 = vpop.permute.xlu1 %2189  ;;  %v1919_v9 = vadd.f32 %v1917_v45, %v1913_v30 }
 0x28e   : > { %v4501_v40 = vpop.permute.xlu0 %2187  ;;  %v2194_v10 = vadd.f32 %v4499_v32, %v2180_v19  ;;  %v533_v53 = vsel %vm529_vm5, %v527_v7, %v531_v60  ;;  %v5063_v7 = vld [vmem:[#allocation72_spill] sm:$0xff] }
 0x28f   : > { %v2193_v50 = vadd.f32 %v4501_v40, %v2179_v47 }
 0x290   : > { %v2200_v31 = vadd.f32 %v2198_v2, %v2194_v10  ;;  %v534_v2 = vsel %vm530_vm4, %v4567_v39, %v532_v8  ;;  %v570_v39 = vstv %s2760_s27  ;;  %s4779_s27 = sld [smem:[#allocation2 + $0x3f]] }
 0x291   : > { %v4519_v35 = vpop.permute.xlu1 %2469  ;;  %v2199_v57 = vadd.f32 %v2197_v63, %v2193_v50 }
 0x292   : > { %v4521_v41 = vpop.permute.xlu0 %2467  ;;  %v2474_v32 = vadd.f32 %v4519_v35, %v2460_v25  ;;  %v5055_v25 = vld [vmem:[#allocation137_spill] sm:$0xff] }
 0x293   : > { %v2473_v40 = vadd.f32 %v4521_v41, %v2459_v36 }
 0x294   : > { %v2480_v1 = vadd.f32 %v2478_v14, %v2474_v32 }
 0x295   : > { %v1930_v3 = vpop.permute.xlu1 %1929  ;;  %v2479_v42 = vadd.f32 %v2477_v33, %v2473_v40  ;;  %v5058_v40 = vld [vmem:[#allocation10_spill] sm:$0xff]  ;;  %v820_v33 = vmul.f32 %v4325_v0, %v818_v46 }
 0x296   : > { %v1928_v16 = vpop.permute.xlu0 %1927  ;;  %v1934_v6 = vadd.f32 %v1930_v3, %v1920_v20  ;;  %v4580_v3 = vstv %s4554_s21  ;;  %v536_v20 = vstv %s2757_s26  ;;  %v572_v14 = vmul.f32 %v5058_v40, %v570_v39  ;;  %s4725_s21 = sld [smem:[#allocation2 + $0x3e]]  ;;  %s4769_s26 = sld [smem:[#allocation2 + $0x3b]] }
 0x297   : > { %v1933_v37 = vadd.f32 %v1928_v16, %v1919_v9  ;;  %v538_v9 = vmul.f32 %v4325_v0, %v536_v20  ;;  %v537_v36 = vmul.f32 %v5055_v25, %v536_v20 }
 0x299   : > { %v2210_v4 = vpop.permute.xlu1 %2209 }
 0x29a   : > { %v2208_v21 = vpop.permute.xlu0 %2207  ;;  %v2214_v16 = vadd.f32 %v2210_v4, %v2200_v31  ;;  %v4589_v4 = vstv %s4570_s22  ;;  %s4731_s22 = sld [smem:[#allocation2 + $0x7]] }
 0x29b   : > { %v2213_v59 = vadd.f32 %v2208_v21, %v2199_v57  ;;  %v5060_v57 = vld [vmem:[#allocation42_spill] sm:$0xff] }
 0x29d   : > { %v2490_v43 = vpop.permute.xlu1 %2489 }
 0x29e   : > { %v2488_v62 = vpop.permute.xlu0 %2487  ;;  %v2494_v44 = vadd.f32 %v2490_v43, %v2480_v1 }
 0x29f   : > { %v2493_v28 = vadd.f32 %v2488_v62, %v2479_v42 }
 0x2a1   : > { %v1944_v48 = vpop.permute.xlu1 %1943 }
 0x2a2   : > { %v1942_v58 = vpop.permute.xlu0 %1941  ;;  %v1948_v27 = vadd.f32 %v1944_v48, %v1934_v6  ;;  %v554_v6 = vadd.f32 %v5056_v26, %v538_v9  ;;  %v819_v48 = vmul.f32 %v5055_v25, %v818_v46  ;;  %v886_v9 = vstv %s4632_s5 }
 0x2a3   : > { %v1947_v34 = vadd.f32 %v1942_v58, %v1933_v37  ;;  %v5057_v37 = vld [vmem:[#allocation40_spill] sm:$0xff]  ;;  %v5059_v58 = vld [vmem:[#allocation41_spill] sm:$0xff] }
 0x2a4   : > { %v1950_v35 = vadd.f32 %v1948_v27, %v4577_v23  ;;  %v553_v32 = vadd.f32 %v5057_v37, %v537_v36  ;;  %v568_v31 = vadd.f32 %v5059_v58, %v554_v6  ;;  %v835_v1 = vadd.f32 %v5063_v7, %v819_v48  ;;  %v5079_v48 = vld [vmem:[#allocation78_spill] sm:$0xff]  ;;  %v5083_v7 = vld [vmem:[#allocation48_spill] sm:$0xff] }
 0x2a5   : > { %v1949_v41 = vadd.f32 %v1947_v34, %v4577_v23  ;;  %v2224_v55 = vpop.permute.xlu1 %2223  ;;  %v5061_v34 = vld [vmem:[#allocation9_spill] sm:$0xff] }
 0x2a6   : > { %v2222_v49 = vpop.permute.xlu0 %2221  ;;  %v1954_v13 = vmul.f32 0.01, %v1950_v35  ;;  %v2228_v51 = vadd.f32 %v2224_v55, %v2214_v16  ;;  %vm1952_vm2 = vcmp.gt.f32.partialorder %v1950_v35, 0.0  ;;  %v567_v27 = vadd.f32 %v5060_v57, %v553_v32 }
 0x2a7   : > { %v1953_v22 = vmul.f32 0.01, %v1949_v41  ;;  %v2227_v11 = vadd.f32 %v2222_v49, %v2213_v59  ;;  %vm1951_vm3 = vcmp.gt.f32.partialorder %v1949_v41, 0.0  ;;  %v571_v16 = vmul.f32 %v5061_v34, %v570_v39  ;;  %v5077_v39 = vld [vmem:[#allocation76_spill] sm:$0xff] }
 0x2a8   : > { %v2230_v15 = vadd.f32 %v2228_v51, %v4580_v3  ;;  %v1956_v45 = vsel %vm1952_vm2, %v1950_v35, %v1954_v13  ;;  %v1100_v59 = vstv %s2807_s29  ;;  %v852_v35 = vstv %s2785_s30  ;;  %v5064_v51 = vld [vmem:[#allocation73_spill] sm:$0xff] }
 0x2a9   : > { %v2229_v54 = vadd.f32 %v2227_v11, %v4580_v3  ;;  %v1955_v5 = vsel %vm1951_vm3, %v1949_v41, %v1953_v22  ;;  %2535 = vrot.lane.b32.xlu1 %v1956_v45, %s3092_s23  ;;  %v2504_v21 = vpop.permute.xlu1 %2503  ;;  %v5062_v41 = vld [vmem:[#allocation71_spill] sm:$0xff]  ;;  %v1102_v42 = vmul.f32 %v4325_v0, %v1100_v59  ;;  %v1101_v55 = vmul.f32 %v5055_v25, %v1100_v59  ;;  %v5081_v59 = vld [vmem:[#allocation108_spill] sm:$0xff] }
 0x2aa   : > { %2533 = vrot.lane.b32.xlu0 %v1955_v5, %s3092_s23  ;;  %v2502_v29 = vpop.permute.xlu0 %2501  ;;  %v2234_v17 = vmul.f32 0.01, %v2230_v15  ;;  %v2508_v30 = vadd.f32 %v2504_v21, %v2494_v44  ;;  %vm2232_vm6 = vcmp.gt.f32.partialorder %v2230_v15, 0.0  ;;  %v836_v8 = vadd.f32 %v5062_v41, %v820_v33  ;;  %v5065_v44 = vld [vmem:[#allocation74_spill] sm:$0xff]  ;;  %v5066_v5 = vld [vmem:[#allocation103_spill] sm:$0xff]  ;;  %v5067_v21 = vld [vmem:[#allocation104_spill] sm:$0xff] }
 0x2ab   : > { %v2233_v61 = vmul.f32 0.01, %v2229_v54  ;;  %v2507_v24 = vadd.f32 %v2502_v29, %v2493_v28  ;;  %vm2231_vm9 = vcmp.gt.f32.partialorder %v2229_v54, 0.0  ;;  %v574_v49 = vadd.f32 %v572_v14, %v568_v31  ;;  %v5068_v0 = vld [vmem:[#allocation43_spill] sm:$0xff]  ;;  %v5078_v14 = vld [vmem:[#allocation77_spill] sm:$0xff] }
 0x2ac   : > { %v2510_v38 = vadd.f32 %v2508_v30, %v4589_v4  ;;  %v2236_v12 = vsel %vm2232_vm6, %v2230_v15, %v2234_v17  ;;  %v573_v13 = vadd.f32 %v571_v16, %v567_v27  ;;  %v854_v22 = vmul.f32 %v5058_v40, %v852_v35  ;;  %v5076_v25 = vld [vmem:[#allocation75_spill] sm:$0xff] }
 0x2ad   : > { %v2509_v52 = vadd.f32 %v2507_v24, %v4589_v4  ;;  %v2235_v19 = vsel %vm2231_vm9, %v2229_v54, %v2233_v61  ;;  %2548 = vrot.lane.b32.xlu1 %v2236_v12, %s3092_s23  ;;  %v2522_v47 = vpop.permute.xlu1 %2521  ;;  %v850_v11 = vadd.f32 %v5064_v51, %v836_v8  ;;  %v849_v28 = vadd.f32 %v5065_v44, %v835_v1  ;;  %v5069_v61 = vld [vmem:[#allocation44_spill] sm:$0xff]  ;;  %v5082_v41 = vld [vmem:[#allocation47_spill] sm:$0xff] }
 0x2ae   : > { %2546 = vrot.lane.b32.xlu0 %v2235_v19, %s3092_s23  ;;  %v2520_v18 = vpop.permute.xlu0 %2519  ;;  %v2514_v63 = vmul.f32 0.01, %v2510_v38  ;;  %v2527_v43 = vsel %vm2525_vm7, %v534_v2, %v2522_v47  ;;  %vm2512_vm10 = vcmp.gt.f32.partialorder %v2510_v38, 0.0  ;;  %v853_v15 = vmul.f32 %v5061_v34, %v852_v35  ;;  %v5070_v19 = vld [vmem:[#allocation105_spill] sm:$0xff]  ;;  %v5071_v2 = vld [vmem:[#allocation106_spill] sm:$0xff] }
 0x2af   : > { %v2513_v56 = vmul.f32 0.01, %v2509_v52  ;;  %v2526_v62 = vsel %vm2525_vm7, %v533_v53, %v2520_v18  ;;  %2530 = vst.msk [vmem:[%s4600_s12 + $0x8] sm:$0xff] %vm2528_vm8, %v2527_v43  ;;  %vm2511_vm11 = vcmp.gt.f32.partialorder %v2509_v52, 0.0  ;;  %v1134_v54 = vstv %s4618_s4  ;;  %v5072_v53 = vld [vmem:[#allocation45_spill] sm:$0xff] }
 0x2b0   : > { %2529 = vst.msk [vmem:[%s4600_s12] sm:$0xff] %vm2528_vm8, %v2526_v62  ;;  %v2516_v10 = vsel %vm2512_vm10, %v2510_v38, %v2514_v63  ;;  %v1118_v60 = vadd.f32 %v5066_v5, %v1102_v42  ;;  %v1117_v29 = vadd.f32 %v5067_v21, %v1101_v55  ;;  %v588_v17 = vadd.f32 %v5068_v0, %v574_v49  ;;  %v5074_v62 = vld [vmem:[#allocation8_spill] sm:$0xff]  ;;  %v5088_v5 = vld [vmem:[#allocation135_spill] sm:$0xff] }
 0x2b1   : > { %v2515_v50 = vsel %vm2511_vm11, %v2509_v52, %v2513_v56  ;;  %2561 = vrot.lane.b32.xlu1 %v2516_v10, %s3092_s23  ;;  %v587_v30 = vadd.f32 %v5069_v61, %v573_v13  ;;  %v1136_v24 = vmul.f32 %v5058_v40, %v1134_v54  ;;  %v1135_v38 = vmul.f32 %v5061_v34, %v1134_v54  ;;  %v5073_v56 = vld [vmem:[#allocation46_spill] sm:$0xff]  ;;  %v5080_v34 = vld [vmem:[#allocation107_spill] sm:$0xff]  ;;  %v5089_v21 = vld [vmem:[#allocation136_spill] sm:$0xff] }
 0x2b2   : > { %2559 = vrot.lane.b32.xlu0 %v2515_v50, %s3092_s23  ;;  %s4623_s23 = sld [smem:[#allocation2 + $0x5]]  ;;  %v856_v52 = vadd.f32 %v854_v22, %v850_v11  ;;  %v855_v12 = vadd.f32 %v853_v15, %v849_v28  ;;  %v1132_v47 = vadd.f32 %v5070_v19, %v1118_v60  ;;  %v1131_v18 = vadd.f32 %v5071_v2, %v1117_v29  ;;  %v5075_v50 = vld [vmem:[#allocation11_spill] sm:$0xff]  ;;  %v5084_v22 = vld [vmem:[#allocation109_spill] sm:$0xff]  ;;  %v5085_v11 = vld [vmem:[#allocation110_spill] sm:$0xff] }
 0x2b3   : > { %v602_v63 = vadd.f32 %v5072_v53, %v588_v17  ;;  %v601_v43 = vadd.f32 %v5073_v56, %v587_v30  ;;  %v888_v40 = vmul.f32 %v5074_v62, %v886_v9  ;;  %v887_v31 = vmul.f32 %v5075_v50, %v886_v9  ;;  %v5086_v28 = vld [vmem:[#allocation49_spill] sm:$0xff]  ;;  %v5087_v54 = vld [vmem:[#allocation50_spill] sm:$0xff]  ;;  %v5090_v17 = vld [vmem:[#allocation79_spill] sm:$0xff] }
 0x2b4   : > { %v870_v36 = vadd.f32 %v5076_v25, %v856_v52  ;;  %v869_v46 = vadd.f32 %v5077_v39, %v855_v12  ;;  %v1138_v26 = vadd.f32 %v1136_v24, %v1132_v47  ;;  %v1137_v6 = vadd.f32 %v1135_v38, %v1131_v18  ;;  %v5091_v30 = vld [vmem:[#allocation80_spill] sm:$0xff]  ;;  %v5092_v2 = vld [vmem:[#allocation81_spill] sm:$0xff]  ;;  %v5093_v53 = vld [vmem:[#allocation82_spill] sm:$0xff] }
 0x2b5   : > { %v1168_v57 = vstv %s4644_s6  ;;  %v638_v27 = vstv %s4650_s7  ;;  %v920_v0 = vstv %s4661_s8  ;;  %v5096_v25 = vld [vmem:[#allocation51_spill] sm:$0xff]  ;;  %v5097_v39 = vld [vmem:[#allocation52_spill] sm:$0xff] }
 0x2b6   : > { %v884_v33 = vadd.f32 %v5078_v14, %v870_v36  ;;  %v883_v58 = vadd.f32 %v5079_v48, %v869_v46  ;;  %v1152_v16 = vadd.f32 %v5080_v34, %v1138_v26  ;;  %v1151_v35 = vadd.f32 %v5081_v59, %v1137_v6  ;;  %v5102_v34 = vld [vmem:[#allocation12_spill] sm:$0xff]  ;;  %v5103_v59 = vld [vmem:[#allocation13_spill] sm:$0xff] }
 0x2b7   : > { %v1170_v42 = vmul.f32 %v5074_v62, %v1168_v57  ;;  %v1169_v55 = vmul.f32 %v5075_v50, %v1168_v57  ;;  %v640_v60 = vmul.f32 %v5088_v5, %v638_v27  ;;  %v639_v29 = vmul.f32 %v5089_v21, %v638_v27  ;;  %v5101_v57 = vld [vmem:[#allocation54_spill] sm:$0xff] }
 0x2b8   : > { %v604_v45 = vstv %s4623_s23  ;;  %v890_v49 = vadd.f32 %v888_v40, %v884_v33  ;;  %v889_v13 = vadd.f32 %v887_v31, %v883_v58  ;;  %v1166_v51 = vadd.f32 %v5084_v22, %v1152_v16  ;;  %v5098_v40 = vld [vmem:[#allocation113_spill] sm:$0xff]  ;;  %v5099_v33 = vld [vmem:[#allocation114_spill] sm:$0xff] }
 0x2b9   : > { %v606_v10 = vmul.f32 %v5074_v62, %v604_v45  ;;  %v605_v20 = vmul.f32 %v5075_v50, %v604_v45  ;;  %v1165_v44 = vadd.f32 %v5085_v11, %v1151_v35  ;;  %v922_v47 = vmul.f32 %v5088_v5, %v920_v0  ;;  %v5100_v58 = vld [vmem:[#allocation53_spill] sm:$0xff] }
 0x2ba   : > { %v904_v61 = vadd.f32 %v5090_v17, %v890_v49  ;;  %v903_v24 = vadd.f32 %v5091_v30, %v889_v13  ;;  %v1172_v38 = vadd.f32 %v1170_v42, %v1166_v51  ;;  %v921_v56 = vmul.f32 %v5089_v21, %v920_v0  ;;  %v5106_v11 = vld [vmem:[#allocation85_spill] sm:$0xff]  ;;  %v5110_v17 = vld [vmem:[#allocation55_spill] sm:$0xff]  ;;  %v5111_v30 = vld [vmem:[#allocation56_spill] sm:$0xff] }
 0x2bb   : > { %v608_v37 = vadd.f32 %v606_v10, %v602_v63  ;;  %v607_v32 = vadd.f32 %v605_v20, %v601_v43  ;;  %v1171_v52 = vadd.f32 %v1169_v55, %v1165_v44  ;;  %v1202_v43 = vstv %s4671_s10  ;;  %v5094_v10 = vld [vmem:[#allocation111_spill] sm:$0xff]  ;;  %v5095_v20 = vld [vmem:[#allocation112_spill] sm:$0xff] }
 0x2bc   : > { %v918_v18 = vadd.f32 %v5092_v2, %v904_v61  ;;  %v917_v63 = vadd.f32 %v5093_v53, %v903_v24  ;;  %v672_v62 = vstv %s4677_s17  ;;  %v1186_v50 = vadd.f32 %v5094_v10, %v1172_v38  ;;  %v5116_v10 = vld [vmem:[#allocation14_spill] sm:$0xff] }
 0x2bd   : > { %v622_v8 = vadd.f32 %v5082_v41, %v608_v37  ;;  %v621_v1 = vadd.f32 %v5083_v7, %v607_v32  ;;  %v1185_v9 = vadd.f32 %v5095_v20, %v1171_v52  ;;  %v1204_v26 = vmul.f32 %v5088_v5, %v1202_v43  ;;  %v5117_v20 = vld [vmem:[#allocation15_spill] sm:$0xff] }
 0x2be   : > { %v1203_v6 = vmul.f32 %v5089_v21, %v1202_v43  ;;  %v924_v37 = vadd.f32 %v922_v47, %v918_v18  ;;  %v923_v32 = vadd.f32 %v921_v56, %v917_v63  ;;  %v1200_v14 = vadd.f32 %v5098_v40, %v1186_v50  ;;  %v5112_v47 = vld [vmem:[#allocation117_spill] sm:$0xff]  ;;  %v5113_v18 = vld [vmem:[#allocation118_spill] sm:$0xff] }
 0x2bf   : > { %v636_v15 = vadd.f32 %v5086_v28, %v622_v8  ;;  %v635_v45 = vadd.f32 %v5087_v54, %v621_v1  ;;  %v1199_v48 = vadd.f32 %v5099_v33, %v1185_v9  ;;  %v674_v16 = vmul.f32 %v5102_v34, %v672_v62  ;;  %v5104_v8 = vld [vmem:[#allocation83_spill] sm:$0xff]  ;;  %v5105_v1 = vld [vmem:[#allocation84_spill] sm:$0xff]  ;;  %v5107_v28 = vld [vmem:[#allocation86_spill] sm:$0xff] }
 0x2c0   : > { %v673_v35 = vmul.f32 %v5103_v59, %v672_v62  ;;  %v954_v41 = vstv %s4688_s18  ;;  %v938_v7 = vadd.f32 %v5104_v8, %v924_v37  ;;  %v937_v42 = vadd.f32 %v5105_v1, %v923_v32  ;;  %v5114_v63 = vld [vmem:[#allocation57_spill] sm:$0xff]  ;;  %v5115_v43 = vld [vmem:[#allocation58_spill] sm:$0xff]  ;;  %v5124_v8 = vld [vmem:[#allocation59_spill] sm:$0xff] }
 0x2c1   : > { %v642_v12 = vadd.f32 %v640_v60, %v636_v15  ;;  %v641_v19 = vadd.f32 %v639_v29, %v635_v45  ;;  %v1206_v55 = vadd.f32 %v1204_v26, %v1200_v14  ;;  %v1205_v49 = vadd.f32 %v1203_v6, %v1199_v48  ;;  %v5108_v60 = vld [vmem:[#allocation115_spill] sm:$0xff]  ;;  %v5109_v29 = vld [vmem:[#allocation116_spill] sm:$0xff]  ;;  %v5120_v33 = vld [vmem:[#allocation89_spill] sm:$0xff] }
 0x2c2   : > { %v956_v51 = vmul.f32 %v5102_v34, %v954_v41  ;;  %v952_v44 = vadd.f32 %v5106_v11, %v938_v7  ;;  %v951_v15 = vadd.f32 %v5107_v28, %v937_v42  ;;  %v955_v54 = vmul.f32 %v5103_v59, %v954_v41  ;;  %v5125_v1 = vld [vmem:[#allocation60_spill] sm:$0xff] }
 0x2c3   : > { %v656_v36 = vadd.f32 %v5096_v25, %v642_v12  ;;  %v655_v46 = vadd.f32 %v5097_v39, %v641_v19  ;;  %v1236_v45 = vstv %s4698_s19  ;;  %v706_v5 = vstv %s4704_s20 }
 0x2c4   : > { %v1220_v21 = vadd.f32 %v5108_v60, %v1206_v55  ;;  %v1219_v0 = vadd.f32 %v5109_v29, %v1205_v49  ;;  %v1238_v38 = vmul.f32 %v5102_v34, %v1236_v45  ;;  %v1237_v52 = vmul.f32 %v5103_v59, %v1236_v45  ;;  %v5129_v45 = vld [vmem:[#allocation62_spill] sm:$0xff]  ;;  %v5130_v60 = vld [vmem:[#allocation16_spill] sm:$0xff]  ;;  %v5131_v29 = vld [vmem:[#allocation17_spill] sm:$0xff] }
 0x2c5   : > { %v670_v31 = vadd.f32 %v5100_v58, %v656_v36  ;;  %v669_v27 = vadd.f32 %v5101_v57, %v655_v46  ;;  %v958_v12 = vadd.f32 %v956_v51, %v952_v44  ;;  %v957_v19 = vadd.f32 %v955_v54, %v951_v15  ;;  %v5118_v36 = vld [vmem:[#allocation87_spill] sm:$0xff]  ;;  %v5119_v46 = vld [vmem:[#allocation88_spill] sm:$0xff]  ;;  %v5121_v58 = vld [vmem:[#allocation90_spill] sm:$0xff] }
 0x2c6   : > { %v1234_v2 = vadd.f32 %v5112_v47, %v1220_v21  ;;  %v1233_v53 = vadd.f32 %v5113_v18, %v1219_v0  ;;  %v708_v50 = vmul.f32 %v5116_v10, %v706_v5  ;;  %v707_v9 = vmul.f32 %v5117_v20, %v706_v5  ;;  %v5126_v51 = vld [vmem:[#allocation121_spill] sm:$0xff]  ;;  %v5127_v44 = vld [vmem:[#allocation122_spill] sm:$0xff] }
 0x2c7   : > { %v676_v13 = vadd.f32 %v674_v16, %v670_v31  ;;  %v675_v22 = vadd.f32 %v673_v35, %v669_v27  ;;  %v988_v25 = vstv %s4715_s15  ;;  %v972_v39 = vadd.f32 %v5118_v36, %v958_v12  ;;  %v5122_v16 = vld [vmem:[#allocation119_spill] sm:$0xff]  ;;  %v5123_v35 = vld [vmem:[#allocation120_spill] sm:$0xff]  ;;  %v5128_v15 = vld [vmem:[#allocation61_spill] sm:$0xff] }
 0x2c8   : > { %v971_v26 = vadd.f32 %v5119_v46, %v957_v19  ;;  %v1240_v6 = vadd.f32 %v1238_v38, %v1234_v2  ;;  %v1239_v37 = vadd.f32 %v1237_v52, %v1233_v53  ;;  %v990_v14 = vmul.f32 %v5116_v10, %v988_v25  ;;  %v5134_v18 = vld [vmem:[#allocation93_spill] sm:$0xff]  ;;  %v5138_v36 = vld [vmem:[#allocation63_spill] sm:$0xff]  ;;  %v5139_v46 = vld [vmem:[#allocation64_spill] sm:$0xff] }
 0x2c9   : > { %v690_v61 = vadd.f32 %v5110_v17, %v676_v13  ;;  %v689_v24 = vadd.f32 %v5111_v30, %v675_v22  ;;  %v986_v48 = vadd.f32 %v5120_v33, %v972_v39  ;;  %v989_v57 = vmul.f32 %v5117_v20, %v988_v25 }
 0x2ca   : > { %v985_v31 = vadd.f32 %v5121_v58, %v971_v26  ;;  %v1270_v27 = vstv %s4725_s21  ;;  %v740_v34 = vstv %s4731_s22  ;;  %v1254_v59 = vadd.f32 %v5122_v16, %v1240_v6  ;;  %v3024_v16 = vld [vmem:[%s3180_s9 + $0x51] sm:$0xff] }
 0x2cb   : > { %v704_v56 = vadd.f32 %v5114_v63, %v690_v61  ;;  %v703_v62 = vadd.f32 %v5115_v43, %v689_v24  ;;  %v1253_v41 = vadd.f32 %v5123_v35, %v1239_v37  ;;  %v1272_v55 = vmul.f32 %v5116_v10, %v1270_v27  ;;  %v5132_v61 = vld [vmem:[#allocation91_spill] sm:$0xff]  ;;  %v5133_v24 = vld [vmem:[#allocation92_spill] sm:$0xff]  ;;  %v5135_v63 = vld [vmem:[#allocation94_spill] sm:$0xff] }
 0x2cc   : > { %v1271_v49 = vmul.f32 %v5117_v20, %v1270_v27  ;;  %v992_v13 = vadd.f32 %v990_v14, %v986_v48  ;;  %v991_v22 = vadd.f32 %v989_v57, %v985_v31  ;;  %v1268_v11 = vadd.f32 %v5126_v51, %v1254_v59  ;;  %v5140_v14 = vld [vmem:[#allocation125_spill] sm:$0xff]  ;;  %v5141_v48 = vld [vmem:[#allocation126_spill] sm:$0xff] }
 0x2cd   : > { %v710_v32 = vadd.f32 %v708_v50, %v704_v56  ;;  %v709_v40 = vadd.f32 %v707_v9, %v703_v62  ;;  %v1267_v28 = vadd.f32 %v5127_v44, %v1253_v41  ;;  %v742_v21 = vmul.f32 %v5130_v60, %v740_v34  ;;  %v5136_v50 = vld [vmem:[#allocation123_spill] sm:$0xff]  ;;  %v5137_v9 = vld [vmem:[#allocation124_spill] sm:$0xff]  ;;  %v5142_v31 = vld [vmem:[#allocation65_spill] sm:$0xff] }
 0x2ce   : > { %v741_v0 = vmul.f32 %v5131_v29, %v740_v34  ;;  %v1022_v17 = vstv %s4742_s11  ;;  %v1006_v30 = vadd.f32 %v5132_v61, %v992_v13  ;;  %v1005_v38 = vadd.f32 %v5133_v24, %v991_v22  ;;  %v5143_v27 = vld [vmem:[#allocation66_spill] sm:$0xff]  ;;  %v5146_v44 = vld [vmem:[#allocation97_spill] sm:$0xff] }
 0x2cf   : > { %v724_v7 = vadd.f32 %v5124_v8, %v710_v32  ;;  %v723_v42 = vadd.f32 %v5125_v1, %v709_v40  ;;  %v1274_v52 = vadd.f32 %v1272_v55, %v1268_v11  ;;  %v1273_v12 = vadd.f32 %v1271_v49, %v1267_v28  ;;  %v3025_v35 = vld [vmem:[%s3180_s9 + $0x49] sm:$0xff] }
 0x2d0   : > { %v1024_v2 = vmul.f32 %v5130_v60, %v1022_v17  ;;  %v1020_v53 = vadd.f32 %v5134_v18, %v1006_v30  ;;  %v1019_v56 = vadd.f32 %v5135_v63, %v1005_v38  ;;  %v1023_v43 = vmul.f32 %v5131_v29, %v1022_v17  ;;  %v5150_v17 = vld [vmem:[#allocation67_spill] sm:$0xff]  ;;  %v5151_v30 = vld [vmem:[#allocation68_spill] sm:$0xff]  ;;  %v5153_v18 = vld [vmem:[#allocation130_spill] sm:$0xff] }
 0x2d1   : > { %v738_v54 = vadd.f32 %v5128_v15, %v724_v7  ;;  %v737_v5 = vadd.f32 %v5129_v45, %v723_v42  ;;  %v1304_v62 = vstv %s4752_s24  ;;  %v774_v10 = vstv %s4758_s25  ;;  %v5144_v7 = vld [vmem:[#allocation95_spill] sm:$0xff]  ;;  %v5145_v42 = vld [vmem:[#allocation96_spill] sm:$0xff]  ;;  %v5147_v15 = vld [vmem:[#allocation98_spill] sm:$0xff] }
 0x2d2   : > { %v1288_v20 = vadd.f32 %v5136_v50, %v1274_v52  ;;  %v1287_v25 = vadd.f32 %v5137_v9, %v1273_v12  ;;  %v1306_v6 = vmul.f32 %v5130_v60, %v1304_v62  ;;  %v1305_v37 = vmul.f32 %v5131_v29, %v1304_v62  ;;  %v5148_v60 = vld [vmem:[#allocation127_spill] sm:$0xff]  ;;  %v5149_v29 = vld [vmem:[#allocation128_spill] sm:$0xff]  ;;  %v5154_v63 = vld [vmem:[#allocation69_spill] sm:$0xff] }
 0x2d3   : > { %v744_v19 = vadd.f32 %v742_v21, %v738_v54  ;;  %v743_v47 = vadd.f32 %v741_v0, %v737_v5  ;;  %v1026_v32 = vadd.f32 %v1024_v2, %v1020_v53  ;;  %v1025_v40 = vadd.f32 %v1023_v43, %v1019_v56  ;;  %v5155_v43 = vld [vmem:[#allocation70_spill] sm:$0xff] }
 0x2d4   : > { %v1302_v33 = vadd.f32 %v5140_v14, %v1288_v20  ;;  %v1301_v58 = vadd.f32 %v5141_v48, %v1287_v25  ;;  %v776_v59 = vmul.f32 %v3024_v16, %v774_v10  ;;  %v775_v41 = vmul.f32 %v3025_v35, %v774_v10  ;;  %v5156_v10 = vld [vmem:[#allocation99_spill] sm:$0xff]  ;;  %v5157_v20 = vld [vmem:[#allocation100_spill] sm:$0xff] }
 0x2d5   : > { %v758_v39 = vadd.f32 %v5138_v36, %v744_v19  ;;  %v757_v26 = vadd.f32 %v5139_v46, %v743_v47  ;;  %v1056_v8 = vstv %s4769_s26  ;;  %v1040_v1 = vadd.f32 %v5144_v7, %v1026_v32  ;;  %v5152_v47 = vld [vmem:[#allocation129_spill] sm:$0xff] }
 0x2d6   : > { %v1039_v55 = vadd.f32 %v5145_v42, %v1025_v40  ;;  %v1308_v49 = vadd.f32 %v1306_v6, %v1302_v33  ;;  %v1307_v13 = vadd.f32 %v1305_v37, %v1301_v58  ;;  %v1058_v11 = vmul.f32 %v3024_v16, %v1056_v8  ;;  %v5159_v37 = vld [vmem:[#allocation102_spill] sm:$0xff]  ;;  %v5160_v40 = vld [vmem:[#allocation131_spill] sm:$0xff]  ;;  %v5161_v33 = vld [vmem:[#allocation132_spill] sm:$0xff] }
 0x2d7   : > { %v772_v57 = vadd.f32 %v5142_v31, %v758_v39  ;;  %v771_v34 = vadd.f32 %v5143_v27, %v757_v26  ;;  %v1054_v28 = vadd.f32 %v5146_v44, %v1040_v1  ;;  %v1057_v45 = vmul.f32 %v3025_v35, %v1056_v8  ;;  %v5158_v26 = vld [vmem:[#allocation101_spill] sm:$0xff] }
 0x2d8   : > { %v1053_v54 = vadd.f32 %v5147_v15, %v1039_v55  ;;  %v1338_v5 = vstv %s4779_s27  ;;  %v1322_v21 = vadd.f32 %v5148_v60, %v1308_v49  ;;  %v1321_v0 = vadd.f32 %v5149_v29, %v1307_v13 }
 0x2d9   : > { %v778_v22 = vadd.f32 %v776_v59, %v772_v57  ;;  %v777_v51 = vadd.f32 %v775_v41, %v771_v34  ;;  %v1340_v38 = vmul.f32 %v3024_v16, %v1338_v5  ;;  %v1339_v52 = vmul.f32 %v3025_v35, %v1338_v5  ;;  %v5162_v34 = vld [vmem:[#allocation133_spill] sm:$0xff]  ;;  %v5163_v16 = vld [vmem:[#allocation134_spill] sm:$0xff] }
 0x2da   : > { %v1060_v12 = vadd.f32 %v1058_v11, %v1054_v28  ;;  %v1059_v19 = vadd.f32 %v1057_v45, %v1053_v54  ;;  %v1336_v2 = vadd.f32 %v5152_v47, %v1322_v21  ;;  %v1335_v53 = vadd.f32 %v5153_v18, %v1321_v0 }
 0x2db   : > { %v792_v61 = vadd.f32 %v5150_v17, %v778_v22  ;;  %v791_v24 = vadd.f32 %v5151_v30, %v777_v51 }
 0x2dc   : > { %v1074_v50 = vadd.f32 %v5156_v10, %v1060_v12  ;;  %v1073_v9 = vadd.f32 %v5157_v20, %v1059_v19  ;;  %v1342_v25 = vadd.f32 %v1340_v38, %v1336_v2  ;;  %v1341_v36 = vadd.f32 %v1339_v52, %v1335_v53 }
 0x2dd   : > { %v806_v56 = vadd.f32 %v5154_v63, %v792_v61  ;;  %v805_v62 = vadd.f32 %v5155_v43, %v791_v24 }
 0x2de   : > { %v1088_v6 = vadd.f32 %v5158_v26, %v1074_v50  ;;  %v1087_v32 = vadd.f32 %v5159_v37, %v1073_v9  ;;  %v1356_v14 = vadd.f32 %v5160_v40, %v1342_v25  ;;  %v1355_v48 = vadd.f32 %v5161_v33, %v1341_v36 }
 0x2df   : > { %v810_v39 = vadd.f32 %v4577_v23, %v806_v56  ;;  %v809_v46 = vadd.f32 %v4577_v23, %v805_v62 }
 0x2e0   : > { %v1092_v57 = vadd.f32 %v4580_v3, %v1088_v6  ;;  %v1091_v27 = vadd.f32 %v4580_v3, %v1087_v32  ;;  %v1370_v23 = vadd.f32 %v5162_v34, %v1356_v14  ;;  %v1369_v59 = vadd.f32 %v5163_v16, %v1355_v48 }
 0x2e1   : > { %v814_v58 = vmul.f32 0.01, %v810_v39  ;;  %v813_v31 = vmul.f32 0.01, %v809_v46  ;;  %vm812_vm12 = vcmp.gt.f32.partialorder %v810_v39, 0.0  ;;  %vm811_vm13 = vcmp.gt.f32.partialorder %v809_v46, 0.0 }
 0x2e2   : > { %v1096_v8 = vmul.f32 0.01, %v1092_v57  ;;  %v1095_v7 = vmul.f32 0.01, %v1091_v27  ;;  %v1374_v1 = vadd.f32 %v4589_v4, %v1370_v23  ;;  %v1373_v42 = vadd.f32 %v4589_v4, %v1369_v59 }
 0x2e3   : > { %v816_v35 = vsel %vm812_vm12, %v810_v39, %v814_v58  ;;  %v815_v41 = vsel %vm811_vm13, %v809_v46, %v813_v31  ;;  %vm1094_vm14 = vcmp.gt.f32.partialorder %v1092_v57, 0.0  ;;  %vm1093_vm15 = vcmp.gt.f32.partialorder %v1091_v27, 0.0 }
 0x2e4   : > { %v1378_v22 = vmul.f32 0.01, %v1374_v1  ;;  %v1377_v51 = vmul.f32 0.01, %v1373_v42  ;;  %v1098_v11 = vsel %vm1094_vm14, %v1092_v57, %v1096_v8  ;;  %v1097_v4 = vsel %vm1093_vm15, %v1091_v27, %v1095_v7 }
 0x2e5   : > { %vm1376_vm0 = vcmp.gt.f32.partialorder %v1374_v1, 0.0  ;;  %vm1375_vm1 = vcmp.gt.f32.partialorder %v1373_v42, 0.0 }
 0x2e6   : > { %v1380_v45 = vsel %vm1376_vm0, %v1374_v1, %v1378_v22  ;;  %v1379_v60 = vsel %vm1375_vm1, %v1373_v42, %v1377_v51 }
 0x31b   : > { %v2536_v55 = vpop.permute.xlu1 %2535 }
 0x31c   : > { %v2534_v49 = vpop.permute.xlu0 %2533  ;;  %v2540_v13 = vsel %vm2525_vm7, %v816_v35, %v2536_v55 }
 0x31d   : > { %v2539_v3 = vsel %vm2525_vm7, %v815_v41, %v2534_v49  ;;  %2937 = vst.msk [vmem:[%s4600_s12 + $0x18] sm:$0xff] %vm2528_vm8, %v2540_v13 }
 0x31e   : > { %2936 = vst.msk [vmem:[%s4600_s12 + $0x10] sm:$0xff] %vm2528_vm8, %v2539_v3 }
 0x31f   : > { %v2549_v44 = vpop.permute.xlu1 %2548 }
 0x320   : > { %v2547_v28 = vpop.permute.xlu0 %2546  ;;  %v2553_v15 = vsel %vm2525_vm7, %v1098_v11, %v2549_v44 }
 0x321   : > { %v2552_v54 = vsel %vm2525_vm7, %v1097_v4, %v2547_v28  ;;  %2939 = vst.msk [vmem:[%s4600_s12 + $0x28] sm:$0xff] %vm2528_vm8, %v2553_v15 }
 0x322   : > { %2938 = vst.msk [vmem:[%s4600_s12 + $0x20] sm:$0xff] %vm2528_vm8, %v2552_v54 }
 0x323   : > { %v2562_v5 = vpop.permute.xlu1 %2561 }
 0x324   : > { %v2560_v21 = vpop.permute.xlu0 %2559  ;;  %v2566_v29 = vsel %vm2525_vm7, %v1380_v45, %v2562_v5 }
 0x325   : > { %v2565_v0 = vsel %vm2525_vm7, %v1379_v60, %v2560_v21  ;;  %2941 = vst.msk [vmem:[%s4600_s12 + $0x38] sm:$0xff] %vm2528_vm8, %v2566_v29 }
 0x326   : > { %2940 = vst.msk [vmem:[%s4600_s12 + $0x30] sm:$0xff] %vm2528_vm8, %v2565_v0 }
 0x327 PF: > { %s15_s14 = sadd.s32 1, %s3086_s14   ;;  %s5164_s12 = smov %s3082_s13 }
 0x328   : > { %p12_p4 = scmp.ge.s32.totalorder %s15_s14, 4   ;;  %s5165_s13 = smov %s5167_s16 }
 0x32a   :  { %14 = sbr.rel (!%p12_p4) target bundleno = 3 (0x3), region = 86 }
 0x331   :  { %2600 = vsyncpa [#allocation3], 1 }
 0x332   :  { %2602 = vsyncpa [#allocation3 + $0x1], 1 }
 0x333   :  { %2603 = vsyncpa [#allocation5], 1 }

</bundles_post_ra>
